<compile_context>
chip_gen: v7x
topology: tpu7x:2x2x1
jax: 0.10.0
libtpu: 0.0.40
codegen_flags: <defaults>
</compile_context>

<pallas_src>
import functools

import jax
import jax.numpy as jnp
from jax import lax
from jax.experimental import pallas as pl
from jax.experimental.pallas import tpu as pltpu


# ------------------------- generation-aware limits -------------------------- #

def _vmem_limit_bytes():
    try:
        info = pltpu.get_tpu_info()
        cap = int(getattr(info, "vmem_capacity_bytes", 0) or 0)
        if cap > 0:
            # ~96 MiB on v5e/v6e (128 MiB physical), ~48 MiB on v7x (64 MiB).
            return min(int(cap * 3 // 4), 100 * 1024 * 1024)
    except Exception:
        pass
    return 32 * 1024 * 1024


_VMEM_LIMIT = _vmem_limit_bytes()
_BIG = _VMEM_LIMIT >= 64 * 1024 * 1024
_ROW_CAP = 1024 if _BIG else 512      # row tiles for projection kernels
_ATTN_Q_CAP = 512 if _BIG else 256    # query rows per attention grid step
_ATTN_KV_CAP = 1024 if _BIG else 512  # kv rows per attention grid step


def _cparams(*sem):
    return pltpu.CompilerParams(dimension_semantics=sem,
                                vmem_limit_bytes=_VMEM_LIMIT)


def _pick_tile(n, cap):
    """Full extent if it fits under cap; else a multiple-of-8 divisor near cap;
    else cap itself (caller pads rows up to a multiple of the tile)."""
    if n <= cap:
        return n
    hi = cap // 8 * 8
    lo = max(8, (cap // 2) // 8 * 8)
    for t in range(hi, lo - 1, -8):
        if n % t == 0:
            return t
    return hi


def _pad_rows(a, tr):
    r = a.shape[0]
    rp = pl.cdiv(r, tr) * tr
    if rp != r:
        a = jnp.pad(a, ((0, rp - r), (0, 0)))
    return a, rp


# ----------------------------- Pallas kernels ------------------------------ #

def _linear_kernel(x_ref, w_ref, b_ref, o_ref):
    o_ref[...] = (jnp.dot(x_ref[...], w_ref[...],
                          preferred_element_type=jnp.float32)
                  + b_ref[...]).astype(o_ref.dtype)


def linear_pallas(x2, w, b):
    """x2: (R, Cin) @ w: (Cin, Cout) + b -> (R, Cout). Row-tiled + row-padded."""
    R, Cin = x2.shape
    Cout = w.shape[1]
    tr = _pick_tile(R, _ROW_CAP)
    xp, Rp = _pad_rows(x2, tr)
    out = pl.pallas_call(
        _linear_kernel,
        out_shape=jax.ShapeDtypeStruct((Rp, Cout), x2.dtype),
        grid=(Rp // tr,),
        in_specs=[
            pl.BlockSpec((tr, Cin), lambda r: (r, 0)),
            pl.BlockSpec((Cin, Cout), lambda r: (0, 0)),
            pl.BlockSpec((1, Cout), lambda r: (0, 0)),
        ],
        out_specs=pl.BlockSpec((tr, Cout), lambda r: (r, 0)),
        compiler_params=_cparams("parallel"),
    )(xp, w, b.reshape(1, Cout))
    return out[:R] if Rp != R else out


def _sr_kv_kernel(alpha_ref, p_ref, wsr_ref, bsr_ref, g_ref, be_ref,
                  wkv_ref, bkv_ref, o_ref):
    # Fused: sr Conv3d (as patch matmul) + DyT(sr_norm) + merged K|V projection.
    x = jnp.dot(p_ref[...], wsr_ref[...],
                preferred_element_type=jnp.float32) + bsr_ref[...]
    x = jnp.tanh(alpha_ref[0, 0] * x) * g_ref[...] + be_ref[...]
    o_ref[...] = (jnp.dot(x.astype(wkv_ref.dtype), wkv_ref[...],
                          preferred_element_type=jnp.float32)
                  + bkv_ref[...]).astype(o_ref.dtype)


def sr_kv_pallas(patches, w_sr, b_sr, sr_alpha, sr_gamma, sr_beta, wkv, bkv):
    """patches: (R, Cin*s^3) -> kv (R, 2C) lane-dense. One fused kernel."""
    R, Cp = patches.shape
    C = w_sr.shape[1]
    tr = _pick_tile(R, _ROW_CAP)
    pp, Rp = _pad_rows(patches, tr)
    vec = lambda c: pl.BlockSpec((1, c), lambda r: (0, 0))
    out = pl.pallas_call(
        _sr_kv_kernel,
        out_shape=jax.ShapeDtypeStruct((Rp, 2 * C), patches.dtype),
        grid=(Rp // tr,),
        in_specs=[
            pl.BlockSpec(memory_space=pltpu.MemorySpace.SMEM),   # DyT alpha
            pl.BlockSpec((tr, Cp), lambda r: (r, 0)),
            pl.BlockSpec((Cp, C), lambda r: (0, 0)),
            vec(C), vec(C), vec(C),
            pl.BlockSpec((C, 2 * C), lambda r: (0, 0)),
            vec(2 * C),
        ],
        out_specs=pl.BlockSpec((tr, 2 * C), lambda r: (r, 0)),
        compiler_params=_cparams("parallel"),
    )(sr_alpha.reshape(1, 1), pp, w_sr, b_sr.reshape(1, C),
      sr_gamma.reshape(1, C), sr_beta.reshape(1, C), wkv, bkv.reshape(1, 2 * C))
    return out[:R] if Rp != R else out


def _attn_kernel(alpha_ref, x_ref, kv_ref, wq_ref, bq_ref, wp_ref, bp_ref,
                 g_ref, be_ref, o_ref, q_scr, acc_scr, m_scr, l_scr,
                 *, num_heads, head_dim, kv_tile, kv_len):
    """Fused: q = x@wq+bq (scale pre-folded) -> online-softmax attention over
    kv tiles -> output projection + DyT epilogue (single lane-dense store)."""
    C = num_heads * head_dim
    kv_step = pl.program_id(2)

    @pl.when(kv_step == 0)
    def _():
        q_scr[...] = (jnp.dot(x_ref[...], wq_ref[...],
                              preferred_element_type=jnp.float32)
                      + bq_ref[...]).astype(q_scr.dtype)
        acc_scr[...] = jnp.zeros_like(acc_scr)
        m_scr[...] = jnp.full_like(m_scr, -jnp.inf)
        l_scr[...] = jnp.zeros_like(l_scr)

    tq = x_ref.shape[0]
    if kv_len % kv_tile:   # static: kv rows were zero-padded -> mask their scores
        col = lax.broadcasted_iota(jnp.int32, (tq, kv_tile), 1)
        kvmask = (col + kv_step * kv_tile) < kv_len
    else:
        kvmask = None

    dn = (((1,), (1,)), ((), ()))          # contract last dims; no k transpose
    for h in range(num_heads):             # static unroll; heads = channel slices
        lo = h * head_dim
        hi = lo + head_dim
        s = lax.dot_general(q_scr[:, lo:hi], kv_ref[:, lo:hi], dn,
                            preferred_element_type=jnp.float32)    # (tq, tkv)
        if kvmask is not None:
            s = jnp.where(kvmask, s, -jnp.inf)
        m_prev = m_scr[h]
        m_new = jnp.maximum(m_prev, jnp.max(s, axis=-1, keepdims=True))
        a = jnp.exp(m_prev - m_new)
        p = jnp.exp(s - m_new)                                      # f32
        l_scr[h] = a * l_scr[h] + jnp.sum(p, axis=-1, keepdims=True)
        acc_scr[:, lo:hi] = (a * acc_scr[:, lo:hi]
                             + jnp.dot(p.astype(kv_ref.dtype),
                                       kv_ref[:, C + lo:C + hi],
                                       preferred_element_type=jnp.float32))
        m_scr[h] = m_new

    @pl.when(kv_step == pl.num_programs(2) - 1)
    def _():
        # Epilogue: per-head normalize, projection decomposed over head column
        # blocks of w_proj, DyT; one lane-dense (tq, C) store.
        y = bp_ref[...].astype(jnp.float32)
        for h in range(num_heads):
            lo = h * head_dim
            hi = lo + head_dim
            oh = acc_scr[:, lo:hi] * pl.reciprocal(l_scr[h], approx=True)
            y = y + jnp.dot(oh.astype(wp_ref.dtype), wp_ref[lo:hi, :],
                            preferred_element_type=jnp.float32)
        y = jnp.tanh(alpha_ref[0, 0] * y) * g_ref[...] + be_ref[...]
        o_ref[...] = y.astype(o_ref.dtype)


def attention_proj_pallas(x, kv, wq_s, bq_s, w_proj, b_proj, alpha, gamma, beta,
                          *, num_heads):
    """x: (B, N, C) (q source); kv: (B, M, 2C) -> DyT(proj(attn)) : (B, N, C)."""
    B, N, C = x.shape
    M = kv.shape[1]
    hd = C // num_heads

    tq = _pick_tile(N, _ATTN_Q_CAP)
    Np = pl.cdiv(N, tq) * tq
    if Np != N:                      # padded q rows are discarded after the call
        x = jnp.pad(x, ((0, 0), (0, Np - N), (0, 0)))

    tkv = _pick_tile(M, _ATTN_KV_CAP)
    Mp = pl.cdiv(M, tkv) * tkv
    if Mp != M:                      # padded kv rows are masked in-kernel
        kv = jnp.pad(kv, ((0, 0), (0, Mp - M), (0, 0)))

    kern = functools.partial(_attn_kernel, num_heads=num_heads, head_dim=hd,
                             kv_tile=tkv, kv_len=M)
    vec = lambda c: pl.BlockSpec((1, c), lambda b, i, k: (0, 0))
    # NOTE: weight / kv blocks are constant-index across inner grid axes so they
    # are fetched only on index change; pipeline_mode=pl.Buffered(1) could halve
    # their VMEM further on v7x but is skipped for cross-version compile safety.
    out = pl.pallas_call(
        kern,
        out_shape=jax.ShapeDtypeStruct((B, Np, C), x.dtype),
        grid=(B, Np // tq, Mp // tkv),
        in_specs=[
            pl.BlockSpec(memory_space=pltpu.MemorySpace.SMEM),          # DyT alpha
            pl.BlockSpec((None, tq, C), lambda b, i, k: (b, i, 0)),     # x (q src)
            pl.BlockSpec((None, tkv, 2 * C), lambda b, i, k: (b, k, 0)),  # kv
            pl.BlockSpec((C, C), lambda b, i, k: (0, 0)),               # wq*scale
            vec(C),                                                     # bq*scale
            pl.BlockSpec((C, C), lambda b, i, k: (0, 0)),               # w_proj
            vec(C), vec(C), vec(C),                                     # bp, gamma, beta
        ],
        out_specs=pl.BlockSpec((None, tq, C), lambda b, i, k: (b, i, 0)),
        scratch_shapes=[
            pltpu.VMEM((tq, C), x.dtype),                # q tile (cached over kv)
            pltpu.VMEM((tq, C), jnp.float32),            # per-head unnormalized acc
            pltpu.VMEM((num_heads, tq, 1), jnp.float32),  # running max
            pltpu.VMEM((num_heads, tq, 1), jnp.float32),  # running denom
        ],
        compiler_params=_cparams("parallel", "parallel", "arbitrary"),
    )(alpha.reshape(1, 1), x, kv, wq_s, bq_s.reshape(1, C),
      w_proj, b_proj.reshape(1, C), gamma.reshape(1, C), beta.reshape(1, C))
    if Np != N:
        out = out[:, :N, :]
    return out


# --------------------------- parameter preparation -------------------------- #

def prepare_params(p, *, num_heads, sr_ratio):
    """One-time (outside jit) weight transforms: fold the combined 1/hd scale
    into wq/bq, merge K|V weights, flatten the sr conv weight for matmul."""
    C = p["wq"].shape[0]
    hd = C // num_heads
    scale_total = 1.0 / hd       # module's hd^-0.5 on q  *  SDPA's 1/sqrt(hd)
    out = {
        "wq_s": p["wq"] * scale_total,
        "bq_s": p["bq"] * scale_total,
        "wkv": jnp.concatenate([p["wk"], p["wv"]], axis=1),
        "bkv": jnp.concatenate([p["bk"], p["bv"]], axis=0),
        "w_proj": p["w_proj"], "b_proj": p["b_proj"],
        "alpha": p["alpha"], "gamma": p["gamma"], "beta": p["beta"],
    }
    if sr_ratio > 1:
        s = sr_ratio
        # Conv weight (Cout, Cin, kd, kh, kw) -> (kd, kh, kw, Cin, Cout) matmul layout.
        out["w_sr_mat"] = p["w_sr_torch"].transpose(2, 3, 4, 1, 0).reshape(s ** 3 * C, C)
        out["b_sr"] = p["b_sr"]
        out["sr_alpha"] = p["sr_alpha"]
        out["sr_gamma"] = p["sr_gamma"]
        out["sr_beta"] = p["sr_beta"]
    return out


# ----------------------------- forward (glue) ------------------------------ #

def efficient_attention_forward(pp, x, D, H, W, *, num_heads, sr_ratio):
    B, N, C = x.shape

    if sr_ratio > 1:
        s = sr_ratio
        Dp, Hp, Wp = D // s, H // s, W // s
        M = Dp * Hp * Wp
        # TODO(synk): replace this XLA transpose with an in-kernel patch gather
        # (index_map over the 8-D view / make_async_copy) to save one x pass.
        patches = x.reshape(B, Dp, s, Hp, s, Wp, s, C)
        patches = patches.transpose(0, 1, 3, 5, 2, 4, 6, 7)
        patches = patches.reshape(B * M, s * s * s * C)
        kv2 = sr_kv_pallas(patches, pp["w_sr_mat"], pp["b_sr"],
                           pp["sr_alpha"], pp["sr_gamma"], pp["sr_beta"],
                           pp["wkv"], pp["bkv"])
    else:
        M = N
        kv2 = linear_pallas(x.reshape(B * N, C), pp["wkv"], pp["bkv"])

    kv = kv2.reshape(B, M, 2 * C)
    # attn_drop.p == proj_drop.p == 0.0 -> dropouts are no-ops.
    return attention_proj_pallas(x, kv, pp["wq_s"], pp["bq_s"],
                                 pp["w_proj"], pp["b_proj"],
                                 pp["alpha"], pp["gamma"], pp["beta"],
                                 num_heads=num_heads)


# --------------------------- pure-JAX reference ----------------------------- #

def reference_forward(params, x, D, H, W, *, num_heads, sr_ratio):
    B, N, C = x.shape
    hd = C // num_heads
    scale_total = 1.0 / hd

    q = (x @ params["wq"] + params["bq"]).reshape(B, N, num_heads, hd)
    q = q.transpose(0, 2, 1, 3)

    if sr_ratio > 1:
        s = sr_ratio
        x_ = x.transpose(0, 2, 1).reshape(B, C, D, H, W)
        y = lax.conv_general_dilated(
            x_, params["w_sr_torch"], window_strides=(s, s, s), padding="VALID",
            dimension_numbers=("NCDHW", "OIDHW", "NCDHW"))
        y = y + params["b_sr"].reshape(1, C, 1, 1, 1)
        kv_in = y.reshape(B, C, -1).transpose(0, 2, 1)
        kv_in = (jnp.tanh(params["sr_alpha"] * kv_in) * params["sr_gamma"]
                 + params["sr_beta"])
    else:
        kv_in = x

    M = kv_in.shape[1]
    k = (kv_in @ params["wk"] + params["bk"]).reshape(B, M, num_heads, hd).transpose(0, 2, 1, 3)
    v = (kv_in @ params["wv"] + params["bv"]).reshape(B, M, num_heads, hd).transpose(0, 2, 1, 3)

    scores = jnp.einsum("bhnd,bhmd->bhnm", q, k) * scale_total
    p = jax.nn.softmax(scores, axis=-1)
    o = jnp.einsum("bhnm,bhmd->bhnd", p, v).transpose(0, 2, 1, 3).reshape(B, N, C)
    o = o @ params["w_proj"] + params["b_proj"]
    return jnp.tanh(params["alpha"] * o) * params["gamma"] + params["beta"]


# --------------------------------- main ------------------------------------ #

if __name__ == "__main__":
    B, C, num_heads = 2, 32, 4
    D = H = W = 4
    N = D * H * W
    dtype = jnp.float32

    key = jax.random.PRNGKey(0)
    ks = jax.random.split(key, 12)

    def nrm(k_, shape, sc=0.05):
        return jax.random.normal(k_, shape, dtype=dtype) * sc

    params = {
        # nn.Linear(dim, dim) weights stored pre-transposed as (in, out).
        "wq": nrm(ks[0], (C, C)), "bq": jnp.zeros((C,), dtype),   # qkv_bias=False
        "wk": nrm(ks[1], (C, C)), "bk": jnp.zeros((C,), dtype),
        "wv": nrm(ks[2], (C, C)), "bv": jnp.zeros((C,), dtype),
        "w_proj": nrm(ks[3], (C, C)), "b_proj": nrm(ks[4], (C,), 0.02),
        # Conv3d(dim, dim, k=sr, stride=sr) weight in PyTorch OIDHW layout.
        "w_sr_torch": nrm(ks[5], (C, C, 2, 2, 2)),
        "b_sr": nrm(ks[6], (C,), 0.02),
        # DyT (proj norm)
        "alpha": jnp.full((1,), 0.5, dtype),
        "gamma": 1.0 + nrm(ks[7], (C,), 0.02),
        "beta": nrm(ks[8], (C,), 0.02),
        # DyT (sr_norm)
        "sr_alpha": jnp.full((1,), 0.5, dtype),
        "sr_gamma": 1.0 + nrm(ks[9], (C,), 0.02),
        "sr_beta": nrm(ks[10], (C,), 0.02),
    }

    x = jax.random.normal(ks[11], (B, N, C), dtype=dtype)

    for sr_ratio in (2, 1):       # exercise both the sr-reduced and full-kv paths
        prepped = prepare_params(params, num_heads=num_heads, sr_ratio=sr_ratio)
        fwd = jax.jit(functools.partial(efficient_attention_forward,
                                        D=D, H=H, W=W,
                                        num_heads=num_heads, sr_ratio=sr_ratio))
        out = jax.block_until_ready(fwd(prepped, x))
        ref = reference_forward(params, x, D, H, W,
                                num_heads=num_heads, sr_ratio=sr_ratio)
        assert out.shape == (B, N, C), out.shape
        max_err = float(jnp.max(jnp.abs(out - ref)))
        assert jnp.allclose(out, ref, rtol=2e-2, atol=2e-2), (sr_ratio, max_err)

    print("KERNEL_OK")
</pallas_src>

<mosaic_0001>
module attributes {stable_mosaic.version = 11 : i64} {
  func.func @_sr_kv_kernel(%arg0: i32, %arg1: memref<1x1xf32, #tpu.memory_space<smem>>, %arg2: memref<16x256xf32, #tpu.memory_space<vmem>>, %arg3: memref<256x32xf32, #tpu.memory_space<vmem>>, %arg4: memref<1x32xf32, #tpu.memory_space<vmem>>, %arg5: memref<1x32xf32, #tpu.memory_space<vmem>>, %arg6: memref<1x32xf32, #tpu.memory_space<vmem>>, %arg7: memref<32x64xf32, #tpu.memory_space<vmem>>, %arg8: memref<1x64xf32, #tpu.memory_space<vmem>>, %arg9: memref<16x64xf32, #tpu.memory_space<vmem>>) attributes {dimension_semantics = [#tpu.dimension_semantics<parallel>], iteration_bounds = array<i64: 1>, scalar_prefetch = 0 : i64, scratch_operands = 0 : i64, tpu.core_type = #tpu.core_type<tc>, window_params = [{transform_indices = @transform_0, window_bounds = array<i64: 1, 1>}, {transform_indices = @transform_1, window_bounds = array<i64: 16, 256>}, {pipeline_mode = #tpu.pipeline_mode<synchronous>, transform_indices = @transform_2, window_bounds = array<i64: 256, 32>}, {pipeline_mode = #tpu.pipeline_mode<synchronous>, transform_indices = @transform_3, window_bounds = array<i64: 1, 32>}, {pipeline_mode = #tpu.pipeline_mode<synchronous>, transform_indices = @transform_4, window_bounds = array<i64: 1, 32>}, {pipeline_mode = #tpu.pipeline_mode<synchronous>, transform_indices = @transform_5, window_bounds = array<i64: 1, 32>}, {pipeline_mode = #tpu.pipeline_mode<synchronous>, transform_indices = @transform_6, window_bounds = array<i64: 32, 64>}, {pipeline_mode = #tpu.pipeline_mode<synchronous>, transform_indices = @transform_7, window_bounds = array<i64: 1, 64>}, {transform_indices = @transform_8, window_bounds = array<i64: 16, 64>}]} {
    %c0 = arith.constant 0 : index
    %c0_0 = arith.constant 0 : index
    %0 = vector.load %arg2[%c0, %c0_0] : memref<16x256xf32, #tpu.memory_space<vmem>>, vector<16x256xf32>
    %c0_1 = arith.constant 0 : index
    %c0_2 = arith.constant 0 : index
    %1 = vector.load %arg3[%c0_1, %c0_2] : memref<256x32xf32, #tpu.memory_space<vmem>>, vector<256x32xf32>
    %cst = arith.constant dense<0.000000e+00> : vector<16x32xf32>
    %2 = tpu.matmul %0, %1, %cst {dimension_numbers = #tpu.dot_dimension_numbers<[1], [0], [0], [1], [0, 0, 1, 1], [], []>} : vector<16x256xf32>, vector<256x32xf32>, vector<16x32xf32> -> vector<16x32xf32>
    %c0_3 = arith.constant 0 : index
    %c0_4 = arith.constant 0 : index
    %3 = vector.load %arg4[%c0_3, %c0_4] : memref<1x32xf32, #tpu.memory_space<vmem>>, vector<1x32xf32>
    %4 = vector.broadcast %3 : vector<1x32xf32> to vector<16x32xf32>
    %5 = arith.addf %2, %4 : vector<16x32xf32>
    %c0_5 = arith.constant 0 : index
    %c0_6 = arith.constant 0 : index
    %6 = memref.load %arg1[%c0_5, %c0_6] : memref<1x1xf32, #tpu.memory_space<smem>>
    %7 = vector.broadcast %6 : f32 to vector<16x32xf32>
    %8 = arith.mulf %7, %5 : vector<16x32xf32>
    %9 = math.tanh %8 : vector<16x32xf32>
    %c0_7 = arith.constant 0 : index
    %c0_8 = arith.constant 0 : index
    %10 = vector.load %arg5[%c0_7, %c0_8] : memref<1x32xf32, #tpu.memory_space<vmem>>, vector<1x32xf32>
    %11 = vector.broadcast %10 : vector<1x32xf32> to vector<16x32xf32>
    %12 = arith.mulf %9, %11 : vector<16x32xf32>
    %c0_9 = arith.constant 0 : index
    %c0_10 = arith.constant 0 : index
    %13 = vector.load %arg6[%c0_9, %c0_10] : memref<1x32xf32, #tpu.memory_space<vmem>>, vector<1x32xf32>
    %14 = vector.broadcast %13 : vector<1x32xf32> to vector<16x32xf32>
    %15 = arith.addf %12, %14 : vector<16x32xf32>
    %c0_11 = arith.constant 0 : index
    %c0_12 = arith.constant 0 : index
    %16 = vector.load %arg7[%c0_11, %c0_12] : memref<32x64xf32, #tpu.memory_space<vmem>>, vector<32x64xf32>
    %cst_13 = arith.constant dense<0.000000e+00> : vector<16x64xf32>
    %17 = tpu.matmul %15, %16, %cst_13 {dimension_numbers = #tpu.dot_dimension_numbers<[1], [0], [0], [1], [0, 0, 1, 1], [], []>} : vector<16x32xf32>, vector<32x64xf32>, vector<16x64xf32> -> vector<16x64xf32>
    %c0_14 = arith.constant 0 : index
    %c0_15 = arith.constant 0 : index
    %18 = vector.load %arg8[%c0_14, %c0_15] : memref<1x64xf32, #tpu.memory_space<vmem>>, vector<1x64xf32>
    %19 = vector.broadcast %18 : vector<1x64xf32> to vector<16x64xf32>
    %20 = arith.addf %17, %19 : vector<16x64xf32>
    %c0_16 = arith.constant 0 : index
    %c0_17 = arith.constant 0 : index
    %21 = vector.load %arg9[%c0_16, %c0_17] : memref<16x64xf32, #tpu.memory_space<vmem>>, vector<16x64xf32>
    tpu.vector_store %arg9[%c0_16, %c0_17], %20 {strides = array<i32>} : memref<16x64xf32, #tpu.memory_space<vmem>>, vector<16x64xf32>,
    return
  }
  func.func @transform_0(%arg0: i32) -> (i32, i32) {
    %c0_i32 = arith.constant 0 : i32
    %c0_i32_0 = arith.constant 0 : i32
    %c0_i32_1 = arith.constant 0 : i32
    return %c0_i32, %c0_i32_0 : i32, i32
  }
  func.func @transform_1(%arg0: i32) -> (i32, i32) {
    %c0_i32 = arith.constant 0 : i32
    %c0_i32_0 = arith.constant 0 : i32
    return %arg0, %c0_i32 : i32, i32
  }
  func.func @transform_2(%arg0: i32) -> (i32, i32) {
    %c0_i32 = arith.constant 0 : i32
    %c0_i32_0 = arith.constant 0 : i32
    %c0_i32_1 = arith.constant 0 : i32
    return %c0_i32, %c0_i32_0 : i32, i32
  }
  func.func @transform_3(%arg0: i32) -> (i32, i32) {
    %c0_i32 = arith.constant 0 : i32
    %c0_i32_0 = arith.constant 0 : i32
    %c0_i32_1 = arith.constant 0 : i32
    return %c0_i32, %c0_i32_0 : i32, i32
  }
  func.func @transform_4(%arg0: i32) -> (i32, i32) {
    %c0_i32 = arith.constant 0 : i32
    %c0_i32_0 = arith.constant 0 : i32
    %c0_i32_1 = arith.constant 0 : i32
    return %c0_i32, %c0_i32_0 : i32, i32
  }
  func.func @transform_5(%arg0: i32) -> (i32, i32) {
    %c0_i32 = arith.constant 0 : i32
    %c0_i32_0 = arith.constant 0 : i32
    %c0_i32_1 = arith.constant 0 : i32
    return %c0_i32, %c0_i32_0 : i32, i32
  }
  func.func @transform_6(%arg0: i32) -> (i32, i32) {
    %c0_i32 = arith.constant 0 : i32
    %c0_i32_0 = arith.constant 0 : i32
    %c0_i32_1 = arith.constant 0 : i32
    return %c0_i32, %c0_i32_0 : i32, i32
  }
  func.func @transform_7(%arg0: i32) -> (i32, i32) {
    %c0_i32 = arith.constant 0 : i32
    %c0_i32_0 = arith.constant 0 : i32
    %c0_i32_1 = arith.constant 0 : i32
    return %c0_i32, %c0_i32_0 : i32, i32
  }
  func.func @transform_8(%arg0: i32) -> (i32, i32) {
    %c0_i32 = arith.constant 0 : i32
    %c0_i32_0 = arith.constant 0 : i32
    return %arg0, %c0_i32 : i32, i32
  }
}

module attributes {stable_mosaic.version = 11 : i64} {
  func.func @_attn_kernel(%arg0: i32, %arg1: i32, %arg2: i32, %arg3: memref<1x1xf32, #tpu.memory_space<smem>>, %arg4: memref<1x64x32xf32, #tpu.memory_space<vmem>>, %arg5: memref<1x8x64xf32, #tpu.memory_space<vmem>>, %arg6: memref<32x32xf32, #tpu.memory_space<vmem>>, %arg7: memref<1x32xf32, #tpu.memory_space<vmem>>, %arg8: memref<32x32xf32, #tpu.memory_space<vmem>>, %arg9: memref<1x32xf32, #tpu.memory_space<vmem>>, %arg10: memref<1x32xf32, #tpu.memory_space<vmem>>, %arg11: memref<1x32xf32, #tpu.memory_space<vmem>>, %arg12: memref<1x64x32xf32, #tpu.memory_space<vmem>>, %arg13: memref<64x32xf32, #tpu.memory_space<vmem>>, %arg14: memref<64x32xf32, #tpu.memory_space<vmem>>, %arg15: memref<4x64x1xf32, #tpu.memory_space<vmem>>, %arg16: memref<4x64x1xf32, #tpu.memory_space<vmem>>) attributes {dimension_semantics = [#tpu.dimension_semantics<parallel>, #tpu.dimension_semantics<parallel>, #tpu.dimension_semantics<arbitrary>], iteration_bounds = array<i64: 2, 1, 1>, scalar_prefetch = 0 : i64, scratch_operands = 4 : i64, tpu.core_type = #tpu.core_type<tc>, window_params = [{transform_indices = @transform_0, window_bounds = array<i64: 1, 1>}, {transform_indices = @transform_1, window_bounds = array<i64: 1, 64, 32>}, {transform_indices = @transform_2, window_bounds = array<i64: 1, 8, 64>}, {pipeline_mode = #tpu.pipeline_mode<synchronous>, transform_indices = @transform_3, window_bounds = array<i64: 32, 32>}, {pipeline_mode = #tpu.pipeline_mode<synchronous>, transform_indices = @transform_4, window_bounds = array<i64: 1, 32>}, {pipeline_mode = #tpu.pipeline_mode<synchronous>, transform_indices = @transform_5, window_bounds = array<i64: 32, 32>}, {pipeline_mode = #tpu.pipeline_mode<synchronous>, transform_indices = @transform_6, window_bounds = array<i64: 1, 32>}, {pipeline_mode = #tpu.pipeline_mode<synchronous>, transform_indices = @transform_7, window_bounds = array<i64: 1, 32>}, {pipeline_mode = #tpu.pipeline_mode<synchronous>, transform_indices = @transform_8, window_bounds = array<i64: 1, 32>}, {transform_indices = @transform_9, window_bounds = array<i64: 1, 64, 32>}]} {
    %c0_i32 = arith.constant 0 : i32
    %0 = arith.cmpi eq, %arg2, %c0_i32 : i32
    %1 = arith.extui %0 : i1 to i32
    %c0_i32_0 = arith.constant 0 : i32
    %2 = arith.cmpi ne, %1, %c0_i32_0 : i32
    scf.if %2 {
      %c0_103 = arith.constant 0 : index
      %c0_104 = arith.constant 0 : index
      %c0_105 = arith.constant 0 : index
      %142 = vector.load %arg4[%c0_103, %c0_104, %c0_105] : memref<1x64x32xf32, #tpu.memory_space<vmem>>, vector<1x64x32xf32>
      %143 = vector.shape_cast %142 : vector<1x64x32xf32> to vector<64x32xf32>
      %c0_106 = arith.constant 0 : index
      %c0_107 = arith.constant 0 : index
      %144 = vector.load %arg6[%c0_106, %c0_107] : memref<32x32xf32, #tpu.memory_space<vmem>>, vector<32x32xf32>
      %cst_108 = arith.constant dense<0.000000e+00> : vector<64x32xf32>
      %145 = tpu.matmul %143, %144, %cst_108 {dimension_numbers = #tpu.dot_dimension_numbers<[1], [0], [0], [1], [0, 0, 1, 1], [], []>} : vector<64x32xf32>, vector<32x32xf32>, vector<64x32xf32> -> vector<64x32xf32>
      %c0_109 = arith.constant 0 : index
      %c0_110 = arith.constant 0 : index
      %146 = vector.load %arg7[%c0_109, %c0_110] : memref<1x32xf32, #tpu.memory_space<vmem>>, vector<1x32xf32>
      %147 = vector.broadcast %146 : vector<1x32xf32> to vector<64x32xf32>
      %148 = arith.addf %145, %147 : vector<64x32xf32>
      %c0_111 = arith.constant 0 : index
      %c0_112 = arith.constant 0 : index
      %149 = vector.load %arg13[%c0_111, %c0_112] : memref<64x32xf32, #tpu.memory_space<vmem>>, vector<64x32xf32>
      tpu.vector_store %arg13[%c0_111, %c0_112], %148 {strides = array<i32>} : memref<64x32xf32, #tpu.memory_space<vmem>>, vector<64x32xf32>,
      %cst_113 = arith.constant 0.000000e+00 : f32
      %150 = vector.broadcast %cst_113 : f32 to vector<64x32xf32>
      %c0_114 = arith.constant 0 : index
      %c0_115 = arith.constant 0 : index
      %151 = vector.load %arg14[%c0_114, %c0_115] : memref<64x32xf32, #tpu.memory_space<vmem>>, vector<64x32xf32>
      tpu.vector_store %arg14[%c0_114, %c0_115], %150 {strides = array<i32>} : memref<64x32xf32, #tpu.memory_space<vmem>>, vector<64x32xf32>,
      %cst_116 = arith.constant 0xFF800000 : f32
      %152 = vector.broadcast %cst_116 : f32 to vector<4x64x1xf32>
      %c0_117 = arith.constant 0 : index
      %c0_118 = arith.constant 0 : index
      %c0_119 = arith.constant 0 : index
      %153 = vector.load %arg15[%c0_117, %c0_118, %c0_119] : memref<4x64x1xf32, #tpu.memory_space<vmem>>, vector<4x64x1xf32>
      tpu.vector_store %arg15[%c0_117, %c0_118, %c0_119], %152 {strides = array<i32>} : memref<4x64x1xf32, #tpu.memory_space<vmem>>, vector<4x64x1xf32>,
      %cst_120 = arith.constant 0.000000e+00 : f32
      %154 = vector.broadcast %cst_120 : f32 to vector<4x64x1xf32>
      %c0_121 = arith.constant 0 : index
      %c0_122 = arith.constant 0 : index
      %c0_123 = arith.constant 0 : index
      %155 = vector.load %arg16[%c0_121, %c0_122, %c0_123] : memref<4x64x1xf32, #tpu.memory_space<vmem>>, vector<4x64x1xf32>
      tpu.vector_store %arg16[%c0_121, %c0_122, %c0_123], %154 {strides = array<i32>} : memref<4x64x1xf32, #tpu.memory_space<vmem>>, vector<4x64x1xf32>,
    } else {
    }
    %c0 = arith.constant 0 : index
    %c0_1 = arith.constant 0 : index
    %3 = vector.load %arg13[%c0, %c0_1] : memref<64x32xf32, #tpu.memory_space<vmem>>, vector<64x8xf32>
    %c0_2 = arith.constant 0 : index
    %c0_3 = arith.constant 0 : index
    %c0_4 = arith.constant 0 : index
    %4 = vector.load %arg5[%c0_2, %c0_3, %c0_4] : memref<1x8x64xf32, #tpu.memory_space<vmem>>, vector<1x8x8xf32>
    %5 = vector.shape_cast %4 : vector<1x8x8xf32> to vector<8x8xf32>
    %cst = arith.constant dense<0.000000e+00> : vector<64x8xf32>
    %6 = tpu.matmul %3, %5, %cst {dimension_numbers = #tpu.dot_dimension_numbers<[1], [1], [0], [0], [0, 0, 1, 0], [], []>} : vector<64x8xf32>, vector<8x8xf32>, vector<64x8xf32> -> vector<64x8xf32>
    %c0_5 = arith.constant 0 : index
    %c0_6 = arith.constant 0 : index
    %c0_7 = arith.constant 0 : index
    %7 = vector.load %arg15[%c0_5, %c0_6, %c0_7] : memref<4x64x1xf32, #tpu.memory_space<vmem>>, vector<1x64x1xf32>
    %8 = vector.shape_cast %7 : vector<1x64x1xf32> to vector<64x1xf32>
    %cst_8 = arith.constant dense<0xFF800000> : vector<64xf32>
    %9 = vector.multi_reduction <maximumf>, %6, %cst_8 [1] : vector<64x8xf32> to vector<64xf32>
    %10 = vector.shape_cast %9 : vector<64xf32> to vector<64x1xf32>
    %11 = arith.maximumf %8, %10 : vector<64x1xf32>
    %12 = arith.subf %8, %11 : vector<64x1xf32>
    %13 = math.exp %12 : vector<64x1xf32>
    %14 = vector.broadcast %11 : vector<64x1xf32> to vector<64x8xf32>
    %15 = arith.subf %6, %14 : vector<64x8xf32>
    %16 = math.exp %15 : vector<64x8xf32>
    %c0_9 = arith.constant 0 : index
    %c0_10 = arith.constant 0 : index
    %c0_11 = arith.constant 0 : index
    %17 = vector.load %arg16[%c0_9, %c0_10, %c0_11] : memref<4x64x1xf32, #tpu.memory_space<vmem>>, vector<1x64x1xf32>
    %18 = vector.shape_cast %17 : vector<1x64x1xf32> to vector<64x1xf32>
    %19 = arith.mulf %13, %18 : vector<64x1xf32>
    %cst_12 = arith.constant dense<0.000000e+00> : vector<64xf32>
    %20 = vector.multi_reduction <add>, %16, %cst_12 [1] : vector<64x8xf32> to vector<64xf32>
    %21 = vector.shape_cast %20 : vector<64xf32> to vector<64x1xf32>
    %22 = arith.addf %19, %21 : vector<64x1xf32>
    %c0_13 = arith.constant 0 : index
    %c0_14 = arith.constant 0 : index
    %c0_15 = arith.constant 0 : index
    %23 = vector.load %arg16[%c0_13, %c0_14, %c0_15] : memref<4x64x1xf32, #tpu.memory_space<vmem>>, vector<1x64x1xf32>
    %24 = vector.shape_cast %23 : vector<1x64x1xf32> to vector<64x1xf32>
    %25 = vector.shape_cast %22 : vector<64x1xf32> to vector<1x64x1xf32>
    tpu.vector_store %arg16[%c0_13, %c0_14, %c0_15], %25 {strides = array<i32>} : memref<4x64x1xf32, #tpu.memory_space<vmem>>, vector<1x64x1xf32>,
    %c0_16 = arith.constant 0 : index
    %c0_17 = arith.constant 0 : index
    %26 = vector.load %arg14[%c0_16, %c0_17] : memref<64x32xf32, #tpu.memory_space<vmem>>, vector<64x8xf32>
    %27 = vector.broadcast %13 : vector<64x1xf32> to vector<64x8xf32>
    %28 = arith.mulf %27, %26 : vector<64x8xf32>
    %c0_18 = arith.constant 0 : index
    %c0_19 = arith.constant 0 : index
    %c32 = arith.constant 32 : index
    %29 = vector.load %arg5[%c0_18, %c0_19, %c32] : memref<1x8x64xf32, #tpu.memory_space<vmem>>, vector<1x8x8xf32>
    %30 = vector.shape_cast %29 : vector<1x8x8xf32> to vector<8x8xf32>
    %cst_20 = arith.constant dense<0.000000e+00> : vector<64x8xf32>
    %31 = tpu.matmul %16, %30, %cst_20 {dimension_numbers = #tpu.dot_dimension_numbers<[1], [0], [0], [1], [0, 0, 1, 1], [], []>} : vector<64x8xf32>, vector<8x8xf32>, vector<64x8xf32> -> vector<64x8xf32>
    %32 = arith.addf %28, %31 : vector<64x8xf32>
    %c0_21 = arith.constant 0 : index
    %c0_22 = arith.constant 0 : index
    %33 = vector.load %arg14[%c0_21, %c0_22] : memref<64x32xf32, #tpu.memory_space<vmem>>, vector<64x8xf32>
    tpu.vector_store %arg14[%c0_21, %c0_22], %32 {strides = array<i32>} : memref<64x32xf32, #tpu.memory_space<vmem>>, vector<64x8xf32>,
    %c0_23 = arith.constant 0 : index
    %c0_24 = arith.constant 0 : index
    %c0_25 = arith.constant 0 : index
    %34 = vector.load %arg15[%c0_23, %c0_24, %c0_25] : memref<4x64x1xf32, #tpu.memory_space<vmem>>, vector<1x64x1xf32>
    %35 = vector.shape_cast %34 : vector<1x64x1xf32> to vector<64x1xf32>
    %36 = vector.shape_cast %11 : vector<64x1xf32> to vector<1x64x1xf32>
    tpu.vector_store %arg15[%c0_23, %c0_24, %c0_25], %36 {strides = array<i32>} : memref<4x64x1xf32, #tpu.memory_space<vmem>>, vector<1x64x1xf32>,
    %c0_26 = arith.constant 0 : index
    %c8 = arith.constant 8 : index
    %37 = vector.load %arg13[%c0_26, %c8] : memref<64x32xf32, #tpu.memory_space<vmem>>, vector<64x8xf32>
    %c0_27 = arith.constant 0 : index
    %c0_28 = arith.constant 0 : index
    %c8_29 = arith.constant 8 : index
    %38 = vector.load %arg5[%c0_27, %c0_28, %c8_29] : memref<1x8x64xf32, #tpu.memory_space<vmem>>, vector<1x8x8xf32>
    %39 = vector.shape_cast %38 : vector<1x8x8xf32> to vector<8x8xf32>
    %cst_30 = arith.constant dense<0.000000e+00> : vector<64x8xf32>
    %40 = tpu.matmul %37, %39, %cst_30 {dimension_numbers = #tpu.dot_dimension_numbers<[1], [1], [0], [0], [0, 0, 1, 0], [], []>} : vector<64x8xf32>, vector<8x8xf32>, vector<64x8xf32> -> vector<64x8xf32>
    %c1 = arith.constant 1 : index
    %c0_31 = arith.constant 0 : index
    %c0_32 = arith.constant 0 : index
    %41 = vector.load %arg15[%c1, %c0_31, %c0_32] : memref<4x64x1xf32, #tpu.memory_space<vmem>>, vector<1x64x1xf32>
    %42 = vector.shape_cast %41 : vector<1x64x1xf32> to vector<64x1xf32>
    %cst_33 = arith.constant dense<0xFF800000> : vector<64xf32>
    %43 = vector.multi_reduction <maximumf>, %40, %cst_33 [1] : vector<64x8xf32> to vector<64xf32>
    %44 = vector.shape_cast %43 : vector<64xf32> to vector<64x1xf32>
    %45 = arith.maximumf %42, %44 : vector<64x1xf32>
    %46 = arith.subf %42, %45 : vector<64x1xf32>
    %47 = math.exp %46 : vector<64x1xf32>
    %48 = vector.broadcast %45 : vector<64x1xf32> to vector<64x8xf32>
    %49 = arith.subf %40, %48 : vector<64x8xf32>
    %50 = math.exp %49 : vector<64x8xf32>
    %c1_34 = arith.constant 1 : index
    %c0_35 = arith.constant 0 : index
    %c0_36 = arith.constant 0 : index
    %51 = vector.load %arg16[%c1_34, %c0_35, %c0_36] : memref<4x64x1xf32, #tpu.memory_space<vmem>>, vector<1x64x1xf32>
    %52 = vector.shape_cast %51 : vector<1x64x1xf32> to vector<64x1xf32>
    %53 = arith.mulf %47, %52 : vector<64x1xf32>
    %cst_37 = arith.constant dense<0.000000e+00> : vector<64xf32>
    %54 = vector.multi_reduction <add>, %50, %cst_37 [1] : vector<64x8xf32> to vector<64xf32>
    %55 = vector.shape_cast %54 : vector<64xf32> to vector<64x1xf32>
    %56 = arith.addf %53, %55 : vector<64x1xf32>
    %c1_38 = arith.constant 1 : index
    %c0_39 = arith.constant 0 : index
    %c0_40 = arith.constant 0 : index
    %57 = vector.load %arg16[%c1_38, %c0_39, %c0_40] : memref<4x64x1xf32, #tpu.memory_space<vmem>>, vector<1x64x1xf32>
    %58 = vector.shape_cast %57 : vector<1x64x1xf32> to vector<64x1xf32>
    %59 = vector.shape_cast %56 : vector<64x1xf32> to vector<1x64x1xf32>
    tpu.vector_store %arg16[%c1_38, %c0_39, %c0_40], %59 {strides = array<i32>} : memref<4x64x1xf32, #tpu.memory_space<vmem>>, vector<1x64x1xf32>,
    %c0_41 = arith.constant 0 : index
    %c8_42 = arith.constant 8 : index
    %60 = vector.load %arg14[%c0_41, %c8_42] : memref<64x32xf32, #tpu.memory_space<vmem>>, vector<64x8xf32>
    %61 = vector.broadcast %47 : vector<64x1xf32> to vector<64x8xf32>
    %62 = arith.mulf %61, %60 : vector<64x8xf32>
    %c0_43 = arith.constant 0 : index
    %c0_44 = arith.constant 0 : index
    %c40 = arith.constant 40 : index
    %63 = vector.load %arg5[%c0_43, %c0_44, %c40] : memref<1x8x64xf32, #tpu.memory_space<vmem>>, vector<1x8x8xf32>
    %64 = vector.shape_cast %63 : vector<1x8x8xf32> to vector<8x8xf32>
    %cst_45 = arith.constant dense<0.000000e+00> : vector<64x8xf32>
    %65 = tpu.matmul %50, %64, %cst_45 {dimension_numbers = #tpu.dot_dimension_numbers<[1], [0], [0], [1], [0, 0, 1, 1], [], []>} : vector<64x8xf32>, vector<8x8xf32>, vector<64x8xf32> -> vector<64x8xf32>
    %66 = arith.addf %62, %65 : vector<64x8xf32>
    %c0_46 = arith.constant 0 : index
    %c8_47 = arith.constant 8 : index
    %67 = vector.load %arg14[%c0_46, %c8_47] : memref<64x32xf32, #tpu.memory_space<vmem>>, vector<64x8xf32>
    tpu.vector_store %arg14[%c0_46, %c8_47], %66 {strides = array<i32>} : memref<64x32xf32, #tpu.memory_space<vmem>>, vector<64x8xf32>,
    %c1_48 = arith.constant 1 : index
    %c0_49 = arith.constant 0 : index
    %c0_50 = arith.constant 0 : index
    %68 = vector.load %arg15[%c1_48, %c0_49, %c0_50] : memref<4x64x1xf32, #tpu.memory_space<vmem>>, vector<1x64x1xf32>
    %69 = vector.shape_cast %68 : vector<1x64x1xf32> to vector<64x1xf32>
    %70 = vector.shape_cast %45 : vector<64x1xf32> to vector<1x64x1xf32>
    tpu.vector_store %arg15[%c1_48, %c0_49, %c0_50], %70 {strides = array<i32>} : memref<4x64x1xf32, #tpu.memory_space<vmem>>, vector<1x64x1xf32>,
    %c0_51 = arith.constant 0 : index
    %c16 = arith.constant 16 : index
    %71 = vector.load %arg13[%c0_51, %c16] : memref<64x32xf32, #tpu.memory_space<vmem>>, vector<64x8xf32>
    %c0_52 = arith.constant 0 : index
    %c0_53 = arith.constant 0 : index
    %c16_54 = arith.constant 16 : index
    %72 = vector.load %arg5[%c0_52, %c0_53, %c16_54] : memref<1x8x64xf32, #tpu.memory_space<vmem>>, vector<1x8x8xf32>
    %73 = vector.shape_cast %72 : vector<1x8x8xf32> to vector<8x8xf32>
    %cst_55 = arith.constant dense<0.000000e+00> : vector<64x8xf32>
    %74 = tpu.matmul %71, %73, %cst_55 {dimension_numbers = #tpu.dot_dimension_numbers<[1], [1], [0], [0], [0, 0, 1, 0], [], []>} : vector<64x8xf32>, vector<8x8xf32>, vector<64x8xf32> -> vector<64x8xf32>
    %c2 = arith.constant 2 : index
    %c0_56 = arith.constant 0 : index
    %c0_57 = arith.constant 0 : index
    %75 = vector.load %arg15[%c2, %c0_56, %c0_57] : memref<4x64x1xf32, #tpu.memory_space<vmem>>, vector<1x64x1xf32>
    %76 = vector.shape_cast %75 : vector<1x64x1xf32> to vector<64x1xf32>
    %cst_58 = arith.constant dense<0xFF800000> : vector<64xf32>
    %77 = vector.multi_reduction <maximumf>, %74, %cst_58 [1] : vector<64x8xf32> to vector<64xf32>
    %78 = vector.shape_cast %77 : vector<64xf32> to vector<64x1xf32>
    %79 = arith.maximumf %76, %78 : vector<64x1xf32>
    %80 = arith.subf %76, %79 : vector<64x1xf32>
    %81 = math.exp %80 : vector<64x1xf32>
    %82 = vector.broadcast %79 : vector<64x1xf32> to vector<64x8xf32>
    %83 = arith.subf %74, %82 : vector<64x8xf32>
    %84 = math.exp %83 : vector<64x8xf32>
    %c2_59 = arith.constant 2 : index
    %c0_60 = arith.constant 0 : index
    %c0_61 = arith.constant 0 : index
    %85 = vector.load %arg16[%c2_59, %c0_60, %c0_61] : memref<4x64x1xf32, #tpu.memory_space<vmem>>, vector<1x64x1xf32>
    %86 = vector.shape_cast %85 : vector<1x64x1xf32> to vector<64x1xf32>
    %87 = arith.mulf %81, %86 : vector<64x1xf32>
    %cst_62 = arith.constant dense<0.000000e+00> : vector<64xf32>
    %88 = vector.multi_reduction <add>, %84, %cst_62 [1] : vector<64x8xf32> to vector<64xf32>
    %89 = vector.shape_cast %88 : vector<64xf32> to vector<64x1xf32>
    %90 = arith.addf %87, %89 : vector<64x1xf32>
    %c2_63 = arith.constant 2 : index
    %c0_64 = arith.constant 0 : index
    %c0_65 = arith.constant 0 : index
    %91 = vector.load %arg16[%c2_63, %c0_64, %c0_65] : memref<4x64x1xf32, #tpu.memory_space<vmem>>, vector<1x64x1xf32>
    %92 = vector.shape_cast %91 : vector<1x64x1xf32> to vector<64x1xf32>
    %93 = vector.shape_cast %90 : vector<64x1xf32> to vector<1x64x1xf32>
    tpu.vector_store %arg16[%c2_63, %c0_64, %c0_65], %93 {strides = array<i32>} : memref<4x64x1xf32, #tpu.memory_space<vmem>>, vector<1x64x1xf32>,
    %c0_66 = arith.constant 0 : index
    %c16_67 = arith.constant 16 : index
    %94 = vector.load %arg14[%c0_66, %c16_67] : memref<64x32xf32, #tpu.memory_space<vmem>>, vector<64x8xf32>
    %95 = vector.broadcast %81 : vector<64x1xf32> to vector<64x8xf32>
    %96 = arith.mulf %95, %94 : vector<64x8xf32>
    %c0_68 = arith.constant 0 : index
    %c0_69 = arith.constant 0 : index
    %c48 = arith.constant 48 : index
    %97 = vector.load %arg5[%c0_68, %c0_69, %c48] : memref<1x8x64xf32, #tpu.memory_space<vmem>>, vector<1x8x8xf32>
    %98 = vector.shape_cast %97 : vector<1x8x8xf32> to vector<8x8xf32>
    %cst_70 = arith.constant dense<0.000000e+00> : vector<64x8xf32>
    %99 = tpu.matmul %84, %98, %cst_70 {dimension_numbers = #tpu.dot_dimension_numbers<[1], [0], [0], [1], [0, 0, 1, 1], [], []>} : vector<64x8xf32>, vector<8x8xf32>, vector<64x8xf32> -> vector<64x8xf32>
    %100 = arith.addf %96, %99 : vector<64x8xf32>
    %c0_71 = arith.constant 0 : index
    %c16_72 = arith.constant 16 : index
    %101 = vector.load %arg14[%c0_71, %c16_72] : memref<64x32xf32, #tpu.memory_space<vmem>>, vector<64x8xf32>
    tpu.vector_store %arg14[%c0_71, %c16_72], %100 {strides = array<i32>} : memref<64x32xf32, #tpu.memory_space<vmem>>, vector<64x8xf32>,
    %c2_73 = arith.constant 2 : index
    %c0_74 = arith.constant 0 : index
    %c0_75 = arith.constant 0 : index
    %102 = vector.load %arg15[%c2_73, %c0_74, %c0_75] : memref<4x64x1xf32, #tpu.memory_space<vmem>>, vector<1x64x1xf32>
    %103 = vector.shape_cast %102 : vector<1x64x1xf32> to vector<64x1xf32>
    %104 = vector.shape_cast %79 : vector<64x1xf32> to vector<1x64x1xf32>
    tpu.vector_store %arg15[%c2_73, %c0_74, %c0_75], %104 {strides = array<i32>} : memref<4x64x1xf32, #tpu.memory_space<vmem>>, vector<1x64x1xf32>,
    %c0_76 = arith.constant 0 : index
    %c24 = arith.constant 24 : index
    %105 = vector.load %arg13[%c0_76, %c24] : memref<64x32xf32, #tpu.memory_space<vmem>>, vector<64x8xf32>
    %c0_77 = arith.constant 0 : index
    %c0_78 = arith.constant 0 : index
    %c24_79 = arith.constant 24 : index
    %106 = vector.load %arg5[%c0_77, %c0_78, %c24_79] : memref<1x8x64xf32, #tpu.memory_space<vmem>>, vector<1x8x8xf32>
    %107 = vector.shape_cast %106 : vector<1x8x8xf32> to vector<8x8xf32>
    %cst_80 = arith.constant dense<0.000000e+00> : vector<64x8xf32>
    %108 = tpu.matmul %105, %107, %cst_80 {dimension_numbers = #tpu.dot_dimension_numbers<[1], [1], [0], [0], [0, 0, 1, 0], [], []>} : vector<64x8xf32>, vector<8x8xf32>, vector<64x8xf32> -> vector<64x8xf32>
    %c3 = arith.constant 3 : index
    %c0_81 = arith.constant 0 : index
    %c0_82 = arith.constant 0 : index
    %109 = vector.load %arg15[%c3, %c0_81, %c0_82] : memref<4x64x1xf32, #tpu.memory_space<vmem>>, vector<1x64x1xf32>
    %110 = vector.shape_cast %109 : vector<1x64x1xf32> to vector<64x1xf32>
    %cst_83 = arith.constant dense<0xFF800000> : vector<64xf32>
    %111 = vector.multi_reduction <maximumf>, %108, %cst_83 [1] : vector<64x8xf32> to vector<64xf32>
    %112 = vector.shape_cast %111 : vector<64xf32> to vector<64x1xf32>
    %113 = arith.maximumf %110, %112 : vector<64x1xf32>
    %114 = arith.subf %110, %113 : vector<64x1xf32>
    %115 = math.exp %114 : vector<64x1xf32>
    %116 = vector.broadcast %113 : vector<64x1xf32> to vector<64x8xf32>
    %117 = arith.subf %108, %116 : vector<64x8xf32>
    %118 = math.exp %117 : vector<64x8xf32>
    %c3_84 = arith.constant 3 : index
    %c0_85 = arith.constant 0 : index
    %c0_86 = arith.constant 0 : index
    %119 = vector.load %arg16[%c3_84, %c0_85, %c0_86] : memref<4x64x1xf32, #tpu.memory_space<vmem>>, vector<1x64x1xf32>
    %120 = vector.shape_cast %119 : vector<1x64x1xf32> to vector<64x1xf32>
    %121 = arith.mulf %115, %120 : vector<64x1xf32>
    %cst_87 = arith.constant dense<0.000000e+00> : vector<64xf32>
    %122 = vector.multi_reduction <add>, %118, %cst_87 [1] : vector<64x8xf32> to vector<64xf32>
    %123 = vector.shape_cast %122 : vector<64xf32> to vector<64x1xf32>
    %124 = arith.addf %121, %123 : vector<64x1xf32>
    %c3_88 = arith.constant 3 : index
    %c0_89 = arith.constant 0 : index
    %c0_90 = arith.constant 0 : index
    %125 = vector.load %arg16[%c3_88, %c0_89, %c0_90] : memref<4x64x1xf32, #tpu.memory_space<vmem>>, vector<1x64x1xf32>
    %126 = vector.shape_cast %125 : vector<1x64x1xf32> to vector<64x1xf32>
    %127 = vector.shape_cast %124 : vector<64x1xf32> to vector<1x64x1xf32>
    tpu.vector_store %arg16[%c3_88, %c0_89, %c0_90], %127 {strides = array<i32>} : memref<4x64x1xf32, #tpu.memory_space<vmem>>, vector<1x64x1xf32>,
    %c0_91 = arith.constant 0 : index
    %c24_92 = arith.constant 24 : index
    %128 = vector.load %arg14[%c0_91, %c24_92] : memref<64x32xf32, #tpu.memory_space<vmem>>, vector<64x8xf32>
    %129 = vector.broadcast %115 : vector<64x1xf32> to vector<64x8xf32>
    %130 = arith.mulf %129, %128 : vector<64x8xf32>
    %c0_93 = arith.constant 0 : index
    %c0_94 = arith.constant 0 : index
    %c56 = arith.constant 56 : index
    %131 = vector.load %arg5[%c0_93, %c0_94, %c56] : memref<1x8x64xf32, #tpu.memory_space<vmem>>, vector<1x8x8xf32>
    %132 = vector.shape_cast %131 : vector<1x8x8xf32> to vector<8x8xf32>
    %cst_95 = arith.constant dense<0.000000e+00> : vector<64x8xf32>
    %133 = tpu.matmul %118, %132, %cst_95 {dimension_numbers = #tpu.dot_dimension_numbers<[1], [0], [0], [1], [0, 0, 1, 1], [], []>} : vector<64x8xf32>, vector<8x8xf32>, vector<64x8xf32> -> vector<64x8xf32>
    %134 = arith.addf %130, %133 : vector<64x8xf32>
    %c0_96 = arith.constant 0 : index
    %c24_97 = arith.constant 24 : index
    %135 = vector.load %arg14[%c0_96, %c24_97] : memref<64x32xf32, #tpu.memory_space<vmem>>, vector<64x8xf32>
    tpu.vector_store %arg14[%c0_96, %c24_97], %134 {strides = array<i32>} : memref<64x32xf32, #tpu.memory_space<vmem>>, vector<64x8xf32>,
    %c3_98 = arith.constant 3 : index
    %c0_99 = arith.constant 0 : index
    %c0_100 = arith.constant 0 : index
    %136 = vector.load %arg15[%c3_98, %c0_99, %c0_100] : memref<4x64x1xf32, #tpu.memory_space<vmem>>, vector<1x64x1xf32>
    %137 = vector.shape_cast %136 : vector<1x64x1xf32> to vector<64x1xf32>
    %138 = vector.shape_cast %113 : vector<64x1xf32> to vector<1x64x1xf32>
    tpu.vector_store %arg15[%c3_98, %c0_99, %c0_100], %138 {strides = array<i32>} : memref<4x64x1xf32, #tpu.memory_space<vmem>>, vector<1x64x1xf32>,
    %c0_i32_101 = arith.constant 0 : i32
    %139 = arith.cmpi eq, %arg2, %c0_i32_101 : i32
    %140 = arith.extui %139 : i1 to i32
    %c0_i32_102 = arith.constant 0 : i32
    %141 = arith.cmpi ne, %140, %c0_i32_102 : i32
    scf.if %141 {
      %c0_103 = arith.constant 0 : index
      %c0_104 = arith.constant 0 : index
      %142 = vector.load %arg9[%c0_103, %c0_104] : memref<1x32xf32, #tpu.memory_space<vmem>>, vector<1x32xf32>
      %c0_105 = arith.constant 0 : index
      %c0_106 = arith.constant 0 : index
      %143 = vector.load %arg14[%c0_105, %c0_106] : memref<64x32xf32, #tpu.memory_space<vmem>>, vector<64x8xf32>
      %c0_107 = arith.constant 0 : index
      %c0_108 = arith.constant 0 : index
      %c0_109 = arith.constant 0 : index
      %144 = vector.load %arg16[%c0_107, %c0_108, %c0_109] : memref<4x64x1xf32, #tpu.memory_space<vmem>>, vector<1x64x1xf32>
      %145 = vector.shape_cast %144 : vector<1x64x1xf32> to vector<64x1xf32>
      %146 = tpu.reciprocal %145 {approx = true} : vector<64x1xf32> -> vector<64x1xf32>
      %147 = vector.broadcast %146 : vector<64x1xf32> to vector<64x8xf32>
      %148 = arith.mulf %143, %147 : vector<64x8xf32>
      %c0_110 = arith.constant 0 : index
      %c0_111 = arith.constant 0 : index
      %149 = vector.load %arg8[%c0_110, %c0_111] : memref<32x32xf32, #tpu.memory_space<vmem>>, vector<8x32xf32>
      %cst_112 = arith.constant dense<0.000000e+00> : vector<64x32xf32>
      %150 = tpu.matmul %148, %149, %cst_112 {dimension_numbers = #tpu.dot_dimension_numbers<[1], [0], [0], [1], [0, 0, 1, 1], [], []>} : vector<64x8xf32>, vector<8x32xf32>, vector<64x32xf32> -> vector<64x32xf32>
      %151 = vector.broadcast %142 : vector<1x32xf32> to vector<64x32xf32>
      %152 = arith.addf %151, %150 : vector<64x32xf32>
      %c0_113 = arith.constant 0 : index
      %c8_114 = arith.constant 8 : index
      %153 = vector.load %arg14[%c0_113, %c8_114] : memref<64x32xf32, #tpu.memory_space<vmem>>, vector<64x8xf32>
      %c1_115 = arith.constant 1 : index
      %c0_116 = arith.constant 0 : index
      %c0_117 = arith.constant 0 : index
      %154 = vector.load %arg16[%c1_115, %c0_116, %c0_117] : memref<4x64x1xf32, #tpu.memory_space<vmem>>, vector<1x64x1xf32>
      %155 = vector.shape_cast %154 : vector<1x64x1xf32> to vector<64x1xf32>
      %156 = tpu.reciprocal %155 {approx = true} : vector<64x1xf32> -> vector<64x1xf32>
      %157 = vector.broadcast %156 : vector<64x1xf32> to vector<64x8xf32>
      %158 = arith.mulf %153, %157 : vector<64x8xf32>
      %c8_118 = arith.constant 8 : index
      %c0_119 = arith.constant 0 : index
      %159 = vector.load %arg8[%c8_118, %c0_119] : memref<32x32xf32, #tpu.memory_space<vmem>>, vector<8x32xf32>
      %cst_120 = arith.constant dense<0.000000e+00> : vector<64x32xf32>
      %160 = tpu.matmul %158, %159, %cst_120 {dimension_numbers = #tpu.dot_dimension_numbers<[1], [0], [0], [1], [0, 0, 1, 1], [], []>} : vector<64x8xf32>, vector<8x32xf32>, vector<64x32xf32> -> vector<64x32xf32>
      %161 = arith.addf %152, %160 : vector<64x32xf32>
      %c0_121 = arith.constant 0 : index
      %c16_122 = arith.constant 16 : index
      %162 = vector.load %arg14[%c0_121, %c16_122] : memref<64x32xf32, #tpu.memory_space<vmem>>, vector<64x8xf32>
      %c2_123 = arith.constant 2 : index
      %c0_124 = arith.constant 0 : index
      %c0_125 = arith.constant 0 : index
      %163 = vector.load %arg16[%c2_123, %c0_124, %c0_125] : memref<4x64x1xf32, #tpu.memory_space<vmem>>, vector<1x64x1xf32>
      %164 = vector.shape_cast %163 : vector<1x64x1xf32> to vector<64x1xf32>
      %165 = tpu.reciprocal %164 {approx = true} : vector<64x1xf32> -> vector<64x1xf32>
      %166 = vector.broadcast %165 : vector<64x1xf32> to vector<64x8xf32>
      %167 = arith.mulf %162, %166 : vector<64x8xf32>
      %c16_126 = arith.constant 16 : index
      %c0_127 = arith.constant 0 : index
      %168 = vector.load %arg8[%c16_126, %c0_127] : memref<32x32xf32, #tpu.memory_space<vmem>>, vector<8x32xf32>
      %cst_128 = arith.constant dense<0.000000e+00> : vector<64x32xf32>
      %169 = tpu.matmul %167, %168, %cst_128 {dimension_numbers = #tpu.dot_dimension_numbers<[1], [0], [0], [1], [0, 0, 1, 1], [], []>} : vector<64x8xf32>, vector<8x32xf32>, vector<64x32xf32> -> vector<64x32xf32>
      %170 = arith.addf %161, %169 : vector<64x32xf32>
      %c0_129 = arith.constant 0 : index
      %c24_130 = arith.constant 24 : index
      %171 = vector.load %arg14[%c0_129, %c24_130] : memref<64x32xf32, #tpu.memory_space<vmem>>, vector<64x8xf32>
      %c3_131 = arith.constant 3 : index
      %c0_132 = arith.constant 0 : index
      %c0_133 = arith.constant 0 : index
      %172 = vector.load %arg16[%c3_131, %c0_132, %c0_133] : memref<4x64x1xf32, #tpu.memory_space<vmem>>, vector<1x64x1xf32>
      %173 = vector.shape_cast %172 : vector<1x64x1xf32> to vector<64x1xf32>
      %174 = tpu.reciprocal %173 {approx = true} : vector<64x1xf32> -> vector<64x1xf32>
      %175 = vector.broadcast %174 : vector<64x1xf32> to vector<64x8xf32>
      %176 = arith.mulf %171, %175 : vector<64x8xf32>
      %c24_134 = arith.constant 24 : index
      %c0_135 = arith.constant 0 : index
      %177 = vector.load %arg8[%c24_134, %c0_135] : memref<32x32xf32, #tpu.memory_space<vmem>>, vector<8x32xf32>
      %cst_136 = arith.constant dense<0.000000e+00> : vector<64x32xf32>
      %178 = tpu.matmul %176, %177, %cst_136 {dimension_numbers = #tpu.dot_dimension_numbers<[1], [0], [0], [1], [0, 0, 1, 1], [], []>} : vector<64x8xf32>, vector<8x32xf32>, vector<64x32xf32> -> vector<64x32xf32>
      %179 = arith.addf %170, %178 : vector<64x32xf32>
      %c0_137 = arith.constant 0 : index
      %c0_138 = arith.constant 0 : index
      %180 = memref.load %arg3[%c0_137, %c0_138] : memref<1x1xf32, #tpu.memory_space<smem>>
      %181 = vector.broadcast %180 : f32 to vector<64x32xf32>
      %182 = arith.mulf %181, %179 : vector<64x32xf32>
      %183 = math.tanh %182 : vector<64x32xf32>
      %c0_139 = arith.constant 0 : index
      %c0_140 = arith.constant 0 : index
      %184 = vector.load %arg10[%c0_139, %c0_140] : memref<1x32xf32, #tpu.memory_space<vmem>>, vector<1x32xf32>
      %185 = vector.broadcast %184 : vector<1x32xf32> to vector<64x32xf32>
      %186 = arith.mulf %183, %185 : vector<64x32xf32>
      %c0_141 = arith.constant 0 : index
      %c0_142 = arith.constant 0 : index
      %187 = vector.load %arg11[%c0_141, %c0_142] : memref<1x32xf32, #tpu.memory_space<vmem>>, vector<1x32xf32>
      %188 = vector.broadcast %187 : vector<1x32xf32> to vector<64x32xf32>
      %189 = arith.addf %186, %188 : vector<64x32xf32>
      %c0_143 = arith.constant 0 : index
      %c0_144 = arith.constant 0 : index
      %c0_145 = arith.constant 0 : index
      %190 = vector.load %arg12[%c0_143, %c0_144, %c0_145] : memref<1x64x32xf32, #tpu.memory_space<vmem>>, vector<1x64x32xf32>
      %191 = vector.shape_cast %190 : vector<1x64x32xf32> to vector<64x32xf32>
      %192 = vector.shape_cast %189 : vector<64x32xf32> to vector<1x64x32xf32>
      tpu.vector_store %arg12[%c0_143, %c0_144, %c0_145], %192 {strides = array<i32>} : memref<1x64x32xf32, #tpu.memory_space<vmem>>, vector<1x64x32xf32>,
    } else {
    }
    return
  }
  func.func @transform_0(%arg0: i32, %arg1: i32, %arg2: i32) -> (i32, i32) {
    %c0_i32 = arith.constant 0 : i32
    %c0_i32_0 = arith.constant 0 : i32
    %c0_i32_1 = arith.constant 0 : i32
    return %c0_i32, %c0_i32_0 : i32, i32
  }
  func.func @transform_1(%arg0: i32, %arg1: i32, %arg2: i32) -> (i32, i32, i32) {
    %c0_i32 = arith.constant 0 : i32
    %c0_i32_0 = arith.constant 0 : i32
    return %arg0, %arg1, %c0_i32 : i32, i32, i32
  }
  func.func @transform_2(%arg0: i32, %arg1: i32, %arg2: i32) -> (i32, i32, i32) {
    %c0_i32 = arith.constant 0 : i32
    %c0_i32_0 = arith.constant 0 : i32
    return %arg0, %arg2, %c0_i32 : i32, i32, i32
  }
  func.func @transform_3(%arg0: i32, %arg1: i32, %arg2: i32) -> (i32, i32) {
    %c0_i32 = arith.constant 0 : i32
    %c0_i32_0 = arith.constant 0 : i32
    %c0_i32_1 = arith.constant 0 : i32
    return %c0_i32, %c0_i32_0 : i32, i32
  }
  func.func @transform_4(%arg0: i32, %arg1: i32, %arg2: i32) -> (i32, i32) {
    %c0_i32 = arith.constant 0 : i32
    %c0_i32_0 = arith.constant 0 : i32
    %c0_i32_1 = arith.constant 0 : i32
    return %c0_i32, %c0_i32_0 : i32, i32
  }
  func.func @transform_5(%arg0: i32, %arg1: i32, %arg2: i32) -> (i32, i32) {
    %c0_i32 = arith.constant 0 : i32
    %c0_i32_0 = arith.constant 0 : i32
    %c0_i32_1 = arith.constant 0 : i32
    return %c0_i32, %c0_i32_0 : i32, i32
  }
  func.func @transform_6(%arg0: i32, %arg1: i32, %arg2: i32) -> (i32, i32) {
    %c0_i32 = arith.constant 0 : i32
    %c0_i32_0 = arith.constant 0 : i32
    %c0_i32_1 = arith.constant 0 : i32
    return %c0_i32, %c0_i32_0 : i32, i32
  }
  func.func @transform_7(%arg0: i32, %arg1: i32, %arg2: i32) -> (i32, i32) {
    %c0_i32 = arith.constant 0 : i32
    %c0_i32_0 = arith.constant 0 : i32
    %c0_i32_1 = arith.constant 0 : i32
    return %c0_i32, %c0_i32_0 : i32, i32
  }
  func.func @transform_8(%arg0: i32, %arg1: i32, %arg2: i32) -> (i32, i32) {
    %c0_i32 = arith.constant 0 : i32
    %c0_i32_0 = arith.constant 0 : i32
    %c0_i32_1 = arith.constant 0 : i32
    return %c0_i32, %c0_i32_0 : i32, i32
  }
  func.func @transform_9(%arg0: i32, %arg1: i32, %arg2: i32) -> (i32, i32, i32) {
    %c0_i32 = arith.constant 0 : i32
    %c0_i32_0 = arith.constant 0 : i32
    return %arg0, %arg1, %c0_i32 : i32, i32, i32
  }
}

</mosaic_0001>

<bundles_post_ra>
// kernel: efficient_attention_forward.2
= control target key start
LH: loop header
LB: loop body
LE: loop exit
PB: predicated region body
PF: predicated region fallthrough
CT: control target
= control target key end

     0   :  { %vm183_vm0 = vcmask 261120   ;;  %vm265_vm1 = vcmask 523264   ;;  %s563_s2 = inlined_call_operand.vmem [shape: f32[256,32], index: 2, kind: input, shape index: {}]   ;;  %s564_s1 = inlined_call_operand.vmem [shape: f32[16,256], index: 1, kind: input, shape index: {}]   ;;  %s565_s6 = inlined_call_operand.vmem [shape: f32[32,64], index: 6, kind: input, shape index: {}]   ;;  %s566_s3 = inlined_call_operand.vmem [shape: f32[1,32], index: 3, kind: input, shape index: {}]   ;;  %s567_s0 = inlined_call_operand.<no memory space> [shape: f32[1,1], index: 0, kind: input, shape index: {}]   ;;  %s568_s4 = inlined_call_operand.vmem [shape: f32[1,32], index: 4, kind: input, shape index: {}]   ;;  %s569_s5 = inlined_call_operand.vmem [shape: f32[1,32], index: 5, kind: input, shape index: {}]   ;;  %s570_s7 = inlined_call_operand.vmem [shape: f32[1,64], index: 7, kind: input, shape index: {}]   ;;  %s571_s8 = inlined_call_operand.vmem [shape: f32[16,64], index: 8, kind: output, shape index: {}]  }
   0x1   :  { %v50_v0 = vld [vmem:[%s563_s2 + $0x80] sm:$0xff]  ;;  %v51_v1 = vld [vmem:[%s563_s2 + $0x88] sm:$0xff]  ;;  %v52_v5 = vld [vmem:[%s563_s2 + $0x90] sm:$0xff]  ;;  %v149_v62 = vstv %s567_s0 }
   0x2   :  { %v34_v2 = vld [vmem:[%s563_s2] sm:$0xff]  ;;  %v333_v3 = vpack.c.bf16 %v51_v1, %v50_v0  ;;  %v35_v4 = vld [vmem:[%s563_s2 + $0x8] sm:$0xff]  ;;  %v53_v6 = vld [vmem:[%s563_s2 + $0x98] sm:$0xff] }
   0x3   :  { %v335_v7 = vpack.c.bf16 %v35_v4, %v34_v2  ;;  %v337_v8 = vpack.c.bf16 %v53_v6, %v52_v5  ;;  %v36_v9 = vld [vmem:[%s563_s2 + $0x10] sm:$0xff]  ;;  %v37_v10 = vld [vmem:[%s563_s2 + $0x18] sm:$0xff]  ;;  %v54_v11 = vld [vmem:[%s563_s2 + $0xa0] sm:$0xff] }
   0x4   :  { %334 = vmatprep.subr.bf16.mxu0 %v333_v3  ;;  %v55_v12 = vld [vmem:[%s563_s2 + $0xa8] sm:$0xff]  ;;  %v339_v13 = vpack.c.bf16 %v37_v10, %v36_v9  ;;  %v38_v15 = vld [vmem:[%s563_s2 + $0x20] sm:$0xff]  ;;  %v56_v17 = vld [vmem:[%s563_s2 + $0xb0] sm:$0xff] }
   0x5   :  { %336 = vmatpush3.bf16.msra.mxu0 %v335_v7  ;;  %v341_v14 = vpack.c.bf16 %v55_v12, %v54_v11  ;;  %v39_v16 = vld [vmem:[%s563_s2 + $0x28] sm:$0xff]  ;;  %v57_v18 = vld [vmem:[%s563_s2 + $0xb8] sm:$0xff]  ;;  %v40_v21 = vld [vmem:[%s563_s2 + $0x30] sm:$0xff] }
   0x6   :  { %338 = vmatprep.subr.bf16.mxu0 %v337_v8  ;;  %v343_v19 = vpack.c.bf16 %v39_v16, %v38_v15  ;;  %v345_v20 = vpack.c.bf16 %v57_v18, %v56_v17  ;;  %v41_v22 = vld [vmem:[%s563_s2 + $0x38] sm:$0xff]  ;;  %v58_v23 = vld [vmem:[%s563_s2 + $0xc0] sm:$0xff]  ;;  %v59_v24 = vld [vmem:[%s563_s2 + $0xc8] sm:$0xff] }
   0x7   :  { %v31_v25 = vld [vmem:[%s564_s1 + $0x8] sm:$0xff]  ;;  %v347_v26 = vpack.c.bf16 %v41_v22, %v40_v21  ;;  %v349_v27 = vpack.c.bf16 %v59_v24, %v58_v23  ;;  %v42_v28 = vld [vmem:[%s563_s2 + $0x40] sm:$0xff]  ;;  %v60_v30 = vld [vmem:[%s563_s2 + $0xd0] sm:$0xff] }
   0x8   :  { %137 = vmatprep.mubr.f32.mxu0 %v31_v25  ;;  %v43_v29 = vld [vmem:[%s563_s2 + $0x48] sm:$0xff]  ;;  %v61_v31 = vld [vmem:[%s563_s2 + $0xd8] sm:$0xff]  ;;  %v44_v34 = vld [vmem:[%s563_s2 + $0x50] sm:$0xff] }
   0x9   :  { %340 = vmatpush3.bf16.msra.mxu0 %v339_v13  ;;  %v351_v32 = vpack.c.bf16 %v43_v29, %v42_v28  ;;  %v353_v33 = vpack.c.bf16 %v61_v31, %v60_v30  ;;  %v45_v35 = vld [vmem:[%s563_s2 + $0x58] sm:$0xff]  ;;  %v62_v36 = vld [vmem:[%s563_s2 + $0xe0] sm:$0xff]  ;;  %v63_v37 = vld [vmem:[%s563_s2 + $0xe8] sm:$0xff] }
   0xa   :  { %342 = vmatprep.subr.bf16.mxu0 %v341_v14  ;;  %v355_v38 = vpack.c.bf16 %v45_v35, %v44_v34  ;;  %v357_v39 = vpack.c.bf16 %v63_v37, %v62_v36  ;;  %v46_v40 = vld [vmem:[%s563_s2 + $0x60] sm:$0xff]  ;;  %v47_v41 = vld [vmem:[%s563_s2 + $0x68] sm:$0xff]  ;;  %v64_v42 = vld [vmem:[%s563_s2 + $0xf0] sm:$0xff] }
   0xb   :  { %v65_v43 = vld [vmem:[%s563_s2 + $0xf8] sm:$0xff]  ;;  %v359_v44 = vpack.c.bf16 %v47_v41, %v46_v40  ;;  %v48_v46 = vld [vmem:[%s563_s2 + $0x70] sm:$0xff]  ;;  %v30_v49 = vld [vmem:[%s564_s1] sm:$0xff] }
   0xc   :  { %v361_v45 = vpack.c.bf16 %v65_v43, %v64_v42  ;;  %v49_v47 = vld [vmem:[%s563_s2 + $0x78] sm:$0xff]  ;;  %v32_v51 = vld [vmem:[%s564_s1 + $0x10] sm:$0xff]  ;;  %v172_v52 = vld [vmem:[%s565_s6] sm:$0xff] }
   0xd   :  { %344 = vmatpush3.bf16.msra.mxu0 %v343_v19  ;;  %v363_v48 = vpack.c.bf16 %v49_v47, %v48_v46  ;;  %v33_v50 = vld [vmem:[%s564_s1 + $0x18] sm:$0xff]  ;;  %v173_v53 = vld [vmem:[%s565_s6 + $0x8] sm:$0xff]  ;;  %v174_v54 = vld [vmem:[%s565_s6 + $0x10] sm:$0xff] }
   0xe   :  { %346 = vmatprep.subr.bf16.mxu0 %v345_v20  ;;  %v365_v55 = vpack.c.bf16 %v173_v53, %v172_v52  ;;  %v175_v56 = vld [vmem:[%s565_s6 + $0x18] sm:$0xff]  ;;  %v272_v59 = vld [vmem:[%s566_s3] ss:$0 sm:$0xff] }
   0xf   :  { %v369_v57 = vpack.c.bf16 %v175_v56, %v174_v54  ;;  %v273_v6 = vld [vmem:[%s568_s4] ss:$0 sm:$0xff] }
  0x10   :  { %366 = vmatprep.subr.bf16.mxu1 %v365_v55  ;;  %v274_v8 = vld [vmem:[%s569_s5] ss:$0 sm:$0xff] }
  0x11   :  { %348 = vmatpush3.bf16.msra.mxu0 %v347_v26  ;;  %368 = vmatpush3.bf16.msra.mxu1 %v365_v55  ;;  %v275_v14 = vld [vmem:[%s570_s7] ss:$0 sm:$0xff] }
  0x12   :  { %350 = vmatprep.subr.bf16.mxu0 %v349_v27  ;;  %370 = vmatprep.subr.bf16.mxu1 %v369_v57 }
  0x15   :  { %352 = vmatpush3.bf16.msra.mxu0 %v351_v32  ;;  %372 = vmatpush3.bf16.msra.mxu1 %v369_v57 }
  0x16   :  { %354 = vmatprep.subr.bf16.mxu0 %v353_v33 }
  0x19   :  { %356 = vmatpush3.bf16.msra.mxu0 %v355_v38 }
  0x1a   :  { %358 = vmatprep.subr.bf16.mxu0 %v357_v39 }
  0x1d   :  { %360 = vmatpush3.bf16.msra.mxu0 %v359_v44 }
  0x1e   :  { %362 = vmatprep.subr.bf16.mxu0 %v361_v45 }
  0x21   :  { %364 = vmatpush3.bf16.msra.mxu0 %v363_v48 }
  0x24   :  { %138 = vmatmul.mubr.f32.vlgmr.msra.gmra.mrb[0].mxu0 %v30_v49 }
  0x25   :  { %142 = vmatprep.mubr.f32.mxu0 %v33_v50 }
  0x28   :  { %143 = vmatmul.mubr.f32.gmra.mrb[2].mxu0 %v32_v51 }
  0xf7   :  { %v310_v58 = vpop.f32.mrb[0].mxu0 }
  0xf8   :  { %v311_v60 = vpop.f32.mrb[1].mxu0 }
  0xf9   :  { %v312_v61 = vadd.f32 %v311_v60, %v310_v58 }
  0xfb   :  { %v140_v63 = vadd.f32 %v312_v61, %v272_v59  ;;  %v313_v0 = vpop.f32.mrb[2].mxu0 }
  0xfc   :  { %v314_v1 = vpop.f32.mrb[3].mxu0 }
  0xfd   :  { %v150_v2 = vmul.f32 %v149_v62, %v140_v63  ;;  %v315_v3 = vadd.f32 %v314_v1, %v313_v0 }
  0xff   :  { %373 = vtanh.f32 %v150_v2  ;;  %v145_v4 = vadd.f32 %v315_v3, %v272_v59 }
 0x101   :  { %v151_v5 = vmul.f32 %v149_v62, %v145_v4 }
 0x103   :  { %375 = vtanh.f32 %v151_v5 }
 0x109   :  { %v374_v7 = vpop.eup %373 }
 0x10a   :  { %v161_v9 = vmul.f32 %v374_v7, %v273_v6 }
 0x10c   :  { %v170_v10 = vadd.f32 %v274_v8, %v161_v9 }
 0x10d   :  { %v376_v11 = vpop.eup %375 }
 0x10e   :  { %v162_v12 = vmul.f32 %v376_v11, %v273_v6  ;;  %330 = vmatprep.mubr.msk.f32.mxu1 %vm183_vm0, %v170_v10 }
 0x110   :  { %v171_v13 = vadd.f32 %v274_v8, %v162_v12 }
 0x112   :  { %331 = vmatmul.mubr.msk.f32.vlgmr.msra.gmra.mrb[0].mxu1 %vm183_vm0, %v171_v13 }
 0x1e5   :  { %v332_v15 = vpop.f32.mrb[0].mxu1 }
 0x1e6   :  { %v262_v16 = vadd.f32 %v332_v15, %v275_v14  ;;  %v256_v17 = vpop.f32.mrb[1].mxu1 }
 0x1e7   :  { %v257_v18 = vadd.f32 %v275_v14, %v256_v17 }
 0x1e8   :  { %267 = vst.msk [vmem:[%s571_s8 + $0x8] sm:$0xff] %vm265_vm1, %v262_v16 }
 0x1e9   :  { %266 = vst.msk [vmem:[%s571_s8] sm:$0xff] %vm265_vm1, %v257_v18 }

// kernel: efficient_attention_forward.3
= control target key start
LH: loop header
LB: loop body
LE: loop exit
PB: predicated region body
PF: predicated region fallthrough
CT: control target
= control target key end

     0   :  { %s4808_s11 = smov 0   ;;  %s4810_s12 = smov 0   ;;  %s6187_s0 = inlined_call_operand.<no memory space> [shape: f32[1,1], index: 0, kind: input, shape index: {}]   ;;  %s6188_s1 = inlined_call_operand.vmem [shape: f32[2,64,32], index: 1, kind: input, shape index: {}]   ;;  %s6189_s2 = inlined_call_operand.vmem [shape: f32[2,8,64], index: 2, kind: input, shape index: {}]   ;;  %s6190_s3 = inlined_call_operand.vmem [shape: f32[32,32], index: 3, kind: input, shape index: {}]   ;;  %s6191_s4 = inlined_call_operand.vmem [shape: f32[1,32], index: 4, kind: input, shape index: {}]   ;;  %s6192_s5 = inlined_call_operand.vmem [shape: f32[32,32], index: 5, kind: input, shape index: {}]   ;;  %s6193_s6 = inlined_call_operand.vmem [shape: f32[1,32], index: 6, kind: input, shape index: {}]   ;;  %s6194_s7 = inlined_call_operand.vmem [shape: f32[1,32], index: 7, kind: input, shape index: {}]   ;;  %s6195_s8 = inlined_call_operand.vmem [shape: f32[1,32], index: 8, kind: input, shape index: {}]   ;;  %s6196_s9 = inlined_call_operand.vmem [shape: f32[2,64,32], index: 9, kind: output, shape index: {}]  }
   0x1   :  { %14 = sst [smem:[#allocation6]] %s6187_s0  ;;  %s4812_s13 = smov 0  }
   0x2 LB: > { %s39_s0 = sadd.s32 1, %s4736_s12  ;;  %p3999_p0 = scmp.ge.s32.totalorder %s4740_s13, 1  ;;  %s4740_s13 = sphi %s4812_s13, %s20_s13   ;;  %s4736_s12 = sphi %s4810_s12, %s6360_s12   ;;  %s4732_s11 = sphi %s4808_s11, %s6359_s11  }
   0x3   : > { %p41_p1 = scmp.ge.s32.totalorder %s39_s0, 2  ;;  %p330_p2 = scmp.lt.s32.totalorder %s4740_s13, 3 }
   0x5   : > { %s6362_s0 = smov (%p41_p1, %s39_s0), 0  ;;  %p331_p3 = pnand %p3999_p0, %p330_p2 }
   0x7   : > { %334 = sbr.rel (%p331_p3) target bundleno = 2277 (0x8e5), region = 56 }
   0xe   : > { %v420_v0 = vld [vmem:[%s6190_s3] sm:$0xff]  ;;  %v421_v1 = vld [vmem:[%s6190_s3 + $0x8] sm:$0xff]  ;;  %v422_v2 = vld [vmem:[%s6190_s3 + $0x10] sm:$0xff]  ;;  %p382_p4 = scmp.lt.s32.totalorder %s4732_s11, 1  ;;  %vm431_vm0 = vcmask 261120   ;;  %vm651_vm1 = vcmask 64512  }
   0xf   : > { %v4429_v3 = vpack.c.bf16 %v421_v1, %v420_v0  ;;  %v423_v4 = vld [vmem:[%s6190_s3 + $0x18] sm:$0xff]  ;;  %v4005_v15 = vld [vmem:[%s6191_s4] ss:$0 sm:$0xff]  ;;  %vm577_vm2 = vcmask 7168   ;;  %v4742_v40 = vmov -inf   ;;  %v4743_v57 = vmov 0  }
  0x10   : > { %v4433_v5 = vpack.c.bf16 %v423_v4, %v422_v2  ;;  %s6364_s11 = smov (!%p382_p4, %s4732_s11), 1  ;;  %578 = vst.msk [vmem:[#allocation4] sm:$0xff] %vm577_vm2, %v4742_v40  ;;  %579 = vst.msk [vmem:[#allocation4 + $0x8] sm:$0xff] %vm577_vm2, %v4742_v40  ;;  %4508 = vset.pattern.permute.xlu0 %v4743_v57  ;;  %4509 = vset.pattern.permute.xlu1 %v4743_v57  ;;  %v4744_v58 = vmov 0.0   ;;  %s4745_s14 = smov 120   ;;  %vm1758_vm3 = vcmask 130112  }
  0x11   : > { %4430 = vmatprep.subr.bf16.mxu1 %v4429_v3  ;;  %s4119_s22 = sshll.u32 %s6364_s11, 6  ;;  %s4002_s26 = sshll.u32 %s6364_s11, 3  ;;  %580 = vst.msk [vmem:[#allocation4 + $0x10] sm:$0xff] %vm577_vm2, %v4742_v40  ;;  %581 = vst.msk [vmem:[#allocation4 + $0x18] sm:$0xff] %vm577_vm2, %v4742_v40  ;;  %vm2350_vm4 = vcmask 195712   ;;  %vm2942_vm5 = vcmask 261312  }
  0x12   : > { %4432 = vmatpush3.bf16.msra.mxu1 %v4429_v3  ;;  %s389_s25 = scalar_lea.vmem %s6188_s1, %s4119_s22  ;;  %s4858_s29 = scalar_lea.vmem %s6189_s2, %s4002_s26  ;;  %582 = vst.msk [vmem:[#allocation4 + $0x20] sm:$0xff] %vm577_vm2, %v4742_v40  ;;  %583 = vst.msk [vmem:[#allocation4 + $0x28] sm:$0xff] %vm577_vm2, %v4742_v40 }
  0x13   : > { %4434 = vmatprep.subr.bf16.mxu1 %v4433_v5  ;;  %v412_v6 = vld [vmem:[%s389_s25] sm:$0xff]  ;;  %v413_v7 = vld [vmem:[%s389_s25 + $0x8] sm:$0xff]  ;;  %v414_v8 = vld [vmem:[%s389_s25 + $0x10] sm:$0xff]  ;;  %584 = vst.msk [vmem:[#allocation4 + $0x30] sm:$0xff] %vm577_vm2, %v4742_v40  ;;  %s4746_s15 = smov 112   ;;  %s4747_s16 = smov 96  }
  0x14   : > { %4249 = vmatprep.mubr.msk.f32.mxu1 %vm431_vm0, %v412_v6  ;;  %v415_v9 = vld [vmem:[%s389_s25 + $0x18] sm:$0xff]  ;;  %v416_v10 = vld [vmem:[%s389_s25 + $0x20] sm:$0xff]  ;;  %v417_v11 = vld [vmem:[%s389_s25 + $0x28] sm:$0xff]  ;;  %585 = vst.msk [vmem:[#allocation4 + $0x38] sm:$0xff] %vm577_vm2, %v4742_v40  ;;  %s4748_s17 = smov 104   ;;  %s4749_s18 = smov 88  }
  0x15   : > { %v418_v12 = vld [vmem:[%s389_s25 + $0x30] sm:$0xff]  ;;  %v419_v13 = vld [vmem:[%s389_s25 + $0x38] sm:$0xff]  ;;  %v4861_v14 = vld [vmem:[%s4858_s29] sm:$0xff]  ;;  %586 = vst.msk [vmem:[#allocation4 + $0x40] sm:$0xff] %vm577_vm2, %v4742_v40  ;;  %s4750_s19 = smov 80   ;;  %s4751_s20 = smov 72  }
  0x16   : > { %4436 = vmatpush3.bf16.msra.mxu1 %v4433_v5  ;;  %587 = vst.msk [vmem:[#allocation4 + $0x48] sm:$0xff] %vm577_vm2, %v4742_v40  ;;  %588 = vst.msk [vmem:[#allocation4 + $0x50] sm:$0xff] %vm577_vm2, %v4742_v40  ;;  %s4752_s21 = smov 8   ;;  %s4753_s23 = smov 16  }
  0x17   : > { %4261 = vmatprep.subr.msk.mxu1 %vm651_vm1, %v4861_v14  ;;  %589 = vst.msk [vmem:[#allocation4 + $0x58] sm:$0xff] %vm577_vm2, %v4742_v40  ;;  %590 = vst.msk [vmem:[#allocation4 + $0x60] sm:$0xff] %vm577_vm2, %v4742_v40  ;;  %v5014_v59 = vld [vmem:[#allocation4] sm:$0xff]  ;;  %v5019_v62 = vld [vmem:[#allocation4 + $0x8] sm:$0xff]  ;;  %s4754_s24 = smov 24   ;;  %s6160_s25 = scalar_lea.vmem %s6196_s9, %s4119_s22 }
  0x18   : > { %591 = vst.msk [vmem:[#allocation4 + $0x68] sm:$0xff] %vm577_vm2, %v4742_v40  ;;  %592 = vst.msk [vmem:[#allocation4 + $0x70] sm:$0xff] %vm577_vm2, %v4742_v40  ;;  %v5021_v63 = vld [vmem:[#allocation4 + $0x10] sm:$0xff]  ;;  %v5034_v5 = vld [vmem:[#allocation4 + $0x18] sm:$0xff] }
  0x19   : > { %4250 = vmatmul.mubr.msk.f32.vlgmr.msra.gmra.mrb[0].mxu1 %vm431_vm0, %v413_v7  ;;  %593 = vst.msk [vmem:[#allocation4 + $0x78] sm:$0xff] %vm577_vm2, %v4742_v40  ;;  %594 = vst.msk [vmem:[#allocation4 + $0x80] sm:$0xff] %vm577_vm2, %v4742_v40  ;;  %v5036_v6 = vld [vmem:[#allocation4 + $0x20] sm:$0xff] }
  0x1a   : > { %4252 = vmatprep.mubr.msk.f32.mxu1 %vm431_vm0, %v414_v8  ;;  %595 = vst.msk [vmem:[#allocation4 + $0x88] sm:$0xff] %vm577_vm2, %v4742_v40  ;;  %596 = vst.msk [vmem:[#allocation4 + $0x90] sm:$0xff] %vm577_vm2, %v4742_v40 }
  0x1b   : > { %597 = vst.msk [vmem:[#allocation4 + $0x98] sm:$0xff] %vm577_vm2, %v4742_v40  ;;  %598 = vst.msk [vmem:[#allocation4 + $0xa0] sm:$0xff] %vm577_vm2, %v4742_v40 }
  0x1c   : > { %599 = vst.msk [vmem:[#allocation4 + $0xa8] sm:$0xff] %vm577_vm2, %v4742_v40  ;;  %600 = vst.msk [vmem:[#allocation4 + $0xb0] sm:$0xff] %vm577_vm2, %v4742_v40  ;;  %v5335_v8 = vld [vmem:[#allocation4 + $0x40] sm:$0xff] }
  0x1d   : > { %4253 = vmatmul.mubr.msk.f32.gmra.mrb[2].mxu1 %vm431_vm0, %v415_v9  ;;  %601 = vst.msk [vmem:[#allocation4 + $0xb8] sm:$0xff] %vm577_vm2, %v4742_v40  ;;  %602 = vst.msk [vmem:[#allocation4 + $0xc0] sm:$0xff] %vm577_vm2, %v4742_v40 }
  0x1e   : > { %4255 = vmatprep.mubr.msk.f32.mxu1 %vm431_vm0, %v416_v10  ;;  %603 = vst.msk [vmem:[#allocation4 + $0xc8] sm:$0xff] %vm577_vm2, %v4742_v40  ;;  %604 = vst.msk [vmem:[#allocation4 + $0xd0] sm:$0xff] %vm577_vm2, %v4742_v40 }
  0x1f   : > { %4262 = vmatpush3.xpose.msk.msra.mxu1 %vm651_vm1, %v4861_v14  ;;  %605 = vst.msk [vmem:[#allocation4 + $0xd8] sm:$0xff] %vm577_vm2, %v4742_v40  ;;  %606 = vst.msk [vmem:[#allocation4 + $0xe0] sm:$0xff] %vm577_vm2, %v4742_v40 }
  0x20   : > { %607 = vst.msk [vmem:[#allocation4 + $0xe8] sm:$0xff] %vm577_vm2, %v4742_v40  ;;  %608 = vst.msk [vmem:[#allocation4 + $0xf0] sm:$0xff] %vm577_vm2, %v4742_v40 }
  0x21   : > { %4256 = vmatmul.mubr.msk.f32.gmra.mrb[4].mxu1 %vm431_vm0, %v417_v11  ;;  %609 = vst.msk [vmem:[#allocation4 + $0xf8] sm:$0xff] %vm577_vm2, %v4742_v40  ;;  %610 = vst.msk [vmem:[#allocation5] sm:$0xff] %vm577_vm2, %v4744_v58 }
  0x22   : > { %4258 = vmatprep.mubr.msk.f32.mxu1 %vm431_vm0, %v418_v12  ;;  %569 = vst.msk [vmem:[#allocation3] sm:$0xff] %vm431_vm0, %v4744_v58  ;;  %570 = vst.msk [vmem:[#allocation3 + $0x8] sm:$0xff] %vm431_vm0, %v4744_v58 }
  0x23   : > { %571 = vst.msk [vmem:[#allocation3 + $0x10] sm:$0xff] %vm431_vm0, %v4744_v58  ;;  %572 = vst.msk [vmem:[#allocation3 + $0x18] sm:$0xff] %vm431_vm0, %v4744_v58 }
  0x24   : > { %573 = vst.msk [vmem:[#allocation3 + $0x20] sm:$0xff] %vm431_vm0, %v4744_v58  ;;  %574 = vst.msk [vmem:[#allocation3 + $0x28] sm:$0xff] %vm431_vm0, %v4744_v58 }
  0x25   : > { %4259 = vmatmul.mubr.msk.f32.gmra.mrb[6].mxu1 %vm431_vm0, %v419_v13  ;;  %575 = vst.msk [vmem:[#allocation3 + $0x30] sm:$0xff] %vm431_vm0, %v4744_v58  ;;  %576 = vst.msk [vmem:[#allocation3 + $0x38] sm:$0xff] %vm431_vm0, %v4744_v58  ;;  %v5055_v13 = vld [vmem:[#allocation4 + $0x28] sm:$0xff] }
  0x26   : > { %611 = vst.msk [vmem:[#allocation5 + $0x8] sm:$0xff] %vm577_vm2, %v4744_v58  ;;  %612 = vst.msk [vmem:[#allocation5 + $0x10] sm:$0xff] %vm577_vm2, %v4744_v58 }
  0x27   : > { %613 = vst.msk [vmem:[#allocation5 + $0x18] sm:$0xff] %vm577_vm2, %v4744_v58  ;;  %614 = vst.msk [vmem:[#allocation5 + $0x20] sm:$0xff] %vm577_vm2, %v4744_v58 }
  0x28   : > { %615 = vst.msk [vmem:[#allocation5 + $0x28] sm:$0xff] %vm577_vm2, %v4744_v58  ;;  %616 = vst.msk [vmem:[#allocation5 + $0x30] sm:$0xff] %vm577_vm2, %v4744_v58 }
  0x29   : > { %617 = vst.msk [vmem:[#allocation5 + $0x38] sm:$0xff] %vm577_vm2, %v4744_v58  ;;  %618 = vst.msk [vmem:[#allocation5 + $0x40] sm:$0xff] %vm577_vm2, %v4744_v58 }
  0x2a   : > { %619 = vst.msk [vmem:[#allocation5 + $0x48] sm:$0xff] %vm577_vm2, %v4744_v58  ;;  %620 = vst.msk [vmem:[#allocation5 + $0x50] sm:$0xff] %vm577_vm2, %v4744_v58 }
  0x2b   : > { %621 = vst.msk [vmem:[#allocation5 + $0x58] sm:$0xff] %vm577_vm2, %v4744_v58  ;;  %622 = vst.msk [vmem:[#allocation5 + $0x60] sm:$0xff] %vm577_vm2, %v4744_v58 }
  0x2c   : > { %623 = vst.msk [vmem:[#allocation5 + $0x68] sm:$0xff] %vm577_vm2, %v4744_v58  ;;  %624 = vst.msk [vmem:[#allocation5 + $0x70] sm:$0xff] %vm577_vm2, %v4744_v58 }
  0x2d   : > { %625 = vst.msk [vmem:[#allocation5 + $0x78] sm:$0xff] %vm577_vm2, %v4744_v58  ;;  %626 = vst.msk [vmem:[#allocation5 + $0x80] sm:$0xff] %vm577_vm2, %v4744_v58 }
  0x2e   : > { %627 = vst.msk [vmem:[#allocation5 + $0x88] sm:$0xff] %vm577_vm2, %v4744_v58  ;;  %628 = vst.msk [vmem:[#allocation5 + $0x90] sm:$0xff] %vm577_vm2, %v4744_v58 }
  0x2f   : > { %629 = vst.msk [vmem:[#allocation5 + $0x98] sm:$0xff] %vm577_vm2, %v4744_v58  ;;  %630 = vst.msk [vmem:[#allocation5 + $0xa0] sm:$0xff] %vm577_vm2, %v4744_v58 }
  0x30   : > { %631 = vst.msk [vmem:[#allocation5 + $0xa8] sm:$0xff] %vm577_vm2, %v4744_v58  ;;  %632 = vst.msk [vmem:[#allocation5 + $0xb0] sm:$0xff] %vm577_vm2, %v4744_v58 }
  0x31   : > { %633 = vst.msk [vmem:[#allocation5 + $0xb8] sm:$0xff] %vm577_vm2, %v4744_v58  ;;  %634 = vst.msk [vmem:[#allocation5 + $0xc0] sm:$0xff] %vm577_vm2, %v4744_v58 }
  0x32   : > { %635 = vst.msk [vmem:[#allocation5 + $0xc8] sm:$0xff] %vm577_vm2, %v4744_v58  ;;  %636 = vst.msk [vmem:[#allocation5 + $0xd0] sm:$0xff] %vm577_vm2, %v4744_v58 }
  0x33   : > { %637 = vst.msk [vmem:[#allocation5 + $0xd8] sm:$0xff] %vm577_vm2, %v4744_v58  ;;  %638 = vst.msk [vmem:[#allocation5 + $0xe0] sm:$0xff] %vm577_vm2, %v4744_v58 }
  0x34   : > { %639 = vst.msk [vmem:[#allocation5 + $0xe8] sm:$0xff] %vm577_vm2, %v4744_v58  ;;  %640 = vst.msk [vmem:[#allocation5 + $0xf0] sm:$0xff] %vm577_vm2, %v4744_v58 }
  0x35   : > { %641 = vst.msk [vmem:[#allocation5 + $0xf8] sm:$0xff] %vm577_vm2, %v4744_v58 }
  0xec   : > { %v4251_v16 = vpop.f32.mrb[0].mxu1 }
  0xed   : > { %v528_v17 = vadd.f32 %v4251_v16, %v4005_v15  ;;  %v522_v18 = vpop.f32.mrb[1].mxu1 }
  0xee   : > { %v523_v19 = vadd.f32 %v4005_v15, %v522_v18 }
  0xef   : > { %562 = vst.msk [vmem:[#allocation2 + $0x8] sm:$0xff] %vm431_vm0, %v528_v17 }
  0xf0   : > { %561 = vst.msk [vmem:[#allocation2] sm:$0xff] %vm431_vm0, %v523_v19  ;;  %v4254_v20 = vpop.f32.mrb[2].mxu1 }
  0xf1   : > { %v538_v21 = vadd.f32 %v4254_v20, %v4005_v15  ;;  %v532_v22 = vpop.f32.mrb[3].mxu1 }
  0xf2   : > { %v533_v23 = vadd.f32 %v4005_v15, %v532_v22  ;;  %v5076_v22 = vld [vmem:[#allocation4 + $0x38] sm:$0xff] }
  0xf3   : > { %564 = vst.msk [vmem:[#allocation2 + $0x18] sm:$0xff] %vm431_vm0, %v538_v21 }
  0xf4   : > { %563 = vst.msk [vmem:[#allocation2 + $0x10] sm:$0xff] %vm431_vm0, %v533_v23  ;;  %v4257_v24 = vpop.f32.mrb[4].mxu1 }
  0xf5   : > { %v548_v25 = vadd.f32 %v4257_v24, %v4005_v15  ;;  %v542_v26 = vpop.f32.mrb[5].mxu1 }
  0xf6   : > { %v543_v27 = vadd.f32 %v4005_v15, %v542_v26  ;;  %v4879_v29 = vld [vmem:[#allocation2 + $0x8] sm:$0xff] }
  0xf7   : > { %v4874_v28 = vld [vmem:[#allocation2] sm:$0xff]  ;;  %566 = vst.msk [vmem:[#allocation2 + $0x28] sm:$0xff] %vm431_vm0, %v548_v25 }
  0xf8   : > { %4263 = vmatprep.mubr.msk.f32.mxu1 %vm651_vm1, %v4874_v28  ;;  %565 = vst.msk [vmem:[#allocation2 + $0x20] sm:$0xff] %vm431_vm0, %v543_v27  ;;  %v4260_v30 = vpop.f32.mrb[6].mxu1 }
  0xf9   : > { %4264 = vmatmul.mubr.msk.f32.vlgmr.msra.gmra.mrb[8].mxu1 %vm651_vm1, %v4879_v29  ;;  %v558_v31 = vadd.f32 %v4260_v30, %v4005_v15  ;;  %v552_v32 = vpop.f32.mrb[7].mxu1 }
  0xfa   : > { %v553_v33 = vadd.f32 %v4005_v15, %v552_v32  ;;  %v4889_v35 = vld [vmem:[#allocation2 + $0x18] sm:$0xff]  ;;  %v5057_v15 = vld [vmem:[#allocation4 + $0x30] sm:$0xff] }
  0xfb   : > { %v4884_v34 = vld [vmem:[#allocation2 + $0x10] sm:$0xff]  ;;  %568 = vst.msk [vmem:[#allocation2 + $0x38] sm:$0xff] %vm431_vm0, %v558_v31  ;;  %6235 = vst [vmem:[#allocation7_spill] sm:$0xff] %v5057_v15 }
  0xfc   : > { %4266 = vmatprep.mubr.msk.f32.mxu1 %vm651_vm1, %v4884_v34  ;;  %567 = vst.msk [vmem:[#allocation2 + $0x30] sm:$0xff] %vm431_vm0, %v553_v33 }
  0xfd   : > { %4267 = vmatmul.mubr.msk.f32.gmra.mrb[10].mxu1 %vm651_vm1, %v4889_v35 }
  0xfe   : > { %v4894_v36 = vld [vmem:[#allocation2 + $0x28] sm:$0xff] }
  0xff   : > { %v4896_v37 = vld [vmem:[#allocation2 + $0x20] sm:$0xff] }
 0x100   : > { %4269 = vmatprep.mubr.msk.f32.mxu1 %vm651_vm1, %v4896_v37 }
 0x101   : > { %4270 = vmatmul.mubr.msk.f32.gmra.mrb[12].mxu1 %vm651_vm1, %v4894_v36 }
 0x102   : > { %v4902_v38 = vld [vmem:[#allocation2 + $0x38] sm:$0xff] }
 0x103   : > { %v4904_v39 = vld [vmem:[#allocation2 + $0x30] sm:$0xff] }
 0x104   : > { %4272 = vmatprep.mubr.msk.f32.mxu1 %vm651_vm1, %v4904_v39 }
 0x105   : > { %4273 = vmatmul.mubr.msk.f32.gmra.mrb[14].mxu1 %vm651_vm1, %v4902_v38 }
 0x1cc   : > { %v4942_v41 = vpop.f32.mrb[8].mxu1 }
 0x1cd   : > { %v4944_v42 = vpop.f32.mrb[9].mxu1  ;;  %v795_v46 = vsel %vm651_vm1, %v4942_v41, -inf }
 0x1ce   : > { %v792_v43 = vsel %vm651_vm1, %v4944_v42, -inf }
 0x1cf   : > { %793 = vmax.xlane.f32.xlu0 %v792_v43 }
 0x1d0   : > { %v4948_v44 = vpop.f32.mrb[10].mxu1 }
 0x1d1   : > { %v4950_v45 = vpop.f32.mrb[11].mxu1  ;;  %v801_v50 = vsel %vm651_vm1, %v4948_v44, -inf }
 0x1d2   : > { %v798_v47 = vsel %vm651_vm1, %v4950_v45, -inf }
 0x1d3   : > { %796 = vmax.xlane.f32.xlu0 %v795_v46  ;;  %799 = vmax.xlane.f32.xlu1 %v798_v47 }
 0x1d4   : > { %v4956_v48 = vpop.f32.mrb[12].mxu1 }
 0x1d5   : > { %v4958_v49 = vpop.f32.mrb[13].mxu1  ;;  %v807_v52 = vsel %vm651_vm1, %v4956_v48, -inf }
 0x1d6   : > { %v804_v51 = vsel %vm651_vm1, %v4958_v49, -inf }
 0x1d7   : > { %802 = vmax.xlane.f32.xlu1 %v801_v50  ;;  %805 = vmax.xlane.f32.xlu0 %v804_v51 }
 0x1d8   : > { %v4966_v53 = vpop.f32.mrb[14].mxu1 }
 0x1d9   : > { %v4968_v54 = vpop.f32.mrb[15].mxu1  ;;  %v813_v56 = vsel %vm651_vm1, %v4966_v53, -inf }
 0x1da   : > { %v810_v55 = vsel %vm651_vm1, %v4968_v54, -inf }
 0x1db   : > { %808 = vmax.xlane.f32.xlu1 %v807_v52  ;;  %811 = vmax.xlane.f32.xlu0 %v810_v55 }
 0x1df   : > { %814 = vmax.xlane.f32.xlu1 %v813_v56 }
 0x25c   : > { %v794_v60 = vpop.xlane.xlu0 %793 }
 0x25d   : > { %v5017_v61 = vmax.f32 %v5014_v59, %v794_v60 }
 0x25f   : > { %1175 = vst.msk [vmem:[#allocation4] sm:$0xff] %vm577_vm2, %v5017_v61  ;;  %850 = vperm.xlu0 %4508, %v5017_v61  }
 0x260   : > { %v797_v1 = vpop.xlane.xlu0 %796  ;;  %v800_v2 = vpop.xlane.xlu1 %799 }
 0x261   : > { %v5029_v3 = vmax.f32 %v5019_v62, %v797_v1  ;;  %v5032_v4 = vmax.f32 %v5021_v63, %v800_v2 }
 0x263   : > { %1176 = vst.msk [vmem:[#allocation4 + $0x8] sm:$0xff] %vm577_vm2, %v5029_v3  ;;  %1177 = vst.msk [vmem:[#allocation4 + $0x10] sm:$0xff] %vm577_vm2, %v5032_v4  ;;  %855 = vperm.xlu1 %4509, %v5029_v3   ;;  %1217 = vrot.lane.b32.xlu0 %v4861_v14, %s4745_s14 }
 0x264   : > { %v803_v9 = vpop.xlane.xlu1 %802  ;;  %v806_v10 = vpop.xlane.xlu0 %805 }
 0x265   : > { %v5050_v11 = vmax.f32 %v5034_v5, %v803_v9  ;;  %v5053_v12 = vmax.f32 %v5036_v6, %v806_v10 }
 0x267   : > { %1178 = vst.msk [vmem:[#allocation4 + $0x18] sm:$0xff] %vm577_vm2, %v5050_v11  ;;  %865 = vperm.xlu1 %4509, %v5050_v11   ;;  %1202 = vrot.lane.b32.xlu0 %v4879_v29, %s4745_s14  ;;  %1179 = vst.msk [vmem:[#allocation4 + $0x20] sm:$0xff] %vm577_vm2, %v5053_v12 }
 0x268   : > { %v809_v18 = vpop.xlane.xlu1 %808  ;;  %v812_v19 = vpop.xlane.xlu0 %811 }
 0x269   : > { %v5071_v20 = vmax.f32 %v5055_v13, %v809_v18  ;;  %v5074_v21 = vmax.f32 %v5057_v15, %v812_v19 }
 0x26b   : > { %6236 = vst [vmem:[#allocation8_spill] sm:$0xff] %v5074_v21  ;;  %1180 = vst.msk [vmem:[#allocation4 + $0x28] sm:$0xff] %vm577_vm2, %v5071_v20  ;;  %860 = vperm.xlu1 %4509, %v5032_v4   ;;  %1206 = vrot.lane.b32.xlu0 %v4889_v35, %s4745_s14 }
 0x26c   : > { %1181 = vst.msk [vmem:[#allocation4 + $0x30] sm:$0xff] %vm577_vm2, %v5074_v21  ;;  %v815_v25 = vpop.xlane.xlu1 %814 }
 0x26d   : > { %v5090_v26 = vmax.f32 %v5076_v22, %v815_v25 }
 0x26f   : > { %875 = vperm.xlu1 %4509, %v5071_v20   ;;  %1210 = vrot.lane.b32.xlu0 %v4894_v36, %s4745_s14  ;;  %1182 = vst.msk [vmem:[#allocation4 + $0x38] sm:$0xff] %vm577_vm2, %v5090_v26 }
 0x273   : > { %870 = vperm.xlu1 %4509, %v5053_v12   ;;  %1214 = vrot.lane.b32.xlu0 %v4902_v38, %s4745_s14 }
 0x277   : > { %1792 = vrot.lane.b32.xlu0 %v4874_v28, %s4746_s15  ;;  %880 = vperm.xlu1 %4509, %v5074_v21  }
 0x27b   : > { %1796 = vrot.lane.b32.xlu0 %v4884_v34, %s4746_s15  ;;  %885 = vperm.xlu1 %4509, %v5090_v26  }
 0x27f   : > { %1800 = vrot.lane.b32.xlu0 %v4896_v37, %s4746_s15  ;;  %1027 = vrot.lane.b32.xlu1 %v4861_v14, %s4747_s16 }
 0x283   : > { %1804 = vrot.lane.b32.xlu0 %v4904_v39, %s4746_s15  ;;  %1200 = vrot.lane.b32.xlu1 %v4874_v28, %s4745_s14 }
 0x287   : > { %2401 = vrot.lane.b32.xlu0 %v4861_v14, %s4748_s17  ;;  %1204 = vrot.lane.b32.xlu1 %v4884_v34, %s4745_s14 }
 0x28b   : > { %2386 = vrot.lane.b32.xlu0 %v4879_v29, %s4748_s17  ;;  %1208 = vrot.lane.b32.xlu1 %v4896_v37, %s4745_s14 }
 0x28f   : > { %2390 = vrot.lane.b32.xlu0 %v4889_v35, %s4748_s17  ;;  %1212 = vrot.lane.b32.xlu1 %v4904_v39, %s4745_s14 }
 0x293   : > { %2394 = vrot.lane.b32.xlu0 %v4894_v36, %s4748_s17  ;;  %1809 = vrot.lane.b32.xlu1 %v4861_v14, %s4746_s15 }
 0x297   : > { %2398 = vrot.lane.b32.xlu0 %v4902_v38, %s4748_s17  ;;  %1794 = vrot.lane.b32.xlu1 %v4879_v29, %s4746_s15 }
 0x29b   : > { %1798 = vrot.lane.b32.xlu1 %v4889_v35, %s4746_s15 }
 0x29f   : > { %1802 = vrot.lane.b32.xlu1 %v4894_v36, %s4746_s15 }
 0x2a3   : > { %1806 = vrot.lane.b32.xlu1 %v4902_v38, %s4746_s15 }
 0x2a7   : > { %2384 = vrot.lane.b32.xlu1 %v4874_v28, %s4748_s17 }
 0x2ab   : > { %2388 = vrot.lane.b32.xlu1 %v4884_v34, %s4748_s17 }
 0x2af   : > { %2392 = vrot.lane.b32.xlu1 %v4896_v37, %s4748_s17 }
 0x2b3   : > { %2396 = vrot.lane.b32.xlu1 %v4904_v39, %s4748_s17 }
 0x2de   : > { %v851_v29 = vpop.permute.xlu0 %850 }
 0x2df   : > { %v888_v30 = vsub.f32 %v4944_v42, %v851_v29 }
 0x2e1   : > { %v896_v31 = vmul.f32 1.442695, %v888_v30 }
 0x2e2   : > { %v856_v32 = vpop.permute.xlu1 %855  ;;  %v1218_v33 = vpop.permute.xlu0 %1217 }
 0x2e3   : > { %4510 = vpow2.f32 %v896_v31  ;;  %4289 = vmatprep.subr.msk.mxu0 %vm651_vm1, %v1218_v33  ;;  %v889_v37 = vsub.f32 %v4942_v41, %v856_v32 }
 0x2e4   : > { %4290 = vmatpush3.xpose.msk.msra.mxu0 %vm651_vm1, %v1218_v33 }
 0x2e5   : > { %v898_v43 = vmul.f32 1.442695, %v889_v37 }
 0x2e6   : > { %v866_v28 = vpop.permute.xlu1 %865  ;;  %v1203_v35 = vpop.permute.xlu0 %1202 }
 0x2e7   : > { %v891_v46 = vsub.f32 %v4948_v44, %v866_v28  ;;  %4512 = vpow2.f32 %v898_v43 }
 0x2e9   : > { %v902_v52 = vmul.f32 1.442695, %v891_v46 }
 0x2ea   : > { %v861_v34 = vpop.permute.xlu1 %860  ;;  %v1207_v36 = vpop.permute.xlu0 %1206 }
 0x2eb   : > { %v890_v40 = vsub.f32 %v4950_v45, %v861_v34 }
 0x2ed   : > { %v5152_v38 = vpop.eup %4510  ;;  %v900_v50 = vmul.f32 1.442695, %v890_v40 }
 0x2ee   : > { %v876_v39 = vpop.permute.xlu1 %875  ;;  %4277 = vmatprep.mubr.msk.f32.mxu1 %vm651_vm1, %v5152_v38  ;;  %v1211_v42 = vpop.permute.xlu0 %1210 }
 0x2ef   : > { %v893_v55 = vsub.f32 %v4956_v48, %v876_v39  ;;  %4514 = vpow2.f32 %v900_v50 }
 0x2f0   : > { %4516 = vpow2.f32 %v902_v52 }
 0x2f1   : > { %v906_v45 = vmul.f32 1.442695, %v893_v55  ;;  %v5163_v48 = vpop.eup %4512 }
 0x2f2   : > { %v871_v47 = vpop.permute.xlu1 %870  ;;  %v1215_v56 = vpop.permute.xlu0 %1214 }
 0x2f3   : > { %v892_v51 = vsub.f32 %v4958_v49, %v871_v47 }
 0x2f5   : > { %v904_v57 = vmul.f32 1.442695, %v892_v51 }
 0x2f6   : > { %v881_v41 = vpop.permute.xlu1 %880  ;;  %v1793_v2 = vpop.permute.xlu0 %1792 }
 0x2f7   : > { %v894_v58 = vsub.f32 %v4968_v54, %v881_v41  ;;  %4518 = vpow2.f32 %v904_v57 }
 0x2f8   : > { %4520 = vpow2.f32 %v906_v45 }
 0x2f9   : > { %v908_v1 = vmul.f32 1.442695, %v894_v58  ;;  %v5165_v10 = vpop.eup %4514 }
 0x2fa   : > { %v886_v60 = vpop.permute.xlu1 %885  ;;  %v1797_v54 = vpop.permute.xlu0 %1796 }
 0x2fb   : > { %v895_v44 = vsub.f32 %v4966_v53, %v886_v60  ;;  %4522 = vpow2.f32 %v908_v1  ;;  %v5173_v53 = vpop.eup %4516 }
 0x2fd   : > { %v910_v49 = vmul.f32 1.442695, %v895_v44 }
 0x2fe   : > { %v1028_v9 = vpop.permute.xlu1 %1027  ;;  %v1801_v30 = vpop.permute.xlu0 %1800 }
 0x2ff   : > { %4275 = vmatprep.subr.mxu1 %v1028_v9  ;;  %4524 = vpow2.f32 %v910_v49 }
 0x300   : > { %4276 = vmatpush3.msra.mxu1 %v1028_v9 }
 0x301   : > { %4278 = vmatmul.mubr.msk.f32.vlgmr.msra.gmra.mrb[16].mxu1 %vm651_vm1, %v5163_v48  ;;  %4437 = vmatprep.subr.msk.mxu1 %vm651_vm1, %v1218_v33  ;;  %v5176_v19 = vpop.eup %4518 }
 0x302   : > { %v1201_v18 = vpop.permute.xlu1 %1200  ;;  %4280 = vmatprep.mubr.msk.f32.mxu1 %vm651_vm1, %v5165_v10  ;;  %v5184_v29 = vpop.eup %4520 }
 0x303   : > { %4291 = vmatprep.mubr.msk.f32.mxu0 %vm651_vm1, %v1201_v18 }
 0x304   : > { %4292 = vmatmul.mubr.msk.f32.vlgmr.msra.gmra.mrb[0].mxu0 %vm651_vm1, %v1203_v35 }
 0x305   : > { %4281 = vmatmul.mubr.msk.f32.gmra.mrb[18].mxu1 %vm651_vm1, %v5173_v53  ;;  %v5187_v31 = vpop.eup %4522 }
 0x306   : > { %v1205_v25 = vpop.permute.xlu1 %1204  ;;  %4283 = vmatprep.mubr.msk.f32.mxu1 %vm651_vm1, %v5176_v19 }
 0x307   : > { %4294 = vmatprep.mubr.msk.f32.mxu0 %vm651_vm1, %v1205_v25  ;;  %4438 = vmatpush3.xpose.msk.msra.mxu1 %vm651_vm1, %v1218_v33  ;;  %v1805_v33 = vpop.permute.xlu0 %1804 }
 0x308   : > { %4295 = vmatmul.mubr.msk.f32.gmra.mrb[2].mxu0 %vm651_vm1, %v1207_v36 }
 0x309   : > { %4284 = vmatmul.mubr.msk.f32.gmra.mrb[20].mxu1 %vm651_vm1, %v5184_v29  ;;  %v5194_v28 = vpop.eup %4524 }
 0x30a   : > { %v1209_v32 = vpop.permute.xlu1 %1208  ;;  %4286 = vmatprep.mubr.msk.f32.mxu1 %vm651_vm1, %v5187_v31 }
 0x30b   : > { %4297 = vmatprep.mubr.msk.f32.mxu0 %vm651_vm1, %v1209_v32  ;;  %v2402_v36 = vpop.permute.xlu0 %2401 }
 0x30c   : > { %4298 = vmatmul.mubr.msk.f32.gmra.mrb[4].mxu0 %vm651_vm1, %v1211_v42 }
 0x30d   : > { %4287 = vmatmul.mubr.msk.f32.gmra.mrb[22].mxu1 %vm651_vm1, %v5194_v28  ;;  %4319 = vmatprep.mubr.msk.f32.mxu0 %vm651_vm1, %v1793_v2 }
 0x30e   : > { %v1213_v35 = vpop.permute.xlu1 %1212 }
 0x30f   : > { %4300 = vmatprep.mubr.msk.f32.mxu1 %vm651_vm1, %v1213_v35  ;;  %v2387_v42 = vpop.permute.xlu0 %2386 }
 0x311   : > { %4301 = vmatmul.mubr.msk.f32.vlgmr.msra.gmra.mrb[24].mxu1 %vm651_vm1, %v1215_v56 }
 0x312   : > { %v1810_v34 = vpop.permute.xlu1 %1809 }
 0x313   : > { %4317 = vmatprep.subr.msk.mxu0 %vm651_vm1, %v1810_v34  ;;  %v2391_v47 = vpop.permute.xlu0 %2390 }
 0x314   : > { %4318 = vmatpush3.xpose.msk.msra.mxu0 %vm651_vm1, %v1810_v34 }
 0x315   : > { %4345 = vmatprep.subr.msk.mxu0 %vm651_vm1, %v2402_v36 }
 0x316   : > { %v1795_v37 = vpop.permute.xlu1 %1794 }
 0x317   : > { %4320 = vmatmul.mubr.msk.f32.vlgmr.msra.gmra.mrb[6].mxu0 %vm651_vm1, %v1795_v37  ;;  %v2395_v51 = vpop.permute.xlu0 %2394 }
 0x318   : > { %4322 = vmatprep.mubr.msk.f32.mxu0 %vm651_vm1, %v1797_v54  ;;  %4346 = vmatpush3.xpose.msk.msra.mxu0 %vm651_vm1, %v2402_v36 }
 0x31a   : > { %v1799_v39 = vpop.permute.xlu1 %1798 }
 0x31b   : > { %4323 = vmatmul.mubr.msk.f32.gmra.mrb[8].mxu0 %vm651_vm1, %v1799_v39  ;;  %v2399_v56 = vpop.permute.xlu0 %2398 }
 0x31c   : > { %4325 = vmatprep.mubr.msk.f32.mxu0 %vm651_vm1, %v1801_v30 }
 0x31e   : > { %v1803_v40 = vpop.permute.xlu1 %1802 }
 0x31f   : > { %4326 = vmatmul.mubr.msk.f32.gmra.mrb[10].mxu0 %vm651_vm1, %v1803_v40 }
 0x320   : > { %4328 = vmatprep.mubr.msk.f32.mxu0 %vm651_vm1, %v1805_v33 }
 0x322   : > { %v1807_v43 = vpop.permute.xlu1 %1806 }
 0x323   : > { %4329 = vmatmul.mubr.msk.f32.gmra.mrb[12].mxu0 %vm651_vm1, %v1807_v43 }
 0x326   : > { %v2385_v46 = vpop.permute.xlu1 %2384 }
 0x327   : > { %4347 = vmatprep.mubr.msk.f32.mxu0 %vm651_vm1, %v2385_v46 }
 0x328   : > { %4348 = vmatmul.mubr.msk.f32.vlgmr.msra.gmra.mrb[14].mxu0 %vm651_vm1, %v2387_v42 }
 0x32a   : > { %v2389_v50 = vpop.permute.xlu1 %2388 }
 0x32b   : > { %4350 = vmatprep.mubr.msk.f32.mxu0 %vm651_vm1, %v2389_v50 }
 0x32c   : > { %4351 = vmatmul.mubr.msk.f32.gmra.mrb[16].mxu0 %vm651_vm1, %v2391_v47 }
 0x32e   : > { %v2393_v52 = vpop.permute.xlu1 %2392 }
 0x32f   : > { %4353 = vmatprep.mubr.msk.f32.mxu0 %vm651_vm1, %v2393_v52 }
 0x330   : > { %4354 = vmatmul.mubr.msk.f32.gmra.mrb[18].mxu0 %vm651_vm1, %v2395_v51 }
 0x332   : > { %v2397_v55 = vpop.permute.xlu1 %2396 }
 0x333   : > { %4356 = vmatprep.mubr.msk.f32.mxu0 %vm651_vm1, %v2397_v55 }
 0x334   : > { %4357 = vmatmul.mubr.msk.f32.gmra.mrb[20].mxu0 %vm651_vm1, %v2399_v56 }
 0x3d4   : > { %v5221_v41 = vpop.f32.mrb[16].mxu1 }
 0x3d5   : > { %6237 = vst [vmem:[#allocation9_spill] sm:$0xff] %v5221_v41  ;;  %v5223_v57 = vpop.f32.mrb[17].mxu1 }
 0x3d6   : > { %6238 = vst [vmem:[#allocation10_spill] sm:$0xff] %v5223_v57 }
 0x3d7   : > { %v5225_v58 = vpop.f32.mrb[0].mxu0 }
 0x3d8   : > { %v5227_v45 = vpop.f32.mrb[18].mxu1  ;;  %v5229_v60 = vpop.f32.mrb[1].mxu0  ;;  %v1354_v1 = vsel %vm651_vm1, %v5225_v58, -inf }
 0x3d9   : > { %6239 = vst [vmem:[#allocation11_spill] sm:$0xff] %v5227_v45  ;;  %v5233_v44 = vpop.f32.mrb[19].mxu1  ;;  %1355 = vmax.xlane.f32.xlu0 %v1354_v1  ;;  %v1351_v2 = vsel %vm651_vm1, %v5229_v60, -inf  ;;  %v5365_v45 = vld [vmem:[#allocation4 + $0x60] sm:$0xff] }
 0x3da   : > { %6240 = vst [vmem:[#allocation12_spill] sm:$0xff] %v5233_v44  ;;  %1352 = vmax.xlane.f32.xlu1 %v1351_v2  ;;  %6252 = vst [vmem:[#allocation24_spill] sm:$0xff] %v5365_v45  ;;  %v5403_v44 = vld [vmem:[#allocation4 + $0x98] sm:$0xff] }
 0x3db   : > { %v5237_v49 = vpop.f32.mrb[2].mxu0  ;;  %6259 = vst [vmem:[#allocation31_spill] sm:$0xff] %v5403_v44 }
 0x3dc   : > { %v5239_v9 = vpop.f32.mrb[20].mxu1  ;;  %v5241_v54 = vpop.f32.mrb[3].mxu0  ;;  %v1360_v18 = vsel %vm651_vm1, %v5237_v49, -inf }
 0x3dd   : > { %6241 = vst [vmem:[#allocation13_spill] sm:$0xff] %v5239_v9  ;;  %v5245_v25 = vpop.f32.mrb[21].mxu1  ;;  %v1357_v30 = vsel %vm651_vm1, %v5241_v54, -inf  ;;  %v5363_v9 = vld [vmem:[#allocation4 + $0x68] sm:$0xff] }
 0x3de   : > { %6242 = vst [vmem:[#allocation14_spill] sm:$0xff] %v5245_v25  ;;  %1361 = vmax.xlane.f32.xlu1 %v1360_v18  ;;  %1358 = vmax.xlane.f32.xlu0 %v1357_v30  ;;  %6251 = vst [vmem:[#allocation23_spill] sm:$0xff] %v5363_v9 }
 0x3df   : > { %v5249_v32 = vpop.f32.mrb[4].mxu0 }
 0x3e0   : > { %v5251_v33 = vpop.f32.mrb[22].mxu1  ;;  %v5253_v35 = vpop.f32.mrb[5].mxu0  ;;  %v1366_v34 = vsel %vm651_vm1, %v5249_v32, -inf }
 0x3e1   : > { %6243 = vst [vmem:[#allocation15_spill] sm:$0xff] %v5251_v33  ;;  %v5257_v36 = vpop.f32.mrb[23].mxu1  ;;  %v1363_v37 = vsel %vm651_vm1, %v5253_v35, -inf }
 0x3e2   : > { %6244 = vst [vmem:[#allocation16_spill] sm:$0xff] %v5257_v36  ;;  %1367 = vmax.xlane.f32.xlu1 %v1366_v34  ;;  %1364 = vmax.xlane.f32.xlu0 %v1363_v37 }
 0x3e4   : > { %v5261_v39 = vpop.f32.mrb[24].mxu1 }
 0x3e5   : > { %v5263_v40 = vpop.f32.mrb[25].mxu1  ;;  %v1372_v2 = vsel %vm651_vm1, %v5261_v39, -inf }
 0x3ea   : > { %v5265_v42 = vpop.f32.mrb[6].mxu0 }
 0x3eb   : > { %v5267_v43 = vpop.f32.mrb[7].mxu0  ;;  %v1946_v46 = vsel %vm651_vm1, %v5265_v42, -inf }
 0x3ec   : > { %1947 = vmax.xlane.f32.xlu1 %v1946_v46  ;;  %v1943_v47 = vsel %vm651_vm1, %v5267_v43, -inf }
 0x3ed   : > { %1944 = vmax.xlane.f32.xlu0 %v1943_v47 }
 0x3ee   : > { %v5273_v50 = vpop.f32.mrb[8].mxu0 }
 0x3ef   : > { %v5275_v51 = vpop.f32.mrb[9].mxu0  ;;  %v1952_v52 = vsel %vm651_vm1, %v5273_v50, -inf }
 0x3f0   : > { %1953 = vmax.xlane.f32.xlu1 %v1952_v52  ;;  %v1949_v55 = vsel %vm651_vm1, %v5275_v51, -inf }
 0x3f1   : > { %1950 = vmax.xlane.f32.xlu0 %v1949_v55 }
 0x3f2   : > { %v5281_v56 = vpop.f32.mrb[10].mxu0 }
 0x3f3   : > { %v5283_v1 = vpop.f32.mrb[11].mxu0  ;;  %v1958_v37 = vsel %vm651_vm1, %v5281_v56, -inf }
 0x3f4   : > { %1373 = vmax.xlane.f32.xlu1 %v1372_v2  ;;  %v1955_v18 = vsel %vm651_vm1, %v5283_v1, -inf  ;;  %v1369_v2 = vsel %vm651_vm1, %v5263_v40, -inf }
 0x3f5   : > { %1956 = vmax.xlane.f32.xlu0 %v1955_v18 }
 0x3f6   : > { %v5289_v30 = vpop.f32.mrb[12].mxu0 }
 0x3f7   : > { %v5291_v34 = vpop.f32.mrb[13].mxu0  ;;  %v1964_v52 = vsel %vm651_vm1, %v5289_v30, -inf }
 0x3f8   : > { %1959 = vmax.xlane.f32.xlu1 %v1958_v37  ;;  %v1961_v46 = vsel %vm651_vm1, %v5291_v34, -inf }
 0x3f9   : > { %1962 = vmax.xlane.f32.xlu0 %v1961_v46 }
 0x3fb   : > { %v5297_v47 = vpop.f32.mrb[14].mxu0 }
 0x3fc   : > { %1965 = vmax.xlane.f32.xlu1 %v1964_v52  ;;  %v5301_v55 = vpop.f32.mrb[15].mxu0  ;;  %v2538_v37 = vsel %vm651_vm1, %v5297_v47, -inf }
 0x3fd   : > { %1370 = vmax.xlane.f32.xlu0 %v1369_v2  ;;  %v2535_v46 = vsel %vm651_vm1, %v5301_v55, -inf }
 0x3ff   : > { %v5305_v18 = vpop.f32.mrb[16].mxu0 }
 0x400   : > { %2539 = vmax.xlane.f32.xlu1 %v2538_v37  ;;  %v5309_v24 = vpop.f32.mrb[17].mxu0  ;;  %v2544_v52 = vsel %vm651_vm1, %v5305_v18, -inf }
 0x401   : > { %2536 = vmax.xlane.f32.xlu0 %v2535_v46  ;;  %v2541_v2 = vsel %vm651_vm1, %v5309_v24, -inf }
 0x403   : > { %v5313_v17 = vpop.f32.mrb[18].mxu0 }
 0x404   : > { %2545 = vmax.xlane.f32.xlu1 %v2544_v52  ;;  %v5317_v7 = vpop.f32.mrb[19].mxu0  ;;  %v2550_v37 = vsel %vm651_vm1, %v5313_v17, -inf }
 0x405   : > { %2542 = vmax.xlane.f32.xlu0 %v2541_v2  ;;  %v2547_v46 = vsel %vm651_vm1, %v5317_v7, -inf  ;;  %v5333_v2 = vld [vmem:[#allocation4 + $0x48] sm:$0xff] }
 0x406   : > { %6245 = vst [vmem:[#allocation17_spill] sm:$0xff] %v5333_v2 }
 0x407   : > { %v5321_v27 = vpop.f32.mrb[20].mxu0 }
 0x408   : > { %2551 = vmax.xlane.f32.xlu1 %v2550_v37  ;;  %v5325_v23 = vpop.f32.mrb[21].mxu0  ;;  %v2556_v52 = vsel %vm651_vm1, %v5321_v27, -inf }
 0x409   : > { %2548 = vmax.xlane.f32.xlu0 %v2547_v46  ;;  %v2553_v16 = vsel %vm651_vm1, %v5325_v23, -inf }
 0x40c   : > { %2557 = vmax.xlane.f32.xlu1 %v2556_v52  ;;  %v5350_v52 = vld [vmem:[#allocation4 + $0x50] sm:$0xff] }
 0x40d   : > { %2554 = vmax.xlane.f32.xlu0 %v2553_v16  ;;  %v5348_v16 = vld [vmem:[#allocation4 + $0x58] sm:$0xff]  ;;  %6248 = vst [vmem:[#allocation20_spill] sm:$0xff] %v5350_v52 }
 0x40e   : > { %6247 = vst [vmem:[#allocation19_spill] sm:$0xff] %v5348_v16 }
 0x466   : > { %v1356_v0 = vpop.xlane.xlu0 %1355 }
 0x467   : > { %v5338_v37 = vmax.f32 %v5333_v2, %v1356_v0  ;;  %v1353_v36 = vpop.xlane.xlu1 %1352  ;;  %v5499_v2 = vld [vmem:[#allocation4 + $0xd8] sm:$0xff] }
 0x468   : > { %v5341_v25 = vmax.f32 %v5335_v8, %v1353_v36  ;;  %6275 = vst [vmem:[#allocation47_spill] sm:$0xff] %v5499_v2 }
 0x469   : > { %6246 = vst [vmem:[#allocation18_spill] sm:$0xff] %v5338_v37  ;;  %1768 = vst.msk [vmem:[#allocation4 + $0x48] sm:$0xff] %vm577_vm2, %v5338_v37  ;;  %1414 = vperm.xlu1 %4509, %v5338_v37  }
 0x46a   : > { %1767 = vst.msk [vmem:[#allocation4 + $0x40] sm:$0xff] %vm577_vm2, %v5341_v25  ;;  %1409 = vperm.xlu0 %4508, %v5341_v25  }
 0x46b   : > { %v1362_v36 = vpop.xlane.xlu1 %1361  ;;  %v1359_v41 = vpop.xlane.xlu0 %1358 }
 0x46c   : > { %v5358_v46 = vmax.f32 %v5348_v16, %v1362_v36  ;;  %v5361_v33 = vmax.f32 %v5350_v52, %v1359_v41 }
 0x46e   : > { %6249 = vst [vmem:[#allocation21_spill] sm:$0xff] %v5358_v46  ;;  %6250 = vst [vmem:[#allocation22_spill] sm:$0xff] %v5361_v33  ;;  %1424 = vperm.xlu0 %4508, %v5358_v46   ;;  %1419 = vperm.xlu1 %4509, %v5361_v33  }
 0x46f   : > { %1770 = vst.msk [vmem:[#allocation4 + $0x58] sm:$0xff] %vm577_vm2, %v5358_v46  ;;  %1769 = vst.msk [vmem:[#allocation4 + $0x50] sm:$0xff] %vm577_vm2, %v5361_v33  ;;  %v1368_v41 = vpop.xlane.xlu1 %1367  ;;  %v1365_v36 = vpop.xlane.xlu0 %1364  ;;  %v5423_v46 = vld [vmem:[#allocation4 + $0x78] sm:$0xff] }
 0x470   : > { %v5378_v57 = vmax.f32 %v5363_v9, %v1368_v41  ;;  %v5381_v0 = vmax.f32 %v5365_v45, %v1365_v36  ;;  %v5393_v41 = vld [vmem:[#allocation4 + $0x88] sm:$0xff]  ;;  %v5395_v36 = vld [vmem:[#allocation4 + $0x80] sm:$0xff]  ;;  %6262 = vst [vmem:[#allocation34_spill] sm:$0xff] %v5423_v46 }
 0x471   : > { %6255 = vst [vmem:[#allocation27_spill] sm:$0xff] %v5393_v41  ;;  %6256 = vst [vmem:[#allocation28_spill] sm:$0xff] %v5395_v36 }
 0x472   : > { %6253 = vst [vmem:[#allocation25_spill] sm:$0xff] %v5378_v57  ;;  %6254 = vst [vmem:[#allocation26_spill] sm:$0xff] %v5381_v0  ;;  %1434 = vperm.xlu0 %4508, %v5378_v57   ;;  %1429 = vperm.xlu1 %4509, %v5381_v0  }
 0x473   : > { %1772 = vst.msk [vmem:[#allocation4 + $0x68] sm:$0xff] %vm577_vm2, %v5378_v57  ;;  %1771 = vst.msk [vmem:[#allocation4 + $0x60] sm:$0xff] %vm577_vm2, %v5381_v0  ;;  %v5410_v57 = vld [vmem:[#allocation4 + $0x90] sm:$0xff] }
 0x474   : > { %6260 = vst [vmem:[#allocation32_spill] sm:$0xff] %v5410_v57 }
 0x479   : > { %v1948_v33 = vpop.xlane.xlu1 %1947 }
 0x47a   : > { %v5398_v16 = vmax.f32 %v5393_v41, %v1948_v33  ;;  %v1945_v9 = vpop.xlane.xlu0 %1944  ;;  %v5429_v33 = vld [vmem:[#allocation4 + $0xa0] sm:$0xff] }
 0x47b   : > { %v5401_v52 = vmax.f32 %v5395_v36, %v1945_v9  ;;  %6263 = vst [vmem:[#allocation35_spill] sm:$0xff] %v5429_v33 }
 0x47c   : > { %6257 = vst [vmem:[#allocation29_spill] sm:$0xff] %v5398_v16  ;;  %2360 = vst.msk [vmem:[#allocation4 + $0x88] sm:$0xff] %vm577_vm2, %v5398_v16  ;;  %2006 = vperm.xlu0 %4508, %v5398_v16   ;;  %v5441_v16 = vld [vmem:[#allocation4 + $0xa8] sm:$0xff] }
 0x47d   : > { %6258 = vst [vmem:[#allocation30_spill] sm:$0xff] %v5401_v52  ;;  %2359 = vst.msk [vmem:[#allocation4 + $0x80] sm:$0xff] %vm577_vm2, %v5401_v52  ;;  %v1954_v9 = vpop.xlane.xlu1 %1953  ;;  %2001 = vperm.xlu1 %4509, %v5401_v52   ;;  %v5448_v52 = vld [vmem:[#allocation4 + $0xb0] sm:$0xff] }
 0x47e   : > { %v5418_v0 = vmax.f32 %v5403_v44, %v1954_v9  ;;  %v1951_v45 = vpop.xlane.xlu0 %1950  ;;  %6266 = vst [vmem:[#allocation38_spill] sm:$0xff] %v5441_v16  ;;  %6267 = vst [vmem:[#allocation39_spill] sm:$0xff] %v5448_v52 }
 0x47f   : > { %v5421_v41 = vmax.f32 %v5410_v57, %v1951_v45 }
 0x480   : > { %2362 = vst.msk [vmem:[#allocation4 + $0x98] sm:$0xff] %vm577_vm2, %v5418_v0 }
 0x481   : > { %6261 = vst [vmem:[#allocation33_spill] sm:$0xff] %v5421_v41  ;;  %2361 = vst.msk [vmem:[#allocation4 + $0x90] sm:$0xff] %vm577_vm2, %v5421_v41  ;;  %v1374_v9 = vpop.xlane.xlu1 %1373 }
 0x482   : > { %v5436_v45 = vmax.f32 %v5423_v46, %v1374_v9  ;;  %v1957_v36 = vpop.xlane.xlu0 %1956  ;;  %v5460_v46 = vld [vmem:[#allocation4 + $0xb8] sm:$0xff]  ;;  %v5467_v9 = vld [vmem:[#allocation4 + $0x70] sm:$0xff] }
 0x483   : > { %v5439_v21 = vmax.f32 %v5429_v33, %v1957_v36  ;;  %6269 = vst [vmem:[#allocation41_spill] sm:$0xff] %v5460_v46  ;;  %6270 = vst [vmem:[#allocation42_spill] sm:$0xff] %v5467_v9 }
 0x484   : > { %6264 = vst [vmem:[#allocation36_spill] sm:$0xff] %v5436_v45  ;;  %1774 = vst.msk [vmem:[#allocation4 + $0x78] sm:$0xff] %vm577_vm2, %v5436_v45  ;;  %1444 = vperm.xlu0 %4508, %v5436_v45  }
 0x485   : > { %6265 = vst [vmem:[#allocation37_spill] sm:$0xff] %v5439_v21  ;;  %2363 = vst.msk [vmem:[#allocation4 + $0xa0] sm:$0xff] %vm577_vm2, %v5439_v21  ;;  %v1960_v36 = vpop.xlane.xlu1 %1959 }
 0x486   : > { %v5455_v57 = vmax.f32 %v5441_v16, %v1960_v36  ;;  %v1963_v15 = vpop.xlane.xlu0 %1962  ;;  %v5479_v16 = vld [vmem:[#allocation4 + $0xc8] sm:$0xff]  ;;  %v5486_v36 = vld [vmem:[#allocation4 + $0xc0] sm:$0xff] }
 0x487   : > { %v5458_v44 = vmax.f32 %v5448_v52, %v1963_v15  ;;  %6272 = vst [vmem:[#allocation44_spill] sm:$0xff] %v5479_v16  ;;  %6273 = vst [vmem:[#allocation45_spill] sm:$0xff] %v5486_v36 }
 0x488   : > { %2364 = vst.msk [vmem:[#allocation4 + $0xa8] sm:$0xff] %vm577_vm2, %v5455_v57  ;;  %1586 = vrot.lane.b32.xlu0 %v4861_v14, %s4749_s18 }
 0x489   : > { %6268 = vst [vmem:[#allocation40_spill] sm:$0xff] %v5458_v44  ;;  %2365 = vst.msk [vmem:[#allocation4 + $0xb0] sm:$0xff] %vm577_vm2, %v5458_v44  ;;  %v1966_v15 = vpop.xlane.xlu1 %1965 }
 0x48a   : > { %v5474_v33 = vmax.f32 %v5460_v46, %v1966_v15  ;;  %v1371_v37 = vpop.xlane.xlu0 %1370  ;;  %v5506_v15 = vld [vmem:[#allocation4 + $0xd0] sm:$0xff] }
 0x48b   : > { %v5477_v45 = vmax.f32 %v5467_v9, %v1371_v37  ;;  %6276 = vst [vmem:[#allocation48_spill] sm:$0xff] %v5506_v15 }
 0x48c   : > { %2366 = vst.msk [vmem:[#allocation4 + $0xb8] sm:$0xff] %vm577_vm2, %v5474_v33  ;;  %2021 = vperm.xlu0 %4508, %v5439_v21  }
 0x48d   : > { %6271 = vst [vmem:[#allocation43_spill] sm:$0xff] %v5477_v45  ;;  %1773 = vst.msk [vmem:[#allocation4 + $0x70] sm:$0xff] %vm577_vm2, %v5477_v45  ;;  %v2540_v37 = vpop.xlane.xlu1 %2539  ;;  %1439 = vperm.xlu1 %4509, %v5477_v45  }
 0x48e   : > { %v5494_v52 = vmax.f32 %v5479_v16, %v2540_v37  ;;  %v2537_v14 = vpop.xlane.xlu0 %2536  ;;  %v5519_v16 = vld [vmem:[#allocation4 + $0xe8] sm:$0xff]  ;;  %v5526_v37 = vld [vmem:[#allocation4 + $0xe0] sm:$0xff] }
 0x48f   : > { %v5497_v46 = vmax.f32 %v5486_v36, %v2537_v14  ;;  %6278 = vst [vmem:[#allocation50_spill] sm:$0xff] %v5519_v16 }
 0x490   : > { %2952 = vst.msk [vmem:[#allocation4 + $0xc8] sm:$0xff] %vm577_vm2, %v5494_v52  ;;  %2031 = vperm.xlu0 %4508, %v5458_v44  }
 0x491   : > { %6274 = vst [vmem:[#allocation46_spill] sm:$0xff] %v5497_v46  ;;  %2951 = vst.msk [vmem:[#allocation4 + $0xc0] sm:$0xff] %vm577_vm2, %v5497_v46  ;;  %v2546_v14 = vpop.xlane.xlu1 %2545  ;;  %2011 = vperm.xlu1 %4509, %v5421_v41   ;;  %v5539_v41 = vld [vmem:[#allocation4 + $0xf8] sm:$0xff] }
 0x492   : > { %v5514_v45 = vmax.f32 %v5499_v2, %v2546_v14  ;;  %v2543_v21 = vpop.xlane.xlu0 %2542  ;;  %6279 = vst [vmem:[#allocation51_spill] sm:$0xff] %v5539_v41  ;;  %v5546_v14 = vld [vmem:[#allocation4 + $0xf0] sm:$0xff] }
 0x493   : > { %v5517_v9 = vmax.f32 %v5506_v15, %v2543_v21 }
 0x494   : > { %2954 = vst.msk [vmem:[#allocation4 + $0xd8] sm:$0xff] %vm577_vm2, %v5514_v45  ;;  %2593 = vperm.xlu0 %4508, %v5497_v46  }
 0x495   : > { %6277 = vst [vmem:[#allocation49_spill] sm:$0xff] %v5517_v9  ;;  %2953 = vst.msk [vmem:[#allocation4 + $0xd0] sm:$0xff] %vm577_vm2, %v5517_v9  ;;  %v2552_v21 = vpop.xlane.xlu1 %2551  ;;  %2016 = vperm.xlu1 %4509, %v5418_v0  }
 0x496   : > { %v5534_v36 = vmax.f32 %v5519_v16, %v2552_v21  ;;  %v2549_v44 = vpop.xlane.xlu0 %2548  ;;  %v937_v21 = vsel %vm651_vm1, %v5173_v53, 0.0  ;;  %v946_v53 = vsel %vm651_vm1, %v5187_v31, 0.0 }
 0x497   : > { %v5537_v2 = vmax.f32 %v5526_v37, %v2549_v44 }
 0x498   : > { %2956 = vst.msk [vmem:[#allocation4 + $0xe8] sm:$0xff] %vm577_vm2, %v5534_v36  ;;  %2603 = vperm.xlu0 %4508, %v5517_v9   ;;  %v934_v9 = vsel %vm651_vm1, %v5165_v10, 0.0  ;;  %v940_v10 = vsel %vm651_vm1, %v5176_v19, 0.0 }
 0x499   : > { %2955 = vst.msk [vmem:[#allocation4 + $0xe0] sm:$0xff] %vm577_vm2, %v5537_v2  ;;  %v2558_v44 = vpop.xlane.xlu1 %2557  ;;  %2026 = vperm.xlu1 %4509, %v5455_v57  }
 0x49a   : > { %v5554_v15 = vmax.f32 %v5539_v41, %v2558_v44  ;;  %v2555_v46 = vpop.xlane.xlu0 %2554  ;;  %v928_v44 = vsel %vm651_vm1, %v5152_v38, 0.0  ;;  %v949_v41 = vsel %vm651_vm1, %v5194_v28, 0.0  ;;  %v931_v38 = vsel %vm651_vm1, %v5163_v48, 0.0 }
 0x49b   : > { %v5557_v16 = vmax.f32 %v5546_v14, %v2555_v46  ;;  %v2176_v46 = vld [vmem:[%s4858_s29] sm:$0xff] }
 0x49c   : > { %6280 = vst [vmem:[#allocation52_spill] sm:$0xff] %v5554_v15  ;;  %2958 = vst.msk [vmem:[#allocation4 + $0xf8] sm:$0xff] %vm577_vm2, %v5554_v15  ;;  %2608 = vperm.xlu0 %4508, %v5514_v45  }
 0x49d   : > { %2957 = vst.msk [vmem:[#allocation4 + $0xf0] sm:$0xff] %vm577_vm2, %v5557_v16  ;;  %2036 = vperm.xlu1 %4509, %v5474_v33  }
 0x4a0   : > { %2618 = vperm.xlu0 %4508, %v5534_v36  }
 0x4a1   : > { %2598 = vperm.xlu1 %4509, %v5494_v52  }
 0x4a4   : > { %2628 = vperm.xlu0 %4508, %v5554_v15   ;;  %v943_v15 = vsel %vm651_vm1, %v5184_v29, 0.0 }
 0x4a5   : > { %2178 = vrot.lane.b32.xlu1 %v2176_v46, %s4750_s19 }
 0x4a9   : > { %2613 = vperm.xlu1 %4509, %v5537_v2  }
 0x4ad   : > { %2623 = vperm.xlu1 %4509, %v5557_v16  }
 0x4b1   : > { %2770 = vrot.lane.b32.xlu1 %v2176_v46, %s4751_s20 }
 0x4c3   : > { %929 = vadd.xlane.f32.xlu0 %v928_v44 }
 0x4c7   : > { %935 = vadd.xlane.f32.xlu0 %v934_v9 }
 0x4cb   : > { %938 = vadd.xlane.f32.xlu0 %v937_v21 }
 0x4cf   : > { %944 = vadd.xlane.f32.xlu0 %v943_v15 }
 0x4d3   : > { %950 = vadd.xlane.f32.xlu0 %v949_v41 }
 0x4d5   : > { %932 = vadd.xlane.f32.xlu1 %v931_v38 }
 0x4d9   : > { %941 = vadd.xlane.f32.xlu1 %v940_v10 }
 0x4dd   : > { %947 = vadd.xlane.f32.xlu1 %v946_v53 }
 0x4e8   : > { %v1415_v9 = vpop.permute.xlu1 %1414 }
 0x4e9   : > { %v1448_v29 = vsub.f32 %v5225_v58, %v1415_v9  ;;  %v1410_v15 = vpop.permute.xlu0 %1409 }
 0x4ea   : > { %v1447_v21 = vsub.f32 %v5229_v60, %v1410_v15 }
 0x4eb   : > { %v1457_v28 = vmul.f32 1.442695, %v1448_v29 }
 0x4ec   : > { %v1455_v41 = vmul.f32 1.442695, %v1447_v21 }
 0x4ed   : > { %4526 = vpow2.f32 %v1457_v28  ;;  %v1420_v46 = vpop.permute.xlu1 %1419  ;;  %v1425_v48 = vpop.permute.xlu0 %1424 }
 0x4ee   : > { %4528 = vpow2.f32 %v1455_v41  ;;  %v1449_v44 = vsub.f32 %v5241_v54, %v1420_v46  ;;  %v1450_v19 = vsub.f32 %v5237_v49, %v1425_v48 }
 0x4f0   : > { %v1459_v38 = vmul.f32 1.442695, %v1449_v44  ;;  %v1461_v10 = vmul.f32 1.442695, %v1450_v19 }
 0x4f1   : > { %v1430_v31 = vpop.permute.xlu1 %1429  ;;  %v1435_v53 = vpop.permute.xlu0 %1434 }
 0x4f2   : > { %4530 = vpow2.f32 %v1459_v38  ;;  %v1451_v58 = vsub.f32 %v5253_v35, %v1430_v31  ;;  %v1452_v9 = vsub.f32 %v5249_v32, %v1435_v53 }
 0x4f3   : > { %4532 = vpow2.f32 %v1461_v10 }
 0x4f4   : > { %v1463_v60 = vmul.f32 1.442695, %v1451_v58  ;;  %v1465_v29 = vmul.f32 1.442695, %v1452_v9 }
 0x4f6   : > { %4534 = vpow2.f32 %v1463_v60 }
 0x4f7   : > { %v4527_v15 = vpop.eup %4526  ;;  %4536 = vpow2.f32 %v1465_v29 }
 0x4f8   : > { %v4529_v21 = vpop.eup %4528  ;;  %v1491_v54 = vsel %vm651_vm1, %v4527_v15, 0.0 }
 0x4f9   : > { %1492 = vadd.xlane.f32.xlu1 %v1491_v54  ;;  %4305 = vmatprep.mubr.msk.f32.mxu1 %vm651_vm1, %v4529_v21  ;;  %v1488_v49 = vsel %vm651_vm1, %v4529_v21, 0.0 }
 0x4fa   : > { %1489 = vadd.xlane.f32.xlu0 %v1488_v49 }
 0x4fb   : > { %v2007_v28 = vpop.permute.xlu0 %2006 }
 0x4fc   : > { %v4531_v41 = vpop.eup %4530  ;;  %v2040_v35 = vsub.f32 %v5265_v42, %v2007_v28  ;;  %v2002_v32 = vpop.permute.xlu1 %2001 }
 0x4fd   : > { %v2039_v46 = vsub.f32 %v5267_v43, %v2002_v32  ;;  %v1494_v48 = vsel %vm651_vm1, %v4531_v41, 0.0  ;;  %v4533_v44 = vpop.eup %4532 }
 0x4fe   : > { %1495 = vadd.xlane.f32.xlu0 %v1494_v48  ;;  %v2049_v19 = vmul.f32 1.442695, %v2040_v35  ;;  %v1497_v53 = vsel %vm651_vm1, %v4533_v44, 0.0 }
 0x4ff   : > { %v2047_v38 = vmul.f32 1.442695, %v2039_v46 }
 0x500   : > { %v4535_v10 = vpop.eup %4534 }
 0x501   : > { %4538 = vpow2.f32 %v2047_v38  ;;  %v1500_v31 = vsel %vm651_vm1, %v4535_v10, 0.0  ;;  %v4537_v58 = vpop.eup %4536 }
 0x502   : > { %1501 = vadd.xlane.f32.xlu1 %v1500_v31  ;;  %1498 = vadd.xlane.f32.xlu0 %v1497_v53  ;;  %4540 = vpow2.f32 %v2049_v19  ;;  %v1503_v9 = vsel %vm651_vm1, %v4537_v58, 0.0 }
 0x503   : > { %v1445_v42 = vpop.permute.xlu0 %1444 }
 0x504   : > { %v1454_v60 = vsub.f32 %v5261_v39, %v1445_v42 }
 0x506   : > { %1504 = vadd.xlane.f32.xlu0 %v1503_v9  ;;  %v1469_v46 = vmul.f32 1.442695, %v1454_v60 }
 0x507   : > { %v1587_v43 = vpop.permute.xlu0 %1586 }
 0x508   : > { %4303 = vmatprep.subr.mxu1 %v1587_v43 }
 0x509   : > { %4304 = vmatpush3.msra.mxu1 %v1587_v43 }
 0x50a   : > { %4306 = vmatmul.mubr.msk.f32.vlgmr.msra.gmra.mrb[26].mxu1 %vm651_vm1, %v4527_v15 }
 0x50b   : > { %v4539_v29 = vpop.eup %4538  ;;  %4308 = vmatprep.mubr.msk.f32.mxu1 %vm651_vm1, %v4531_v41  ;;  %v2022_v21 = vpop.permute.xlu0 %2021 }
 0x50c   : > { %v2043_v54 = vsub.f32 %v5283_v1, %v2022_v21  ;;  %v1440_v49 = vpop.permute.xlu1 %1439  ;;  %v2080_v28 = vsel %vm651_vm1, %v4539_v29, 0.0  ;;  %v5611_v35 = vpop.eup %4540 }
 0x50d   : > { %v1453_v32 = vsub.f32 %v5263_v40, %v1440_v49  ;;  %2081 = vadd.xlane.f32.xlu0 %v2080_v28  ;;  %v2083_v1 = vsel %vm651_vm1, %v5611_v35, 0.0 }
 0x50e   : > { %v2055_v48 = vmul.f32 1.442695, %v2043_v54  ;;  %4309 = vmatmul.mubr.msk.f32.gmra.mrb[28].mxu1 %vm651_vm1, %v4533_v44 }
 0x50f   : > { %v1467_v39 = vmul.f32 1.442695, %v1453_v32  ;;  %4311 = vmatprep.mubr.msk.f32.mxu1 %vm651_vm1, %v4535_v10  ;;  %v2032_v15 = vpop.permute.xlu0 %2031 }
 0x510   : > { %4542 = vpow2.f32 %v2055_v48  ;;  %v2012_v41 = vpop.permute.xlu1 %2011  ;;  %v2045_v10 = vsub.f32 %v5291_v34, %v2032_v15 }
 0x511   : > { %4544 = vpow2.f32 %v1467_v39  ;;  %v2041_v19 = vsub.f32 %v5275_v51, %v2012_v41  ;;  %2084 = vadd.xlane.f32.xlu0 %v2083_v1 }
 0x512   : > { %4546 = vpow2.f32 %v1469_v46  ;;  %4312 = vmatmul.mubr.msk.f32.gmra.mrb[30].mxu1 %vm651_vm1, %v4537_v58  ;;  %v2059_v51 = vmul.f32 1.442695, %v2045_v10 }
 0x513   : > { %v2051_v40 = vmul.f32 1.442695, %v2041_v19  ;;  %v2594_v44 = vpop.permute.xlu0 %2593 }
 0x514   : > { %v2017_v38 = vpop.permute.xlu1 %2016  ;;  %v2631_v34 = vsub.f32 %v5301_v55, %v2594_v44 }
 0x515   : > { %4548 = vpow2.f32 %v2051_v40  ;;  %v2042_v31 = vsub.f32 %v5273_v50, %v2017_v38 }
 0x516   : > { %v2639_v41 = vmul.f32 1.442695, %v2631_v34 }
 0x517   : > { %v2053_v53 = vmul.f32 1.442695, %v2042_v31  ;;  %v2604_v21 = vpop.permute.xlu0 %2603 }
 0x518   : > { %v2027_v42 = vpop.permute.xlu1 %2026 }
 0x519   : > { %4550 = vpow2.f32 %v2053_v53  ;;  %v2044_v9 = vsub.f32 %v5281_v56, %v2027_v42 }
 0x51a   : > { %v4543_v43 = vpop.eup %4542 }
 0x51b   : > { %v5623_v60 = vpop.eup %4544  ;;  %v2057_v54 = vmul.f32 1.442695, %v2044_v9  ;;  %v2092_v58 = vsel %vm651_vm1, %v4543_v43, 0.0  ;;  %v2609_v39 = vpop.permute.xlu0 %2608 }
 0x51c   : > { %v5626_v49 = vpop.eup %4546  ;;  %v2037_v28 = vpop.permute.xlu1 %2036  ;;  %4314 = vmatprep.mubr.msk.f32.mxu1 %vm651_vm1, %v5623_v60  ;;  %2093 = vadd.xlane.f32.xlu1 %v2092_v58  ;;  %v2634_v40 = vsub.f32 %v5305_v18, %v2609_v39 }
 0x51d   : > { %4552 = vpow2.f32 %v2057_v54  ;;  %v2046_v50 = vsub.f32 %v5289_v30, %v2037_v28  ;;  %4315 = vmatmul.mubr.msk.f32.gmra.mrb[32].mxu1 %vm651_vm1, %v5626_v49 }
 0x51e   : > { %4333 = vmatprep.mubr.msk.f32.mxu1 %vm651_vm1, %v4539_v29  ;;  %4554 = vpow2.f32 %v2059_v51  ;;  %v2633_v29 = vsub.f32 %v5309_v24, %v2604_v21  ;;  %v2645_v42 = vmul.f32 1.442695, %v2634_v40 }
 0x51f   : > { %v4549_v56 = vpop.eup %4548  ;;  %v2061_v32 = vmul.f32 1.442695, %v2046_v50  ;;  %v2619_v38 = vpop.permute.xlu0 %2618 }
 0x520   : > { %v2599_v46 = vpop.permute.xlu1 %2598  ;;  %v2086_v48 = vsel %vm651_vm1, %v4549_v56, 0.0  ;;  %v2643_v53 = vmul.f32 1.442695, %v2633_v29  ;;  %v2636_v18 = vsub.f32 %v5313_v17, %v2619_v38  ;;  %v6282_v38 = vsub.f32 %v5021_v63, %v5032_v4 }
 0x521   : > { %2087 = vadd.xlane.f32.xlu0 %v2086_v48  ;;  %4556 = vpow2.f32 %v2061_v32  ;;  %v2632_v30 = vsub.f32 %v5297_v47, %v2599_v46 }
 0x522   : > { %4558 = vpow2.f32 %v2639_v41  ;;  %v2649_v28 = vmul.f32 1.442695, %v2636_v18 }
 0x523   : > { %v4551_v15 = vpop.eup %4550  ;;  %v2641_v44 = vmul.f32 1.442695, %v2632_v30  ;;  %v2629_v54 = vpop.permute.xlu0 %2628 }
 0x524   : > { %v2179_v1 = vpop.permute.xlu1 %2178  ;;  %v2089_v19 = vsel %vm651_vm1, %v4551_v15, 0.0  ;;  %v2638_v50 = vsub.f32 %v5321_v27, %v2629_v54 }
 0x525   : > { %2090 = vadd.xlane.f32.xlu0 %v2089_v19  ;;  %4331 = vmatprep.subr.mxu1 %v2179_v1  ;;  %4560 = vpow2.f32 %v2641_v44  ;;  %v6281_v19 = vsub.f32 %v5014_v59, %v5017_v61  ;;  %v836_v44 = vmul.f32 1.442695, %v6282_v38  ;;  %v6283_v59 = vsub.f32 %v5034_v5, %v5050_v11  ;;  %v913_v38 = vld [vmem:[#allocation5 + $0x8] sm:$0xff] }
 0x526   : > { %4332 = vmatpush3.msra.mxu1 %v2179_v1  ;;  %4562 = vpow2.f32 %v2643_v53 }
 0x527   : > { %v4553_v55 = vpop.eup %4552  ;;  %4334 = vmatmul.mubr.msk.f32.vlgmr.msra.gmra.mrb[34].mxu1 %vm651_vm1, %v5611_v35  ;;  %4564 = vpow2.f32 %v2645_v42  ;;  %v832_v29 = vmul.f32 1.442695, %v6281_v19  ;;  %v838_v61 = vmul.f32 1.442695, %v6283_v59  ;;  %v6285_v42 = vsub.f32 %v5076_v22, %v5090_v26 }
 0x528   : > { %v2614_v31 = vpop.permute.xlu1 %2613  ;;  %4336 = vmatprep.mubr.msk.f32.mxu1 %vm651_vm1, %v4549_v56  ;;  %v2095_v47 = vsel %vm651_vm1, %v4553_v55, 0.0  ;;  %v4555_v10 = vpop.eup %4554 }
 0x529   : > { %v2635_v24 = vsub.f32 %v5317_v7, %v2614_v31  ;;  %2096 = vadd.xlane.f32.xlu0 %v2095_v47  ;;  %v2098_v35 = vsel %vm651_vm1, %v4555_v10, 0.0  ;;  %v846_v18 = vmul.f32 1.442695, %v6285_v42 }
 0x52b   : > { %4337 = vmatmul.mubr.msk.f32.gmra.mrb[36].mxu1 %vm651_vm1, %v4551_v15  ;;  %v2647_v9 = vmul.f32 1.442695, %v2635_v24  ;;  %v4557_v21 = vpop.eup %4556  ;;  %v912_v24 = vld [vmem:[#allocation5] sm:$0xff] }
 0x52c   : > { %v2624_v51 = vpop.permute.xlu1 %2623  ;;  %4339 = vmatprep.mubr.msk.f32.mxu1 %vm651_vm1, %v4543_v43  ;;  %v2101_v17 = vsel %vm651_vm1, %v4557_v21, 0.0  ;;  %v4559_v56 = vpop.eup %4558 }
 0x52d   : > { %v2637_v58 = vsub.f32 %v5325_v23, %v2624_v51  ;;  %2099 = vadd.xlane.f32.xlu0 %v2098_v35  ;;  %4566 = vpow2.f32 %v2647_v9  ;;  %v2653_v23 = vmul.f32 1.442695, %v2638_v50  ;;  %v2672_v34 = vsel %vm651_vm1, %v4559_v56, 0.0  ;;  %v6289_v50 = vld [vmem:[#allocation17_spill] sm:$0xff] }
 0x52e   : > { %v6286_v9 = vsub.f32 %v5019_v62, %v5029_v3  ;;  %v915_v3 = vld [vmem:[#allocation5 + $0x18] sm:$0xff] }
 0x52f   : > { %v2651_v7 = vmul.f32 1.442695, %v2637_v58  ;;  %4340 = vmatmul.mubr.msk.f32.gmra.mrb[38].mxu1 %vm651_vm1, %v4553_v55  ;;  %v4561_v27 = vpop.eup %4560  ;;  %v6288_v58 = vsub.f32 %v5036_v6, %v5053_v12  ;;  %v917_v12 = vld [vmem:[#allocation5 + $0x28] sm:$0xff] }
 0x530   : > { %4342 = vmatprep.mubr.msk.f32.mxu1 %vm651_vm1, %v4555_v10  ;;  %v2771_v43 = vpop.permute.xlu1 %2770  ;;  %v4563_v32 = vpop.eup %4562  ;;  %v2675_v46 = vsel %vm651_vm1, %v4561_v27, 0.0  ;;  %v6284_v10 = vsub.f32 %v5055_v13, %v5071_v20  ;;  %v834_v51 = vmul.f32 1.442695, %v6286_v9  ;;  %v914_v13 = vld [vmem:[#allocation5 + $0x10] sm:$0xff] }
 0x531   : > { %4568 = vpow2.f32 %v2651_v7  ;;  %2102 = vadd.xlane.f32.xlu0 %v2101_v17  ;;  %4359 = vmatprep.subr.mxu1 %v2771_v43  ;;  %v4565_v48 = vpop.eup %4564  ;;  %v2678_v30 = vsel %vm651_vm1, %v4563_v32, 0.0  ;;  %v840_v7 = vmul.f32 1.442695, %v6288_v58  ;;  %v6290_v17 = vld [vmem:[#allocation18_spill] sm:$0xff] }
 0x532   : > { %4360 = vmatpush3.msra.mxu1 %v2771_v43  ;;  %4570 = vpow2.f32 %v2649_v28  ;;  %v2681_v55 = vsel %vm651_vm1, %v4565_v48, 0.0  ;;  %v842_v53 = vmul.f32 1.442695, %v6284_v10  ;;  %v6291_v43 = vsub.f32 %v6289_v50, %v6290_v17  ;;  %v6301_v10 = vld [vmem:[#allocation20_spill] sm:$0xff] }
 0x533   : > { %4343 = vmatmul.mubr.msk.f32.gmra.mrb[40].mxu1 %vm651_vm1, %v4557_v21  ;;  %4572 = vpow2.f32 %v2653_v23  ;;  %v6287_v21 = vsub.f32 %v5335_v8, %v5341_v25  ;;  %v6292_v23 = vld [vmem:[#allocation7_spill] sm:$0xff] }
 0x534   : > { %4361 = vmatprep.mubr.msk.f32.mxu1 %vm651_vm1, %v4559_v56  ;;  %4574 = vpow2.f32 %v832_v29  ;;  %v1393_v56 = vmul.f32 1.442695, %v6291_v43  ;;  %v919_v29 = vld [vmem:[#allocation5 + $0x38] sm:$0xff] }
 0x535   : > { %2673 = vadd.xlane.f32.xlu0 %v2672_v34  ;;  %4576 = vpow2.f32 %v836_v44  ;;  %v1391_v54 = vmul.f32 1.442695, %v6287_v21  ;;  %v6293_v34 = vld [vmem:[#allocation8_spill] sm:$0xff] }
 0x536   : > { %4578 = vpow2.f32 %v838_v61  ;;  %v6298_v44 = vld [vmem:[#allocation24_spill] sm:$0xff] }
 0x537   : > { %4362 = vmatmul.mubr.msk.f32.vlgmr.msra.gmra.mrb[42].mxu1 %vm651_vm1, %v4561_v27  ;;  %v4567_v39 = vpop.eup %4566  ;;  %4580 = vpow2.f32 %v842_v53  ;;  %v6294_v27 = vsub.f32 %v6292_v23, %v6293_v34  ;;  %v6302_v53 = vld [vmem:[#allocation22_spill] sm:$0xff]  ;;  %v1473_v23 = vld [vmem:[#allocation5 + $0x48] sm:$0xff]  ;;  %v1472_v34 = vld [vmem:[#allocation5 + $0x40] sm:$0xff] }
 0x538   : > { %4364 = vmatprep.mubr.msk.f32.mxu1 %vm651_vm1, %v4563_v32  ;;  %v2684_v31 = vsel %vm651_vm1, %v4567_v39, 0.0  ;;  %4582 = vpow2.f32 %v846_v18 }
 0x539   : > { %2676 = vadd.xlane.f32.xlu0 %v2675_v46  ;;  %4584 = vpow2.f32 %v834_v51  ;;  %v844_v32 = vmul.f32 1.442695, %v6294_v27  ;;  %v916_v51 = vld [vmem:[#allocation5 + $0x20] sm:$0xff] }
 0x53a   : > { %4586 = vpow2.f32 %v1391_v54 }
 0x53b   : > { %v4569_v15 = vpop.eup %4568  ;;  %4365 = vmatmul.mubr.msk.f32.gmra.mrb[44].mxu1 %vm651_vm1, %v4565_v48  ;;  %4588 = vpow2.f32 %v840_v7  ;;  %v6295_v48 = vld [vmem:[#allocation19_spill] sm:$0xff] }
 0x53c   : > { %4367 = vmatprep.mubr.msk.f32.mxu1 %vm651_vm1, %v4567_v39  ;;  %v2690_v41 = vsel %vm651_vm1, %v4569_v15, 0.0  ;;  %v4571_v1 = vpop.eup %4570  ;;  %4590 = vpow2.f32 %v1393_v56  ;;  %v6296_v39 = vld [vmem:[#allocation21_spill] sm:$0xff] }
 0x53d   : > { %2691 = vadd.xlane.f32.xlu1 %v2690_v41  ;;  %2679 = vadd.xlane.f32.xlu0 %v2678_v30  ;;  %v4573_v40 = vpop.eup %4572  ;;  %v2687_v47 = vsel %vm651_vm1, %v4571_v1, 0.0  ;;  %4592 = vpow2.f32 %v844_v32 }
 0x53e   : > { %v4575_v63 = vpop.eup %4574  ;;  %v2693_v4 = vsel %vm651_vm1, %v4573_v40, 0.0 }
 0x53f   : > { %4368 = vmatmul.mubr.msk.f32.gmra.mrb[46].mxu1 %vm651_vm1, %v4571_v1  ;;  %v920_v5 = vmul.f32 %v4575_v63, %v912_v24  ;;  %v4577_v11 = vpop.eup %4576 }
 0x540   : > { %4370 = vmatprep.mubr.msk.f32.mxu1 %vm651_vm1, %v4569_v15  ;;  %v922_v22 = vmul.f32 %v4577_v11, %v914_v13  ;;  %v4579_v26 = vpop.eup %4578  ;;  %v6297_v15 = vsub.f32 %v6295_v48, %v6296_v39  ;;  %v6304_v13 = vld [vmem:[#allocation23_spill] sm:$0xff]  ;;  %v1474_v48 = vld [vmem:[#allocation5 + $0x50] sm:$0xff]  ;;  %v6307_v39 = vld [vmem:[#allocation28_spill] sm:$0xff] }
 0x541   : > { %2682 = vadd.xlane.f32.xlu0 %v2681_v55  ;;  %v923_v8 = vmul.f32 %v4579_v26, %v915_v3  ;;  %v4581_v25 = vpop.eup %4580 }
 0x542   : > { %v1397_v41 = vmul.f32 1.442695, %v6297_v15  ;;  %v925_v30 = vmul.f32 %v4581_v25, %v917_v12  ;;  %v4583_v1 = vpop.eup %4582  ;;  %v6308_v15 = vld [vmem:[#allocation30_spill] sm:$0xff] }
 0x543   : > { %4371 = vmatmul.mubr.msk.f32.gmra.mrb[48].mxu1 %vm651_vm1, %v4573_v40  ;;  %v4585_v40 = vpop.eup %4584 }
 0x544   : > { %4594 = vpow2.f32 %v1397_v41  ;;  %v4587_v42 = vpop.eup %4586  ;;  %v6309_v41 = vsub.f32 %v6307_v39, %v6308_v15 }
 0x545   : > { %2685 = vadd.xlane.f32.xlu0 %v2684_v31  ;;  %v6299_v31 = vld [vmem:[#allocation26_spill] sm:$0xff] }
 0x546   : > { %v6300_v59 = vsub.f32 %v6298_v44, %v6299_v31  ;;  %v6311_v44 = vld [vmem:[#allocation29_spill] sm:$0xff] }
 0x548   : > { %v1399_v61 = vmul.f32 1.442695, %v6300_v59 }
 0x549   : > { %2688 = vadd.xlane.f32.xlu0 %v2687_v47  ;;  %v927_v47 = vmul.f32 %v4583_v1, %v919_v29 }
 0x54a   : > { %4596 = vpow2.f32 %v1399_v61 }
 0x54d   : > { %2694 = vadd.xlane.f32.xlu0 %v2693_v4 }
 0x54e   : > { %979 = vperm.xlu1 %4509, %v4575_v63   ;;  %v6303_v63 = vsub.f32 %v6301_v10, %v6302_v53 }
 0x550   : > { %v930_v35 = vpop.xlane.xlu0 %929  ;;  %v1395_v4 = vmul.f32 1.442695, %v6303_v63 }
 0x551   : > { %v952_v20 = vadd.f32 %v930_v35, %v920_v5  ;;  %v921_v5 = vmul.f32 %v4585_v40, %v913_v38  ;;  %v6310_v38 = vld [vmem:[#allocation27_spill] sm:$0xff] }
 0x552   : > { %989 = vperm.xlu1 %4509, %v4577_v11   ;;  %v4589_v11 = vpop.eup %4588  ;;  %4598 = vpow2.f32 %v1395_v4  ;;  %v6312_v31 = vsub.f32 %v6310_v38, %v6311_v44  ;;  %v1477_v4 = vld [vmem:[#allocation5 + $0x68] sm:$0xff] }
 0x553   : > { %961 = vst.msk [vmem:[#allocation5] sm:$0xff] %vm577_vm2, %v952_v20  ;;  %v6305_v20 = vld [vmem:[#allocation25_spill] sm:$0xff] }
 0x554   : > { %v936_v62 = vpop.xlane.xlu0 %935  ;;  %v6306_v21 = vsub.f32 %v6304_v13, %v6305_v20  ;;  %v1985_v59 = vmul.f32 1.442695, %v6312_v31  ;;  %v6314_v13 = vld [vmem:[#allocation37_spill] sm:$0xff]  ;;  %v2067_v31 = vld [vmem:[#allocation5 + $0x98] sm:$0xff] }
 0x555   : > { %v954_v28 = vadd.f32 %v936_v62, %v922_v22  ;;  %v4591_v22 = vpop.eup %4590  ;;  %v918_v62 = vld [vmem:[#allocation5 + $0x30] sm:$0xff] }
 0x556   : > { %994 = vperm.xlu1 %4509, %v4579_v26   ;;  %v1401_v54 = vmul.f32 1.442695, %v6306_v21  ;;  %v924_v26 = vmul.f32 %v4589_v11, %v916_v51  ;;  %v4593_v58 = vpop.eup %4592  ;;  %v1481_v27 = vmul.f32 %v4591_v22, %v1473_v23  ;;  %v2064_v51 = vld [vmem:[#allocation5 + $0x80] sm:$0xff] }
 0x557   : > { %963 = vst.msk [vmem:[#allocation5 + $0x10] sm:$0xff] %vm577_vm2, %v954_v28  ;;  %v4595_v28 = vpop.eup %4594  ;;  %v926_v50 = vmul.f32 %v4593_v58, %v918_v62  ;;  %v6316_v62 = vld [vmem:[#allocation32_spill] sm:$0xff] }
 0x558   : > { %v939_v6 = vpop.xlane.xlu0 %938  ;;  %4600 = vpow2.f32 %v1401_v54  ;;  %v4597_v56 = vpop.eup %4596 }
 0x559   : > { %v955_v46 = vadd.f32 %v939_v6, %v923_v8  ;;  %v1480_v6 = vmul.f32 %v4587_v42, %v1472_v34  ;;  %v6321_v34 = vld [vmem:[#allocation38_spill] sm:$0xff] }
 0x55a   : > { %1004 = vperm.xlu1 %4509, %v4581_v25  }
 0x55b   : > { %964 = vst.msk [vmem:[#allocation5 + $0x18] sm:$0xff] %vm577_vm2, %v955_v46 }
 0x55c   : > { %v945_v19 = vpop.xlane.xlu0 %944  ;;  %v4599_v8 = vpop.eup %4598 }
 0x55d   : > { %v957_v55 = vadd.f32 %v945_v19, %v925_v30  ;;  %v1983_v30 = vmul.f32 1.442695, %v6309_v41  ;;  %v1482_v19 = vmul.f32 %v4599_v8, %v1474_v48  ;;  %v6324_v48 = vld [vmem:[#allocation40_spill] sm:$0xff] }
 0x55e   : > { %1014 = vperm.xlu1 %4509, %v4583_v1  }
 0x55f   : > { %966 = vst.msk [vmem:[#allocation5 + $0x28] sm:$0xff] %vm577_vm2, %v957_v55  ;;  %v1476_v55 = vld [vmem:[#allocation5 + $0x60] sm:$0xff]  ;;  %4602 = vpow2.f32 %v1983_v30 }
 0x560   : > { %v951_v24 = vpop.xlane.xlu0 %950  ;;  %4604 = vpow2.f32 %v1985_v59 }
 0x561   : > { %v959_v18 = vadd.f32 %v951_v24, %v927_v47  ;;  %v1484_v47 = vmul.f32 %v4597_v56, %v1476_v55 }
 0x562   : > { %v933_v9 = vpop.xlane.xlu1 %932  ;;  %1538 = vperm.xlu1 %4509, %v4587_v42   ;;  %v4601_v25 = vpop.eup %4600 }
 0x563   : > { %968 = vst.msk [vmem:[#allocation5 + $0x38] sm:$0xff] %vm577_vm2, %v959_v18  ;;  %v953_v35 = vadd.f32 %v933_v9, %v921_v5  ;;  %984 = vperm.xlu0 %4508, %v4585_v40   ;;  %v1475_v40 = vld [vmem:[#allocation5 + $0x58] sm:$0xff]  ;;  %v1485_v18 = vmul.f32 %v4601_v25, %v1477_v4 }
 0x564   : > { %v1483_v10 = vmul.f32 %v4595_v28, %v1475_v40 }
 0x565   : > { %962 = vst.msk [vmem:[#allocation5 + $0x8] sm:$0xff] %vm577_vm2, %v953_v35  ;;  %v6313_v35 = vld [vmem:[#allocation35_spill] sm:$0xff] }
 0x566   : > { %v942_v7 = vpop.xlane.xlu1 %941  ;;  %1543 = vperm.xlu1 %4509, %v4591_v22   ;;  %v6315_v20 = vsub.f32 %v6313_v35, %v6314_v13 }
 0x567   : > { %v956_v3 = vadd.f32 %v942_v7, %v924_v26  ;;  %999 = vperm.xlu0 %4508, %v4589_v11  }
 0x568   : > { %v1991_v21 = vmul.f32 1.442695, %v6315_v20  ;;  %v2070_v20 = vld [vmem:[#allocation5 + $0xb0] sm:$0xff] }
 0x569   : > { %965 = vst.msk [vmem:[#allocation5 + $0x20] sm:$0xff] %vm577_vm2, %v956_v3  ;;  %v5732_v9 = vpop.eup %4602  ;;  %v6317_v3 = vld [vmem:[#allocation33_spill] sm:$0xff] }
 0x56a   : > { %v948_v17 = vpop.xlane.xlu1 %947  ;;  %1553 = vperm.xlu1 %4509, %v4595_v28   ;;  %v2072_v54 = vmul.f32 %v5732_v9, %v2064_v51  ;;  %v5739_v22 = vpop.eup %4604  ;;  %4606 = vpow2.f32 %v1991_v21  ;;  %v6318_v28 = vsub.f32 %v6316_v62, %v6317_v3  ;;  %v6333_v21 = vld [vmem:[#allocation48_spill] sm:$0xff]  ;;  %v6336_v62 = vsub.f32 %v5546_v14, %v5557_v16 }
 0x56b   : > { %v958_v43 = vadd.f32 %v948_v17, %v926_v50  ;;  %1009 = vperm.xlu0 %4508, %v4593_v58   ;;  %v2065_v58 = vld [vmem:[#allocation5 + $0x88] sm:$0xff] }
 0x56c   : > { %v1987_v50 = vmul.f32 1.442695, %v6318_v28  ;;  %v2073_v17 = vmul.f32 %v5739_v22, %v2065_v58 }
 0x56d   : > { %967 = vst.msk [vmem:[#allocation5 + $0x30] sm:$0xff] %vm577_vm2, %v958_v43 }
 0x56e   : > { %1558 = vperm.xlu1 %4509, %v4597_v56   ;;  %4608 = vpow2.f32 %v1987_v50 }
 0x56f   : > { %1548 = vperm.xlu0 %4508, %v4599_v8   ;;  %v6319_v8 = vld [vmem:[#allocation31_spill] sm:$0xff] }
 0x573   : > { %1563 = vperm.xlu0 %4508, %v4601_v25   ;;  %v6320_v25 = vsub.f32 %v6319_v8, %v5418_v0 }
 0x575   : > { %v1989_v23 = vmul.f32 1.442695, %v6320_v25 }
 0x577   : > { %4610 = vpow2.f32 %v1989_v23 }
 0x586   : > { %v1493_v32 = vpop.xlane.xlu1 %1492 }
 0x587   : > { %v1513_v12 = vadd.f32 %v1493_v32, %v1481_v27  ;;  %v1490_v46 = vpop.xlane.xlu0 %1489  ;;  %v6322_v27 = vsub.f32 %v6321_v34, %v5455_v57  ;;  %v2656_v34 = vld [vmem:[#allocation5 + $0xc0] sm:$0xff] }
 0x588   : > { %v1512_v1 = vadd.f32 %v1490_v46, %v1480_v6  ;;  %v5753_v6 = vpop.eup %4606  ;;  %v6323_v46 = vld [vmem:[#allocation39_spill] sm:$0xff] }
 0x589   : > { %1521 = vst.msk [vmem:[#allocation5 + $0x48] sm:$0xff] %vm577_vm2, %v1513_v12  ;;  %v1993_v32 = vmul.f32 1.442695, %v6322_v27  ;;  %v2068_v12 = vld [vmem:[#allocation5 + $0xa0] sm:$0xff]  ;;  %v6325_v39 = vsub.f32 %v6323_v46, %v6324_v48  ;;  %v5759_v30 = vpop.eup %4608 }
 0x58a   : > { %1520 = vst.msk [vmem:[#allocation5 + $0x40] sm:$0xff] %vm577_vm2, %v1512_v1  ;;  %v2076_v41 = vmul.f32 %v5753_v6, %v2068_v12  ;;  %v5766_v38 = vpop.eup %4610 }
 0x58b   : > { %v1496_v29 = vpop.xlane.xlu0 %1495  ;;  %4612 = vpow2.f32 %v1993_v32  ;;  %v1995_v15 = vmul.f32 1.442695, %v6325_v39  ;;  %v6339_v32 = vsub.f32 %v5526_v37, %v5537_v2  ;;  %v2657_v39 = vld [vmem:[#allocation5 + $0xc8] sm:$0xff] }
 0x58c   : > { %v1514_v61 = vadd.f32 %v1496_v29, %v1482_v19  ;;  %v2066_v19 = vld [vmem:[#allocation5 + $0x90] sm:$0xff] }
 0x58d   : > { %4614 = vpow2.f32 %v1995_v15  ;;  %v6326_v29 = vld [vmem:[#allocation41_spill] sm:$0xff]  ;;  %v2074_v40 = vmul.f32 %v5759_v30, %v2066_v19  ;;  %v2583_v12 = vmul.f32 1.442695, %v6339_v32 }
 0x58e   : > { %1522 = vst.msk [vmem:[#allocation5 + $0x50] sm:$0xff] %vm577_vm2, %v1514_v61  ;;  %v6327_v57 = vsub.f32 %v6326_v29, %v5474_v33  ;;  %v6328_v61 = vld [vmem:[#allocation45_spill] sm:$0xff] }
 0x58f   : > { %v1502_v53 = vpop.xlane.xlu1 %1501  ;;  %v1499_v63 = vpop.xlane.xlu0 %1498 }
 0x590   : > { %v1516_v24 = vadd.f32 %v1502_v53, %v1484_v47  ;;  %v1515_v42 = vadd.f32 %v1499_v63, %v1483_v10  ;;  %v1997_v55 = vmul.f32 1.442695, %v6327_v57  ;;  %v6329_v47 = vld [vmem:[#allocation46_spill] sm:$0xff]  ;;  %v2075_v63 = vmul.f32 %v5766_v38, %v2067_v31  ;;  %v2662_v57 = vld [vmem:[#allocation5 + $0xf0] sm:$0xff]  ;;  %v6343_v31 = vld [vmem:[#allocation52_spill] sm:$0xff] }
 0x591   : > { %v6330_v10 = vsub.f32 %v6328_v61, %v6329_v47 }
 0x592   : > { %1524 = vst.msk [vmem:[#allocation5 + $0x60] sm:$0xff] %vm577_vm2, %v1516_v24  ;;  %1523 = vst.msk [vmem:[#allocation5 + $0x58] sm:$0xff] %vm577_vm2, %v1515_v42  ;;  %4616 = vpow2.f32 %v1997_v55  ;;  %v2069_v24 = vld [vmem:[#allocation5 + $0xa8] sm:$0xff]  ;;  %v2658_v55 = vld [vmem:[#allocation5 + $0xd0] sm:$0xff] }
 0x593   : > { %v1505_v5 = vpop.xlane.xlu0 %1504  ;;  %v2575_v53 = vmul.f32 1.442695, %v6330_v10 }
 0x594   : > { %v1517_v11 = vadd.f32 %v1505_v5, %v1485_v18  ;;  %v6331_v18 = vld [vmem:[#allocation44_spill] sm:$0xff] }
 0x595   : > { %v5773_v33 = vpop.eup %4612  ;;  %v6332_v5 = vsub.f32 %v6331_v18, %v5494_v52  ;;  %4618 = vpow2.f32 %v2575_v53  ;;  %v2587_v52 = vmul.f32 1.442695, %v6336_v62  ;;  %v969_v18 = vld [vmem:[#allocation3] sm:$0xff] }
 0x596   : > { %1525 = vst.msk [vmem:[#allocation5 + $0x68] sm:$0xff] %vm577_vm2, %v1517_v11  ;;  %v2077_v51 = vmul.f32 %v5773_v33, %v2069_v24 }
 0x597   : > { %v2577_v11 = vmul.f32 1.442695, %v6332_v5  ;;  %v5780_v35 = vpop.eup %4614 }
 0x598   : > { %v2078_v3 = vmul.f32 %v5780_v35, %v2070_v20  ;;  %v2660_v20 = vld [vmem:[#allocation5 + $0xe0] sm:$0xff] }
 0x599   : > { %4620 = vpow2.f32 %v2577_v11 }
 0x59a   : > { %v2082_v26 = vpop.xlane.xlu0 %2081 }
 0x59b   : > { %v2104_v7 = vadd.f32 %v2082_v26, %v2072_v54  ;;  %v6334_v54 = vld [vmem:[#allocation49_spill] sm:$0xff] }
 0x59c   : > { %v6335_v26 = vsub.f32 %v6333_v21, %v6334_v54  ;;  %v5790_v28 = vpop.eup %4616 }
 0x59d   : > { %2112 = vst.msk [vmem:[#allocation5 + $0x80] sm:$0xff] %vm577_vm2, %v2104_v7 }
 0x59e   : > { %v2085_v43 = vpop.xlane.xlu0 %2084  ;;  %v2579_v58 = vmul.f32 1.442695, %v6335_v26  ;;  %v971_v26 = vld [vmem:[#allocation3 + $0x10] sm:$0xff] }
 0x59f   : > { %v2105_v56 = vadd.f32 %v2085_v43, %v2073_v17  ;;  %v2071_v17 = vld [vmem:[#allocation5 + $0xb8] sm:$0xff]  ;;  %v5797_v14 = vpop.eup %4618 }
 0x5a0   : > { %4622 = vpow2.f32 %v2579_v58  ;;  %v2079_v16 = vmul.f32 %v5790_v28, %v2071_v17  ;;  %v6345_v58 = vld [vmem:[#allocation10_spill] sm:$0xff]  ;;  %v2661_v17 = vld [vmem:[#allocation5 + $0xe8] sm:$0xff] }
 0x5a1   : > { %2113 = vst.msk [vmem:[#allocation5 + $0x88] sm:$0xff] %vm577_vm2, %v2105_v56  ;;  %v6337_v56 = vld [vmem:[#allocation47_spill] sm:$0xff]  ;;  %4624 = vpow2.f32 %v2587_v52 }
 0x5a2   : > { %v6338_v8 = vsub.f32 %v6337_v56, %v5514_v45  ;;  %v2664_v45 = vmul.f32 %v5797_v14, %v2656_v34 }
 0x5a3   : > { %v5804_v46 = vpop.eup %4620 }
 0x5a4   : > { %v2581_v25 = vmul.f32 1.442695, %v6338_v8  ;;  %v2665_v2 = vmul.f32 %v5804_v46, %v2657_v39  ;;  %v972_v8 = vld [vmem:[#allocation3 + $0x18] sm:$0xff]  ;;  %v974_v39 = vld [vmem:[#allocation3 + $0x28] sm:$0xff] }
 0x5a6   : > { %4626 = vpow2.f32 %v2581_v25  ;;  %v6346_v25 = vld [vmem:[#allocation12_spill] sm:$0xff] }
 0x5a7   : > { %4628 = vpow2.f32 %v2583_v12  ;;  %v2663_v12 = vld [vmem:[#allocation5 + $0xf8] sm:$0xff] }
 0x5a9   : > { %v2094_v0 = vpop.xlane.xlu1 %2093 }
 0x5aa   : > { %v2108_v1 = vadd.f32 %v2094_v0, %v2076_v41  ;;  %v6340_v41 = vld [vmem:[#allocation50_spill] sm:$0xff]  ;;  %v5809_v19 = vpop.eup %4622 }
 0x5ab   : > { %v6341_v0 = vsub.f32 %v6340_v41, %v5534_v36  ;;  %v5813_v37 = vpop.eup %4624  ;;  %v2666_v47 = vmul.f32 %v5809_v19, %v2658_v55  ;;  %v976_v55 = vld [vmem:[#allocation3 + $0x38] sm:$0xff] }
 0x5ac   : > { %2116 = vst.msk [vmem:[#allocation5 + $0xa0] sm:$0xff] %vm577_vm2, %v2108_v1  ;;  %v2670_v36 = vmul.f32 %v5813_v37, %v2662_v57 }
 0x5ad   : > { %v2585_v1 = vmul.f32 1.442695, %v6341_v0 }
 0x5ae   : > { %v2088_v44 = vpop.xlane.xlu0 %2087 }
 0x5af   : > { %v2106_v59 = vadd.f32 %v2088_v44, %v2074_v40  ;;  %4630 = vpow2.f32 %v2585_v1  ;;  %v6342_v44 = vld [vmem:[#allocation51_spill] sm:$0xff] }
 0x5b0   : > { %v5821_v10 = vpop.eup %4626 }
 0x5b1   : > { %2114 = vst.msk [vmem:[#allocation5 + $0x90] sm:$0xff] %vm577_vm2, %v2106_v59  ;;  %v6344_v59 = vsub.f32 %v6342_v44, %v6343_v31  ;;  %v5826_v11 = vpop.eup %4628 }
 0x5b2   : > { %v2091_v4 = vpop.xlane.xlu0 %2090  ;;  %v2668_v62 = vmul.f32 %v5826_v11, %v2660_v20 }
 0x5b3   : > { %v2107_v42 = vadd.f32 %v2091_v4, %v2075_v63  ;;  %v2589_v61 = vmul.f32 1.442695, %v6344_v59  ;;  %v2659_v4 = vld [vmem:[#allocation5 + $0xd8] sm:$0xff] }
 0x5b4   : > { %v2667_v5 = vmul.f32 %v5821_v10, %v2659_v4  ;;  %v970_v4 = vld [vmem:[#allocation3 + $0x8] sm:$0xff] }
 0x5b5   : > { %2115 = vst.msk [vmem:[#allocation5 + $0x98] sm:$0xff] %vm577_vm2, %v2107_v42  ;;  %4632 = vpow2.f32 %v2589_v61 }
 0x5b6   : > { %v2097_v13 = vpop.xlane.xlu0 %2096 }
 0x5b7   : > { %v2109_v7 = vadd.f32 %v2097_v13, %v2077_v51 }
 0x5b9   : > { %2117 = vst.msk [vmem:[#allocation5 + $0xa8] sm:$0xff] %vm577_vm2, %v2109_v7  ;;  %v5831_v52 = vpop.eup %4630 }
 0x5ba   : > { %v2100_v50 = vpop.xlane.xlu0 %2099 }
 0x5bb   : > { %v2110_v43 = vadd.f32 %v2100_v50, %v2078_v3 }
 0x5bd   : > { %2118 = vst.msk [vmem:[#allocation5 + $0xb0] sm:$0xff] %vm577_vm2, %v2110_v43 }
 0x5be   : > { %v2103_v23 = vpop.xlane.xlu0 %2102 }
 0x5bf   : > { %v2111_v27 = vadd.f32 %v2103_v23, %v2079_v16  ;;  %v2669_v23 = vmul.f32 %v5831_v52, %v2661_v17  ;;  %v5837_v34 = vpop.eup %4632 }
 0x5c0   : > { %v2671_v0 = vmul.f32 %v5837_v34, %v2663_v12 }
 0x5c1   : > { %2119 = vst.msk [vmem:[#allocation5 + $0xb8] sm:$0xff] %vm577_vm2, %v2111_v27 }
 0x5c2   : > { %v2674_v48 = vpop.xlane.xlu0 %2673 }
 0x5c3   : > { %v2696_v15 = vadd.f32 %v2674_v48, %v2664_v45 }
 0x5c5   : > { %2704 = vst.msk [vmem:[#allocation5 + $0xc0] sm:$0xff] %vm577_vm2, %v2696_v15  ;;  %v6347_v15 = vld [vmem:[#allocation11_spill] sm:$0xff] }
 0x5c6   : > { %v2677_v29 = vpop.xlane.xlu0 %2676 }
 0x5c7   : > { %v2697_v40 = vadd.f32 %v2677_v29, %v2665_v2 }
 0x5c9   : > { %2705 = vst.msk [vmem:[#allocation5 + $0xc8] sm:$0xff] %vm577_vm2, %v2697_v40  ;;  %v6348_v40 = vld [vmem:[#allocation13_spill] sm:$0xff] }
 0x5ca   : > { %v2692_v53 = vpop.xlane.xlu1 %2691  ;;  %v2680_v63 = vpop.xlane.xlu0 %2679 }
 0x5cb   : > { %v2702_v24 = vadd.f32 %v2692_v53, %v2670_v36  ;;  %v2698_v42 = vadd.f32 %v2680_v63, %v2666_v47  ;;  %v6349_v47 = vld [vmem:[#allocation15_spill] sm:$0xff] }
 0x5cd   : > { %2710 = vst.msk [vmem:[#allocation5 + $0xf0] sm:$0xff] %vm577_vm2, %v2702_v24  ;;  %2706 = vst.msk [vmem:[#allocation5 + $0xd0] sm:$0xff] %vm577_vm2, %v2698_v42 }
 0x5ce   : > { %v980_v51 = vpop.permute.xlu1 %979  ;;  %v2683_v13 = vpop.xlane.xlu0 %2682 }
 0x5cf   : > { %v1017_v21 = vmul.f32 %v980_v51, %v969_v18  ;;  %v2699_v54 = vadd.f32 %v2683_v13, %v2667_v5  ;;  %v973_v51 = vld [vmem:[#allocation3 + $0x20] sm:$0xff]  ;;  %v6350_v13 = vld [vmem:[#allocation9_spill] sm:$0xff] }
 0x5d1   : > { %v1159_v7 = vadd.f32 %v6345_v58, %v1017_v21  ;;  %2707 = vst.msk [vmem:[#allocation5 + $0xd8] sm:$0xff] %vm577_vm2, %v2699_v54  ;;  %v6351_v58 = vld [vmem:[#allocation14_spill] sm:$0xff] }
 0x5d2   : > { %v990_v3 = vpop.permute.xlu1 %989  ;;  %v2686_v50 = vpop.xlane.xlu0 %2685 }
 0x5d3   : > { %1167 = vst.msk [vmem:[#allocation3] sm:$0xff] %vm651_vm1, %v1159_v7  ;;  %v1019_v43 = vmul.f32 %v990_v3, %v971_v26  ;;  %v2700_v56 = vadd.f32 %v2686_v50, %v2668_v62  ;;  %v6352_v3 = vld [vmem:[#allocation16_spill] sm:$0xff] }
 0x5d5   : > { %v1161_v16 = vadd.f32 %v6346_v25, %v1019_v43  ;;  %2708 = vst.msk [vmem:[#allocation5 + $0xe0] sm:$0xff] %vm577_vm2, %v2700_v56  ;;  %v6353_v43 = vld [vmem:[#allocation34_spill] sm:$0xff] }
 0x5d6   : > { %v995_v27 = vpop.permute.xlu1 %994  ;;  %v2689_v32 = vpop.xlane.xlu0 %2688  ;;  %v6356_v25 = vld [vmem:[#allocation42_spill] sm:$0xff] }
 0x5d7   : > { %1169 = vst.msk [vmem:[#allocation3 + $0x10] sm:$0xff] %vm651_vm1, %v1161_v16  ;;  %v1020_v45 = vmul.f32 %v995_v27, %v972_v8  ;;  %v2701_v48 = vadd.f32 %v2689_v32, %v2669_v23 }
 0x5d9   : > { %v1162_v41 = vadd.f32 %v6347_v15, %v1020_v45  ;;  %2709 = vst.msk [vmem:[#allocation5 + $0xe8] sm:$0xff] %vm577_vm2, %v2701_v48 }
 0x5da   : > { %v1005_v1 = vpop.permute.xlu1 %1004  ;;  %v2695_v2 = vpop.xlane.xlu0 %2694 }
 0x5db   : > { %1170 = vst.msk [vmem:[#allocation3 + $0x18] sm:$0xff] %vm651_vm1, %v1162_v41  ;;  %v1022_v29 = vmul.f32 %v1005_v1, %v974_v39  ;;  %v2703_v57 = vadd.f32 %v2695_v2, %v2671_v0 }
 0x5dd   : > { %v1164_v44 = vadd.f32 %v6348_v40, %v1022_v29  ;;  %2711 = vst.msk [vmem:[#allocation5 + $0xf8] sm:$0xff] %vm577_vm2, %v2703_v57  ;;  %v4307_v31 = vpop.f32.mrb[26].mxu1  ;;  %v1509_v29 = vsel %vm651_vm1, %v5626_v49, 0.0  ;;  %v3179_v40 = vld [vmem:[#allocation5 + $0x40] sm:$0xff] }
 0x5de   : > { %v1679_v59 = vpop.f32.mrb[27].mxu1  ;;  %v1015_v61 = vpop.permute.xlu1 %1014  ;;  %1728 = vrot.lane.b32.xlu0 %v4307_v31, %s4752_s21  ;;  %v1506_v31 = vsel %vm651_vm1, %v5623_v60, 0.0  ;;  %v3180_v60 = vld [vmem:[#allocation5 + $0x48] sm:$0xff] }
 0x5df   : > { %1172 = vst.msk [vmem:[#allocation3 + $0x28] sm:$0xff] %vm651_vm1, %v1164_v44  ;;  %v1024_v36 = vmul.f32 %v1015_v61, %v976_v55  ;;  %1726 = vrot.lane.b32.xlu1 %v1679_v59, %s4752_s21 }
 0x5e1   : > { %v1166_v53 = vadd.f32 %v6349_v47, %v1024_v36  ;;  %v4310_v63 = vpop.f32.mrb[28].mxu1  ;;  %v3181_v47 = vld [vmem:[#allocation5 + $0x50] sm:$0xff] }
 0x5e2   : > { %v1689_v24 = vpop.f32.mrb[29].mxu1  ;;  %2130 = vperm.xlu0 %4508, %v5732_v9   ;;  %v985_v42 = vpop.permute.xlu0 %984  ;;  %v975_v9 = vld [vmem:[#allocation3 + $0x30] sm:$0xff] }
 0x5e3   : > { %1174 = vst.msk [vmem:[#allocation3 + $0x38] sm:$0xff] %vm651_vm1, %v1166_v53  ;;  %2135 = vperm.xlu1 %4509, %v5739_v22   ;;  %v1018_v18 = vmul.f32 %v985_v42, %v970_v4  ;;  %v1539_v49 = vpop.permute.xlu1 %1538 }
 0x5e5   : > { %v4313_v5 = vpop.f32.mrb[30].mxu1  ;;  %v1160_v20 = vadd.f32 %v6350_v13, %v1018_v18 }
 0x5e6   : > { %v1699_v21 = vpop.f32.mrb[31].mxu1  ;;  %1730 = vrot.lane.b32.xlu0 %v1689_v24, %s4752_s21  ;;  %v1000_v54 = vpop.permute.xlu0 %999 }
 0x5e7   : > { %2140 = vperm.xlu1 %4509, %v5759_v30   ;;  %1168 = vst.msk [vmem:[#allocation3 + $0x8] sm:$0xff] %vm651_vm1, %v1160_v20  ;;  %v1021_v26 = vmul.f32 %v1000_v54, %v973_v51  ;;  %v1544_v59 = vpop.permute.xlu1 %1543 }
 0x5e9   : > { %v1163_v7 = vadd.f32 %v6351_v58, %v1021_v26  ;;  %v1530_v26 = vld [vmem:[#allocation3 + $0x10] sm:$0xff] }
 0x5ea   : > { %1732 = vrot.lane.b32.xlu0 %v4310_v63, %s4752_s21  ;;  %v1010_v22 = vpop.permute.xlu0 %1009  ;;  %v1528_v63 = vld [vmem:[#allocation3] sm:$0xff] }
 0x5eb   : > { %2145 = vperm.xlu1 %4509, %v5766_v38   ;;  %1171 = vst.msk [vmem:[#allocation3 + $0x20] sm:$0xff] %vm651_vm1, %v1163_v7  ;;  %v1023_v62 = vmul.f32 %v1010_v22, %v975_v9  ;;  %v6354_v38 = vld [vmem:[#allocation36_spill] sm:$0xff]  ;;  %v1554_v36 = vpop.permute.xlu1 %1553  ;;  %v1576_v24 = vmul.f32 %v1539_v49, %v1528_v63  ;;  %v1531_v22 = vld [vmem:[#allocation3 + $0x18] sm:$0xff] }
 0x5ec   : > { %v6355_v56 = vsub.f32 %v6353_v43, %v6354_v38 }
 0x5ed   : > { %v1165_v50 = vadd.f32 %v6352_v3, %v1023_v62  ;;  %v1579_v62 = vmul.f32 %v1554_v36, %v1531_v22 }
 0x5ee   : > { %1734 = vrot.lane.b32.xlu0 %v1699_v21, %s4752_s21  ;;  %v1405_v8 = vmul.f32 1.442695, %v6355_v56  ;;  %v1549_v61 = vpop.permute.xlu0 %1548  ;;  %v1529_v53 = vld [vmem:[#allocation3 + $0x8] sm:$0xff] }
 0x5ef   : > { %2150 = vperm.xlu1 %4509, %v5753_v6   ;;  %1173 = vst.msk [vmem:[#allocation3 + $0x30] sm:$0xff] %vm651_vm1, %v1165_v50  ;;  %v6357_v6 = vld [vmem:[#allocation43_spill] sm:$0xff]  ;;  %v1577_v4 = vmul.f32 %v1544_v59, %v1529_v53  ;;  %v1578_v9 = vmul.f32 %v1549_v61, %v1530_v26 }
 0x5f0   : > { %v5865_v30 = vpop.f32.mrb[32].mxu1  ;;  %4634 = vpow2.f32 %v1405_v8  ;;  %v6358_v16 = vsub.f32 %v6356_v25, %v6357_v6  ;;  %v1533_v8 = vld [vmem:[#allocation3 + $0x28] sm:$0xff] }
 0x5f1   : > { %v1709_v17 = vpop.f32.mrb[33].mxu1 }
 0x5f2   : > { %1736 = vrot.lane.b32.xlu0 %v4313_v5, %s4752_s21  ;;  %v1403_v23 = vmul.f32 1.442695, %v6358_v16  ;;  %v3182_v5 = vld [vmem:[#allocation5 + $0x58] sm:$0xff]  ;;  %v1532_v3 = vld [vmem:[#allocation3 + $0x20] sm:$0xff] }
 0x5f3   : > { %2155 = vperm.xlu1 %4509, %v5773_v33  }
 0x5f4   : > { %4636 = vpow2.f32 %v1403_v23 }
 0x5f5   : > { %4638 = vrcp.f32 %v3179_v40  ;;  %v1479_v40 = vld [vmem:[#allocation5 + $0x78] sm:$0xff] }
 0x5f6   : > { %2722 = vperm.xlu0 %4508, %v5797_v14   ;;  %4640 = vrcp.f32 %v3180_v60  ;;  %v1534_v36 = vld [vmem:[#allocation3 + $0x30] sm:$0xff] }
 0x5f7   : > { %2160 = vperm.xlu1 %4509, %v5780_v35   ;;  %4642 = vrcp.f32 %v3181_v47 }
 0x5f8   : > { %4644 = vrcp.f32 %v3182_v5 }
 0x5fa   : > { %v4335_v27 = vpop.f32.mrb[34].mxu1  ;;  %v5879_v45 = vpop.eup %4634 }
 0x5fb   : > { %v2271_v32 = vpop.f32.mrb[35].mxu1  ;;  %2165 = vperm.xlu1 %4509, %v5790_v28  }
 0x5fe   : > { %v4338_v12 = vpop.f32.mrb[36].mxu1  ;;  %v5882_v35 = vpop.eup %4636 }
 0x5ff   : > { %v2281_v33 = vpop.f32.mrb[37].mxu1  ;;  %2727 = vperm.xlu1 %4509, %v5804_v46   ;;  %v4639_v44 = vpop.eup %4638 }
 0x602   : > { %v4341_v48 = vpop.f32.mrb[38].mxu1 }
 0x603   : > { %v2291_v14 = vpop.f32.mrb[39].mxu1  ;;  %1573 = vperm.xlu1 %4509, %v5879_v45  }
 0x606   : > { %v5884_v39 = vpop.f32.mrb[40].mxu1 }
 0x607   : > { %1568 = vperm.xlu1 %4509, %v5882_v35   ;;  %v5887_v15 = vpop.f32.mrb[41].mxu1 }
 0x60a   : > { %v5889_v28 = vpop.f32.mrb[42].mxu1 }
 0x60b   : > { %v5891_v41 = vpop.f32.mrb[43].mxu1 }
 0x60e   : > { %v5893_v0 = vpop.f32.mrb[44].mxu1 }
 0x60f   : > { %v5895_v46 = vpop.f32.mrb[45].mxu1 }
 0x612   : > { %v5897_v1 = vpop.f32.mrb[46].mxu1 }
 0x613   : > { %v5899_v2 = vpop.f32.mrb[47].mxu1 }
 0x615   : > { %1510 = vadd.xlane.f32.xlu0 %v1509_v29 }
 0x616   : > { %v5903_v57 = vpop.f32.mrb[48].mxu1 }
 0x617   : > { %v5905_v55 = vpop.f32.mrb[49].mxu1 }
 0x62b   : > { %1507 = vadd.xlane.f32.xlu1 %v1506_v31  ;;  %3197 = vperm.xlu0 %4508, %v4639_v44   ;;  %v1487_v44 = vmul.f32 %v5879_v45, %v1479_v40  ;;  %v3615_v40 = vld [vmem:[#allocation5 + $0xc0] sm:$0xff] }
 0x62f   : > { %1738 = vrot.lane.b32.xlu0 %v1709_v17, %s4752_s21 }
 0x633   : > { %2320 = vrot.lane.b32.xlu0 %v4335_v27, %s4753_s23 }
 0x637   : > { %2318 = vrot.lane.b32.xlu0 %v2271_v32, %s4753_s23 }
 0x63b   : > { %2324 = vrot.lane.b32.xlu0 %v4338_v12, %s4753_s23 }
 0x63c   : > { %2732 = vperm.xlu1 %4509, %v5809_v19   ;;  %v1564_v19 = vpop.permute.xlu0 %1563 }
 0x63d   : > { %v1581_v25 = vmul.f32 %v1564_v19, %v1533_v8 }
 0x63f   : > { %2322 = vrot.lane.b32.xlu0 %v2281_v33, %s4753_s23 }
 0x640   : > { %2737 = vperm.xlu1 %4509, %v5821_v10   ;;  %v1559_v10 = vpop.permute.xlu1 %1558 }
 0x641   : > { %v1580_v43 = vmul.f32 %v1559_v10, %v1532_v3 }
 0x643   : > { %2328 = vrot.lane.b32.xlu0 %v4341_v48, %s4753_s23 }
 0x644   : > { %2742 = vperm.xlu1 %4509, %v5826_v11  }
 0x647   : > { %2326 = vrot.lane.b32.xlu0 %v2291_v14, %s4753_s23 }
 0x648   : > { %2747 = vperm.xlu1 %4509, %v5831_v52   ;;  %v4641_v52 = vpop.eup %4640 }
 0x649   : > { %v4643_v13 = vpop.eup %4642 }
 0x64a   : > { %v4645_v20 = vpop.eup %4644 }
 0x64c   : > { %2752 = vperm.xlu1 %4509, %v5813_v37   ;;  %v3183_v37 = vld [vmem:[#allocation5 + $0x60] sm:$0xff] }
 0x64d   : > { %4646 = vrcp.f32 %v3183_v37 }
 0x650   : > { %2757 = vperm.xlu1 %4509, %v5837_v34   ;;  %v1729_v11 = vpop.permute.xlu0 %1728  ;;  %v3184_v34 = vld [vmem:[#allocation5 + $0x68] sm:$0xff] }
 0x651   : > { %v1751_v42 = vadd.f32 %v1729_v11, %v1577_v4  ;;  %v1727_v18 = vpop.permute.xlu1 %1726  ;;  %4648 = vrcp.f32 %v3184_v34 }
 0x652   : > { %v1750_v51 = vadd.f32 %v1727_v18, %v1576_v24 }
 0x653   : > { %1760 = vst.msk [vmem:[#allocation3 + $0x8] sm:$0xff] %vm1758_vm3, %v1751_v42  ;;  %v1478_v42 = vld [vmem:[#allocation5 + $0x70] sm:$0xff] }
 0x654   : > { %1759 = vst.msk [vmem:[#allocation3] sm:$0xff] %vm1758_vm3, %v1750_v51  ;;  %3202 = vperm.xlu1 %4509, %v4641_v52  }
 0x657   : > { %v4647_v54 = vpop.eup %4646 }
 0x658   : > { %3207 = vperm.xlu1 %4509, %v4643_v13   ;;  %v1486_v13 = vmul.f32 %v5882_v35, %v1478_v42 }
 0x65a   : > { %v2121_v63 = vld [vmem:[#allocation3 + $0x8] sm:$0xff] }
 0x65b   : > { %v4649_v17 = vpop.eup %4648  ;;  %v2120_v11 = vld [vmem:[#allocation3] sm:$0xff] }
 0x65c   : > { %1740 = vrot.lane.b32.xlu1 %v5865_v30, %s4752_s21 }
 0x660   : > { %3212 = vperm.xlu1 %4509, %v4645_v20  }
 0x661   : > { %v2131_v21 = vpop.permute.xlu0 %2130 }
 0x662   : > { %v2136_v23 = vpop.permute.xlu1 %2135  ;;  %v2168_v18 = vmul.f32 %v2131_v21, %v2120_v11 }
 0x663   : > { %v2169_v4 = vmul.f32 %v2136_v23, %v2121_v63  ;;  %v3401_v23 = vld [vmem:[#allocation5 + $0xa0] sm:$0xff] }
 0x664   : > { %3217 = vperm.xlu1 %4509, %v4647_v54  }
 0x665   : > { %v1731_v58 = vpop.permute.xlu0 %1730 }
 0x666   : > { %v1752_v7 = vadd.f32 %v1731_v58, %v1578_v9  ;;  %v2141_v27 = vpop.permute.xlu1 %2140 }
 0x668   : > { %1761 = vst.msk [vmem:[#allocation3 + $0x10] sm:$0xff] %vm1758_vm3, %v1752_v7  ;;  %2332 = vrot.lane.b32.xlu1 %v5884_v39, %s4753_s23 }
 0x669   : > { %v1733_v50 = vpop.permute.xlu0 %1732 }
 0x66a   : > { %v1753_v30 = vadd.f32 %v1733_v50, %v1579_v62  ;;  %v2146_v32 = vpop.permute.xlu1 %2145 }
 0x66c   : > { %1762 = vst.msk [vmem:[#allocation3 + $0x18] sm:$0xff] %vm1758_vm3, %v1753_v30  ;;  %3222 = vperm.xlu1 %4509, %v4649_v17  }
 0x66d   : > { %v1735_v38 = vpop.permute.xlu0 %1734 }
 0x66e   : > { %v1754_v56 = vadd.f32 %v1735_v38, %v1580_v43  ;;  %v5932_v12 = vpop.permute.xlu1 %2150  ;;  %v3397_v38 = vld [vmem:[#allocation5 + $0x80] sm:$0xff] }
 0x66f   : > { %v2122_v26 = vld [vmem:[#allocation3 + $0x10] sm:$0xff] }
 0x670   : > { %1763 = vst.msk [vmem:[#allocation3 + $0x20] sm:$0xff] %vm1758_vm3, %v1754_v56  ;;  %v2170_v7 = vmul.f32 %v2141_v27, %v2122_v26 }
 0x671   : > { %v1737_v6 = vpop.permute.xlu0 %1736 }
 0x672   : > { %v1755_v16 = vadd.f32 %v1737_v6, %v1581_v25  ;;  %v2156_v33 = vpop.permute.xlu1 %2155  ;;  %v3399_v6 = vld [vmem:[#allocation5 + $0x90] sm:$0xff] }
 0x673   : > { %v2123_v5 = vld [vmem:[#allocation3 + $0x18] sm:$0xff] }
 0x674   : > { %1764 = vst.msk [vmem:[#allocation3 + $0x28] sm:$0xff] %vm1758_vm3, %v1755_v16  ;;  %v2171_v20 = vmul.f32 %v2146_v32, %v2123_v5  ;;  %v3403_v32 = vld [vmem:[#allocation5 + $0xb0] sm:$0xff] }
 0x675   : > { %v5938_v39 = vpop.permute.xlu0 %2722 }
 0x676   : > { %v5934_v48 = vpop.permute.xlu1 %2160 }
 0x677   : > { %v2124_v30 = vld [vmem:[#allocation3 + $0x20] sm:$0xff] }
 0x678   : > { %v2172_v8 = vmul.f32 %v5932_v12, %v2124_v30  ;;  %v3622_v30 = vld [vmem:[#allocation5 + $0xf8] sm:$0xff] }
 0x67a   : > { %v5936_v14 = vpop.permute.xlu1 %2165 }
 0x67b   : > { %v2125_v35 = vld [vmem:[#allocation3 + $0x28] sm:$0xff] }
 0x67c   : > { %v2173_v50 = vmul.f32 %v2156_v33, %v2125_v35 }
 0x67e   : > { %v5940_v29 = vpop.permute.xlu1 %2727 }
 0x682   : > { %v5943_v59 = vpop.permute.xlu1 %1573 }
 0x686   : > { %v1569_v60 = vpop.permute.xlu1 %1568 }
 0x687   : > { %v1582_v53 = vmul.f32 %v1569_v60, %v1534_v36  ;;  %v3402_v36 = vld [vmem:[#allocation5 + $0xa8] sm:$0xff] }
 0x6a2   : > { %v1511_v31 = vpop.xlane.xlu0 %1510 }
 0x6a3   : > { %v1519_v49 = vadd.f32 %v1511_v31, %v1487_v44  ;;  %v3400_v31 = vld [vmem:[#allocation5 + $0x98] sm:$0xff] }
 0x6a5   : > { %1527 = vst.msk [vmem:[#allocation5 + $0x78] sm:$0xff] %vm577_vm2, %v1519_v49  ;;  %v3617_v49 = vld [vmem:[#allocation5 + $0xd0] sm:$0xff] }
 0x6aa   : > { %v5946_v61 = vpop.permute.xlu0 %3197 }
 0x6ac   : > { %v3186_v47 = vld [vmem:[#allocation5 + $0x78] sm:$0xff] }
 0x6ad   : > { %4650 = vrcp.f32 %v3186_v47  ;;  %v1535_v47 = vld [vmem:[#allocation3 + $0x38] sm:$0xff] }
 0x6ae   : > { %v1739_v19 = vpop.permute.xlu0 %1738 }
 0x6af   : > { %v1756_v10 = vadd.f32 %v1739_v19, %v1582_v53  ;;  %v1583_v53 = vmul.f32 %v5943_v59, %v1535_v47  ;;  %v3616_v59 = vld [vmem:[#allocation5 + $0xc8] sm:$0xff] }
 0x6b1   : > { %1765 = vst.msk [vmem:[#allocation3 + $0x30] sm:$0xff] %vm1758_vm3, %v1756_v10 }
 0x6b2   : > { %v2321_v45 = vpop.permute.xlu0 %2320 }
 0x6b3   : > { %v2343_v24 = vadd.f32 %v2321_v45, %v2169_v4  ;;  %v3404_v4 = vld [vmem:[#allocation5 + $0xb8] sm:$0xff] }
 0x6b5   : > { %2352 = vst.msk [vmem:[#allocation3 + $0x8] sm:$0xff] %vm2350_vm4, %v2343_v24 }
 0x6b6   : > { %v2319_v51 = vpop.permute.xlu0 %2318 }
 0x6b7   : > { %v4651_v52 = vpop.eup %4650  ;;  %v2342_v37 = vadd.f32 %v2319_v51, %v2168_v18  ;;  %v3618_v51 = vld [vmem:[#allocation5 + $0xd8] sm:$0xff] }
 0x6b8   : > { %v1508_v34 = vpop.xlane.xlu1 %1507  ;;  %3232 = vperm.xlu0 %4508, %v4651_v52  }
 0x6b9   : > { %2351 = vst.msk [vmem:[#allocation3] sm:$0xff] %vm2350_vm4, %v2342_v37  ;;  %v1518_v54 = vadd.f32 %v1508_v34, %v1486_v13  ;;  %v2973_v34 = vld [vmem:[#allocation5 + $0x10] sm:$0xff] }
 0x6ba   : > { %v2325_v9 = vpop.permute.xlu0 %2324 }
 0x6bb   : > { %1526 = vst.msk [vmem:[#allocation5 + $0x70] sm:$0xff] %vm577_vm2, %v1518_v54  ;;  %v2345_v58 = vadd.f32 %v2325_v9, %v2171_v20  ;;  %v3620_v9 = vld [vmem:[#allocation5 + $0xe8] sm:$0xff] }
 0x6bc   : > { %v5953_v21 = vpop.permute.xlu1 %2732  ;;  %2330 = vrot.lane.b32.xlu0 %v5887_v15, %s4753_s23 }
 0x6bd   : > { %2354 = vst.msk [vmem:[#allocation3 + $0x18] sm:$0xff] %vm2350_vm4, %v2345_v58 }
 0x6be   : > { %v2323_v22 = vpop.permute.xlu0 %2322 }
 0x6bf   : > { %v2344_v62 = vadd.f32 %v2323_v22, %v2170_v7  ;;  %v2975_v7 = vld [vmem:[#allocation5 + $0x20] sm:$0xff]  ;;  %v2972_v22 = vld [vmem:[#allocation5 + $0x8] sm:$0xff] }
 0x6c0   : > { %v5958_v3 = vpop.permute.xlu1 %2737  ;;  %2912 = vrot.lane.b32.xlu0 %v5889_v28, %s4754_s24 }
 0x6c1   : > { %2353 = vst.msk [vmem:[#allocation3 + $0x10] sm:$0xff] %vm2350_vm4, %v2344_v62 }
 0x6c2   : > { %v3185_v17 = vld [vmem:[#allocation5 + $0x70] sm:$0xff]  ;;  %v2329_v43 = vpop.permute.xlu0 %2328 }
 0x6c3   : > { %4652 = vrcp.f32 %v3185_v17  ;;  %v2347_v15 = vadd.f32 %v2329_v43, %v2173_v50 }
 0x6c4   : > { %v5963_v56 = vpop.permute.xlu1 %2742  ;;  %2910 = vrot.lane.b32.xlu0 %v5891_v41, %s4754_s24  ;;  %4654 = vrcp.f32 %v3397_v38 }
 0x6c5   : > { %2356 = vst.msk [vmem:[#allocation3 + $0x28] sm:$0xff] %vm2350_vm4, %v2347_v15  ;;  %4656 = vrcp.f32 %v3399_v6  ;;  %v2974_v15 = vld [vmem:[#allocation5 + $0x18] sm:$0xff]  ;;  %v3035_v6 = vld [vmem:[%s6192_s5] sm:$0xff] }
 0x6c6   : > { %v2327_v25 = vpop.permute.xlu0 %2326  ;;  %4658 = vrcp.f32 %v3401_v23  ;;  %4373 = vmatprep.subr.mxu0 %v3035_v6 }
 0x6c7   : > { %v2346_v28 = vadd.f32 %v2327_v25, %v2172_v8  ;;  %4660 = vrcp.f32 %v3403_v32  ;;  %v2976_v25 = vld [vmem:[#allocation5 + $0x28] sm:$0xff]  ;;  %4374 = vmatpush3.msra.mxu0 %v3035_v6 }
 0x6c8   : > { %v5969_v16 = vpop.permute.xlu1 %2747  ;;  %2916 = vrot.lane.b32.xlu0 %v5893_v0, %s4754_s24  ;;  %v3398_v0 = vld [vmem:[#allocation5 + $0x88] sm:$0xff] }
 0x6c9   : > { %2355 = vst.msk [vmem:[#allocation3 + $0x20] sm:$0xff] %vm2350_vm4, %v2346_v28  ;;  %4662 = vrcp.f32 %v3398_v0 }
 0x6ca   : > { %4664 = vrcp.f32 %v3615_v40 }
 0x6cb   : > { %4666 = vrcp.f32 %v3400_v31  ;;  %v2126_v31 = vld [vmem:[#allocation3 + $0x30] sm:$0xff] }
 0x6cc   : > { %v5974_v27 = vpop.permute.xlu1 %2752  ;;  %2914 = vrot.lane.b32.xlu0 %v5895_v46, %s4754_s24  ;;  %4668 = vrcp.f32 %v3617_v49  ;;  %v2174_v49 = vmul.f32 %v5934_v48, %v2126_v31 }
 0x6cd   : > { %v4653_v41 = vpop.eup %4652  ;;  %4670 = vrcp.f32 %v3402_v36  ;;  %v2713_v36 = vld [vmem:[#allocation3 + $0x8] sm:$0xff] }
 0x6ce   : > { %3227 = vperm.xlu1 %4509, %v4653_v41   ;;  %v4655_v33 = vpop.eup %4654  ;;  %v2978_v41 = vld [vmem:[#allocation5 + $0x38] sm:$0xff] }
 0x6cf   : > { %v4657_v46 = vpop.eup %4656 }
 0x6d0   : > { %v5978_v12 = vpop.permute.xlu1 %2757  ;;  %2920 = vrot.lane.b32.xlu0 %v5897_v1, %s4754_s24  ;;  %v4659_v1 = vpop.eup %4658 }
 0x6d1   : > { %v4661_v10 = vpop.eup %4660 }
 0x6d2   : > { %3415 = vperm.xlu1 %4509, %v4655_v33  }
 0x6d3   : > { %v4663_v45 = vpop.eup %4662 }
 0x6d4   : > { %v5982_v44 = vpop.permute.xlu1 %3202  ;;  %2918 = vrot.lane.b32.xlu0 %v5899_v2, %s4754_s24  ;;  %v3619_v2 = vld [vmem:[#allocation5 + $0xe0] sm:$0xff]  ;;  %v4665_v11 = vpop.eup %4664 }
 0x6d5   : > { %4672 = vrcp.f32 %v3619_v2  ;;  %v4667_v42 = vpop.eup %4666  ;;  %v6011_v2 = vld [vmem:[%s6192_s5 + $0x8] sm:$0xff] }
 0x6d6   : > { %3425 = vperm.xlu1 %4509, %v4657_v46   ;;  %4674 = vrcp.f32 %v3404_v4  ;;  %v4669_v5 = vpop.eup %4668  ;;  %4387 = vmatprep.subr.mxu0 %v6011_v2  ;;  %v2715_v4 = vld [vmem:[#allocation3 + $0x18] sm:$0xff] }
 0x6d7   : > { %v4671_v37 = vpop.eup %4670 }
 0x6d8   : > { %v5986_v60 = vpop.permute.xlu1 %3207  ;;  %2924 = vrot.lane.b32.xlu0 %v5903_v57, %s4754_s24  ;;  %v2971_v57 = vld [vmem:[#allocation5] sm:$0xff] }
 0x6d9   : > { %4676 = vrcp.f32 %v2971_v57 }
 0x6da   : > { %3435 = vperm.xlu1 %4509, %v4659_v1   ;;  %4678 = vrcp.f32 %v3616_v59  ;;  %v2714_v59 = vld [vmem:[#allocation3 + $0x10] sm:$0xff] }
 0x6dc   : > { %v1741_v19 = vpop.permute.xlu1 %1740  ;;  %2922 = vrot.lane.b32.xlu0 %v5905_v55, %s4754_s24  ;;  %v3621_v55 = vld [vmem:[#allocation5 + $0xf0] sm:$0xff] }
 0x6dd   : > { %v1757_v63 = vadd.f32 %v1741_v19, %v1583_v53  ;;  %4680 = vrcp.f32 %v3621_v55  ;;  %v2761_v53 = vmul.f32 %v5940_v29, %v2713_v36  ;;  %v2763_v29 = vmul.f32 %v5958_v3, %v2715_v4 }
 0x6de   : > { %3445 = vperm.xlu1 %4509, %v4661_v10   ;;  %4682 = vrcp.f32 %v3618_v51  ;;  %v2712_v10 = vld [vmem:[#allocation3] sm:$0xff]  ;;  %v2762_v51 = vmul.f32 %v5953_v21, %v2714_v59 }
 0x6df   : > { %1766 = vst.msk [vmem:[#allocation3 + $0x38] sm:$0xff] %vm1758_vm3, %v1757_v63  ;;  %v4673_v54 = vpop.eup %4672  ;;  %4684 = vrcp.f32 %v2973_v34  ;;  %v2760_v48 = vmul.f32 %v5938_v39, %v2712_v10  ;;  %v2716_v21 = vld [vmem:[#allocation3 + $0x20] sm:$0xff] }
 0x6e0   : > { %v5994_v24 = vpop.permute.xlu1 %3212  ;;  %3420 = vperm.xlu0 %4508, %v4663_v45   ;;  %v4675_v58 = vpop.eup %4674  ;;  %4686 = vrcp.f32 %v3620_v9 }
 0x6e1   : > { %4688 = vrcp.f32 %v2975_v7  ;;  %v2764_v7 = vmul.f32 %v5963_v56, %v2716_v21 }
 0x6e2   : > { %3633 = vperm.xlu1 %4509, %v4665_v11   ;;  %4690 = vrcp.f32 %v2972_v22 }
 0x6e3   : > { %v4677_v35 = vpop.eup %4676 }
 0x6e4   : > { %v5996_v18 = vpop.permute.xlu1 %3217  ;;  %3430 = vperm.xlu0 %4508, %v4667_v42   ;;  %v4679_v62 = vpop.eup %4678 }
 0x6e6   : > { %3643 = vperm.xlu1 %4509, %v4669_v5   ;;  %v2127_v52 = vld [vmem:[#allocation3 + $0x38] sm:$0xff] }
 0x6e7   : > { %v2175_v13 = vmul.f32 %v5936_v14, %v2127_v52  ;;  %v2977_v14 = vld [vmem:[#allocation5 + $0x30] sm:$0xff]  ;;  %v4681_v50 = vpop.eup %4680  ;;  %v2717_v52 = vld [vmem:[#allocation3 + $0x28] sm:$0xff] }
 0x6e8   : > { %v2333_v20 = vpop.permute.xlu1 %2332  ;;  %3440 = vperm.xlu0 %4508, %v4671_v37   ;;  %v4683_v17 = vpop.eup %4682  ;;  %4692 = vrcp.f32 %v2977_v14 }
 0x6e9   : > { %v2349_v26 = vadd.f32 %v2333_v20, %v2175_v13  ;;  %v4685_v43 = vpop.eup %4684  ;;  %4694 = vrcp.f32 %v3622_v30  ;;  %v2765_v20 = vmul.f32 %v5969_v16, %v2717_v52 }
 0x6ea   : > { %3653 = vperm.xlu1 %4509, %v4673_v54   ;;  %v4687_v38 = vpop.eup %4686  ;;  %4696 = vrcp.f32 %v2974_v15 }
 0x6eb   : > { %2358 = vst.msk [vmem:[#allocation3 + $0x38] sm:$0xff] %vm2350_vm4, %v2349_v26  ;;  %v4689_v8 = vpop.eup %4688  ;;  %4698 = vrcp.f32 %v2976_v25 }
 0x6ec   : > { %3450 = vperm.xlu0 %4508, %v4675_v58   ;;  %v4691_v28 = vpop.eup %4690  ;;  %4700 = vrcp.f32 %v2978_v41  ;;  %v3223_v55 = vpop.permute.xlu1 %3222 }
 0x6ee   : > { %2989 = vperm.xlu1 %4509, %v4677_v35  }
 0x6f0   : > { %3638 = vperm.xlu0 %4508, %v4679_v62  }
 0x6f2   : > { %3663 = vperm.xlu1 %4509, %v4681_v50   ;;  %v4693_v23 = vpop.eup %4692  ;;  %v2719_v22 = vld [vmem:[#allocation3 + $0x38] sm:$0xff] }
 0x6f3   : > { %v4695_v32 = vpop.eup %4694  ;;  %v2767_v50 = vmul.f32 %v5978_v12, %v2719_v22 }
 0x6f4   : > { %3648 = vperm.xlu0 %4508, %v4683_v17   ;;  %v4697_v33 = vpop.eup %4696 }
 0x6f5   : > { %v4699_v0 = vpop.eup %4698 }
 0x6f6   : > { %2999 = vperm.xlu1 %4509, %v4685_v43   ;;  %v4701_v40 = vpop.eup %4700 }
 0x6f8   : > { %3658 = vperm.xlu0 %4508, %v4687_v38  }
 0x6fa   : > { %3009 = vperm.xlu1 %4509, %v4689_v8  }
 0x6fc   : > { %2994 = vperm.xlu0 %4508, %v4691_v28  }
 0x6fe   : > { %3019 = vperm.xlu1 %4509, %v4693_v23  }
 0x700   : > { %3668 = vperm.xlu0 %4508, %v4695_v32  }
 0x704   : > { %3004 = vperm.xlu0 %4508, %v4697_v33  }
 0x708   : > { %3014 = vperm.xlu0 %4508, %v4699_v0  }
 0x70c   : > { %3024 = vperm.xlu0 %4508, %v4701_v40  }
 0x737   : > { %v6003_v46 = vpop.permute.xlu0 %3232 }
 0x73b   : > { %v2331_v1 = vpop.permute.xlu0 %2330 }
 0x73c   : > { %v2348_v47 = vadd.f32 %v2331_v1, %v2174_v49 }
 0x73e   : > { %2357 = vst.msk [vmem:[#allocation3 + $0x30] sm:$0xff] %vm2350_vm4, %v2348_v47 }
 0x73f   : > { %v2913_v19 = vpop.permute.xlu0 %2912 }
 0x740   : > { %v2935_v63 = vadd.f32 %v2913_v19, %v2761_v53 }
 0x742   : > { %2944 = vst.msk [vmem:[#allocation3 + $0x8] sm:$0xff] %vm2942_vm5, %v2935_v63 }
 0x743   : > { %v2911_v45 = vpop.permute.xlu0 %2910 }
 0x744   : > { %v2934_v57 = vadd.f32 %v2911_v45, %v2760_v48 }
 0x745   : > { %v2718_v56 = vld [vmem:[#allocation3 + $0x30] sm:$0xff] }
 0x746   : > { %2943 = vst.msk [vmem:[#allocation3] sm:$0xff] %vm2942_vm5, %v2934_v57  ;;  %v2766_v38 = vmul.f32 %v5974_v27, %v2718_v56 }
 0x747   : > { %v2917_v11 = vpop.permute.xlu0 %2916 }
 0x748   : > { %v2937_v42 = vadd.f32 %v2917_v11, %v2763_v29 }
 0x749   : > { %v6018_v5 = vld [vmem:[#allocation3 + $0x8] sm:$0xff] }
 0x74a   : > { %2946 = vst.msk [vmem:[#allocation3 + $0x18] sm:$0xff] %vm2942_vm5, %v2937_v42  ;;  %v3236_v39 = vmul.f32 %v5982_v44, %v6018_v5 }
 0x74b   : > { %v2915_v37 = vpop.permute.xlu0 %2914 }
 0x74c   : > { %v2936_v13 = vadd.f32 %v2915_v37, %v2762_v51  ;;  %3254 = vrot.lane.b32.xlu0 %v3236_v39, %s4745_s14 }
 0x74d   : > { %v3228_v3 = vpop.permute.xlu1 %3227  ;;  %v6025_v34 = vld [vmem:[#allocation3] sm:$0xff] }
 0x74e   : > { %2945 = vst.msk [vmem:[#allocation3 + $0x10] sm:$0xff] %vm2942_vm5, %v2936_v13  ;;  %v3235_v54 = vmul.f32 %v5946_v61, %v6025_v34 }
 0x74f   : > { %v2921_v26 = vpop.permute.xlu0 %2920 }
 0x750   : > { %v2939_v9 = vadd.f32 %v2921_v26, %v2765_v20  ;;  %3252 = vrot.lane.b32.xlu1 %v3235_v54, %s4745_s14 }
 0x751   : > { %v3416_v44 = vpop.permute.xlu1 %3415  ;;  %v6032_v58 = vld [vmem:[#allocation3 + $0x18] sm:$0xff] }
 0x752   : > { %2948 = vst.msk [vmem:[#allocation3 + $0x28] sm:$0xff] %vm2942_vm5, %v2939_v9  ;;  %v3238_v16 = vmul.f32 %v5994_v24, %v6032_v58  ;;  %v3453_v36 = vmul.f32 %v3416_v44, %v6025_v34 }
 0x753   : > { %v2919_v35 = vpop.permute.xlu0 %2918 }
 0x754   : > { %v2938_v62 = vadd.f32 %v2919_v35, %v2764_v7  ;;  %3258 = vrot.lane.b32.xlu0 %v3238_v16, %s4745_s14 }
 0x755   : > { %v3426_v61 = vpop.permute.xlu1 %3425  ;;  %v6039_v14 = vld [vmem:[#allocation3 + $0x10] sm:$0xff] }
 0x756   : > { %2947 = vst.msk [vmem:[#allocation3 + $0x20] sm:$0xff] %vm2942_vm5, %v2938_v62  ;;  %v3237_v30 = vmul.f32 %v5986_v60, %v6039_v14  ;;  %v3455_v19 = vmul.f32 %v3426_v61, %v6039_v14 }
 0x757   : > { %v2925_v17 = vpop.permute.xlu0 %2924 }
 0x758   : > { %v2941_v43 = vadd.f32 %v2925_v17, %v2767_v50  ;;  %3256 = vrot.lane.b32.xlu1 %v3237_v30, %s4745_s14  ;;  %v3679_v30 = vld [vmem:[%s6192_s5 + $0x18] sm:$0xff] }
 0x759   : > { %v3436_v24 = vpop.permute.xlu1 %3435  ;;  %v6046_v15 = vld [vmem:[#allocation3 + $0x28] sm:$0xff] }
 0x75a   : > { %2950 = vst.msk [vmem:[#allocation3 + $0x38] sm:$0xff] %vm2942_vm5, %v2941_v43  ;;  %v3240_v8 = vmul.f32 %v3223_v55, %v6046_v15 }
 0x75b   : > { %v2923_v25 = vpop.permute.xlu0 %2922 }
 0x75c   : > { %v2940_v28 = vadd.f32 %v2923_v25, %v2766_v38  ;;  %3262 = vrot.lane.b32.xlu0 %v3240_v8, %s4745_s14 }
 0x75d   : > { %v6052_v12 = vld [vmem:[#allocation3 + $0x20] sm:$0xff]  ;;  %v3446_v60 = vpop.permute.xlu1 %3445 }
 0x75e   : > { %2949 = vst.msk [vmem:[#allocation3 + $0x30] sm:$0xff] %vm2942_vm5, %v2940_v28  ;;  %v3239_v6 = vmul.f32 %v5996_v18, %v6052_v12  ;;  %v3457_v4 = vmul.f32 %v3436_v24, %v6052_v12 }
 0x75f   : > { %v3421_v23 = vpop.permute.xlu0 %3420 }
 0x760   : > { %3260 = vrot.lane.b32.xlu1 %v3239_v6, %s4745_s14  ;;  %v3454_v31 = vmul.f32 %v3421_v23, %v6018_v5 }
 0x761   : > { %v3634_v41 = vpop.permute.xlu1 %3633  ;;  %v6058_v32 = vld [vmem:[#allocation3 + $0x38] sm:$0xff] }
 0x762   : > { %v3242_v27 = vmul.f32 %v6003_v46, %v6058_v32  ;;  %v3671_v55 = vmul.f32 %v3634_v41, %v6025_v34 }
 0x763   : > { %v3431_v33 = vpop.permute.xlu0 %3430 }
 0x764   : > { %3266 = vrot.lane.b32.xlu0 %v3242_v27, %s4745_s14  ;;  %v3456_v46 = vmul.f32 %v3431_v33, %v6032_v58 }
 0x765   : > { %v6063_v0 = vld [vmem:[#allocation3 + $0x30] sm:$0xff]  ;;  %v3644_v40 = vpop.permute.xlu1 %3643 }
 0x766   : > { %v3241_v49 = vmul.f32 %v3228_v3, %v6063_v0  ;;  %v3459_v11 = vmul.f32 %v3446_v60, %v6063_v0  ;;  %v3461_v3 = vld [vmem:[%s6192_s5 + $0x10] sm:$0xff]  ;;  %v3673_v20 = vmul.f32 %v3644_v40, %v6039_v14 }
 0x767   : > { %v3441_v18 = vpop.permute.xlu0 %3440 }
 0x768   : > { %3264 = vrot.lane.b32.xlu1 %v3241_v49, %s4745_s14  ;;  %3472 = vrot.lane.b32.xlu0 %v3454_v31, %s4746_s15  ;;  %v3458_v63 = vmul.f32 %v3441_v18, %v6046_v15 }
 0x769   : > { %v3654_v1 = vpop.permute.xlu1 %3653 }
 0x76a   : > { %v3675_v26 = vmul.f32 %v3654_v1, %v6052_v12  ;;  %v4090_v1 = vld [vmem:[%s6193_s6] ss:$0 sm:$0xff] }
 0x76b   : > { %v3451_v47 = vpop.permute.xlu0 %3450 }
 0x76c   : > { %3470 = vrot.lane.b32.xlu1 %v3453_v36, %s4746_s15  ;;  %3476 = vrot.lane.b32.xlu0 %v3456_v46, %s4746_s15  ;;  %v3460_v45 = vmul.f32 %v3451_v47, %v6058_v32 }
 0x76d   : > { %v2990_v53 = vpop.permute.xlu1 %2989 }
 0x76e   : > { %v3027_v10 = vmul.f32 %v2990_v53, %v6025_v34 }
 0x76f   : > { %v3639_v48 = vpop.permute.xlu0 %3638 }
 0x770   : > { %4375 = vmatprep.mubr.msk.f32.mxu0 %vm651_vm1, %v3027_v10  ;;  %3474 = vrot.lane.b32.xlu1 %v3455_v19, %s4746_s15  ;;  %v3672_v59 = vmul.f32 %v3639_v48, %v6018_v5 }
 0x771   : > { %3480 = vrot.lane.b32.xlu0 %v3458_v63, %s4746_s15  ;;  %v3664_v29 = vpop.permute.xlu1 %3663 }
 0x773   : > { %v3649_v57 = vpop.permute.xlu0 %3648 }
 0x774   : > { %3478 = vrot.lane.b32.xlu1 %v3457_v4, %s4746_s15  ;;  %v3674_v39 = vmul.f32 %v3649_v57, %v6032_v58 }
 0x775   : > { %3484 = vrot.lane.b32.xlu0 %v3460_v45, %s4746_s15  ;;  %v3000_v51 = vpop.permute.xlu1 %2999 }
 0x776   : > { %v3029_v13 = vmul.f32 %v3000_v51, %v6039_v14 }
 0x777   : > { %v3659_v42 = vpop.permute.xlu0 %3658 }
 0x778   : > { %3482 = vrot.lane.b32.xlu1 %v3459_v11, %s4746_s15  ;;  %v3676_v34 = vmul.f32 %v3659_v42, %v6046_v15  ;;  %s3833_s15 = sld [smem:[#allocation6]] }
 0x779   : > { %3690 = vrot.lane.b32.xlu0 %v3672_v59, %s4748_s17 }
 0x77b   : > { %v2995_v52 = vpop.permute.xlu0 %2994 }
 0x77c   : > { %v3028_v37 = vmul.f32 %v2995_v52, %v6018_v5  ;;  %3688 = vrot.lane.b32.xlu1 %v3671_v55, %s4748_s17  ;;  %v3010_v5 = vpop.permute.xlu1 %3009 }
 0x77d   : > { %3694 = vrot.lane.b32.xlu0 %v3674_v39, %s4748_s17  ;;  %v3031_v7 = vmul.f32 %v3010_v5, %v6052_v12  ;;  %v4116_v5 = vld [vmem:[%s6195_s8] ss:$0 sm:$0xff] }
 0x77e   : > { %4376 = vmatmul.mubr.msk.f32.vlgmr.msra.gmra.mrb[22].mxu0 %vm651_vm1, %v3028_v37  ;;  %v3834_v46 = vstv %s3833_s15 }
 0x77f   : > { %4378 = vmatprep.mubr.msk.f32.mxu0 %vm651_vm1, %v3029_v13  ;;  %v3669_v54 = vpop.permute.xlu0 %3668  ;;  %4388 = vmatpush3.msra.mxu0 %v6011_v2  ;;  %v3677_v2 = vmul.f32 %v3664_v29, %v6063_v0  ;;  %v4115_v13 = vld [vmem:[%s6194_s7] ss:$0 sm:$0xff] }
 0x780   : > { %3692 = vrot.lane.b32.xlu1 %v3673_v20, %s4748_s17  ;;  %4401 = vmatprep.subr.mxu0 %v3461_v3  ;;  %v3678_v21 = vmul.f32 %v3669_v54, %v6058_v32  ;;  %v3020_v16 = vpop.permute.xlu1 %3019 }
 0x781   : > { %3698 = vrot.lane.b32.xlu0 %v3676_v34, %s4748_s17 }
 0x783   : > { %v3005_v9 = vpop.permute.xlu0 %3004 }
 0x784   : > { %v3030_v44 = vmul.f32 %v3005_v9, %v6032_v58  ;;  %3696 = vrot.lane.b32.xlu1 %v3675_v26, %s4748_s17  ;;  %v3033_v58 = vmul.f32 %v3020_v16, %v6063_v0 }
 0x785   : > { %3702 = vrot.lane.b32.xlu0 %v3678_v21, %s4748_s17 }
 0x786   : > { %4379 = vmatmul.mubr.msk.f32.gmra.mrb[24].mxu0 %vm651_vm1, %v3030_v44 }
 0x787   : > { %4381 = vmatprep.mubr.msk.f32.mxu0 %vm651_vm1, %v3031_v7  ;;  %v3015_v35 = vpop.permute.xlu0 %3014 }
 0x788   : > { %v3032_v22 = vmul.f32 %v3015_v35, %v6046_v15  ;;  %3700 = vrot.lane.b32.xlu1 %v3677_v2, %s4748_s17 }
 0x78a   : > { %4382 = vmatmul.mubr.msk.f32.gmra.mrb[26].mxu0 %vm651_vm1, %v3032_v22 }
 0x78b   : > { %4384 = vmatprep.mubr.msk.f32.mxu0 %vm651_vm1, %v3033_v58  ;;  %v3025_v62 = vpop.permute.xlu0 %3024 }
 0x78c   : > { %v3034_v61 = vmul.f32 %v3025_v62, %v6058_v32 }
 0x78e   : > { %4385 = vmatmul.mubr.msk.f32.gmra.mrb[28].mxu0 %vm651_vm1, %v3034_v61 }
 0x7be   : > { %v3255_v50 = vpop.permute.xlu0 %3254 }
 0x7c2   : > { %v3253_v14 = vpop.permute.xlu1 %3252 }
 0x7c3   : > { %4389 = vmatprep.mubr.msk.f32.mxu0 %vm651_vm1, %v3253_v14 }
 0x7c4   : > { %4390 = vmatmul.mubr.msk.f32.vlgmr.msra.gmra.mrb[22].mxu0 %vm651_vm1, %v3255_v50 }
 0x7c5   : > { %4402 = vmatpush3.msra.mxu0 %v3461_v3 }
 0x7c6   : > { %4415 = vmatprep.subr.mxu0 %v3679_v30  ;;  %v3259_v56 = vpop.permute.xlu0 %3258 }
 0x7ca   : > { %v3257_v17 = vpop.permute.xlu1 %3256 }
 0x7cb   : > { %4392 = vmatprep.mubr.msk.f32.mxu0 %vm651_vm1, %v3257_v17 }
 0x7cc   : > { %4393 = vmatmul.mubr.msk.f32.gmra.mrb[24].mxu0 %vm651_vm1, %v3259_v56 }
 0x7ce   : > { %v3263_v43 = vpop.permute.xlu0 %3262 }
 0x7d2   : > { %v3261_v24 = vpop.permute.xlu1 %3260 }
 0x7d3   : > { %4395 = vmatprep.mubr.msk.f32.mxu0 %vm651_vm1, %v3261_v24 }
 0x7d4   : > { %4396 = vmatmul.mubr.msk.f32.gmra.mrb[26].mxu0 %vm651_vm1, %v3263_v43 }
 0x7d6   : > { %v3267_v15 = vpop.permute.xlu0 %3266 }
 0x7da   : > { %v3265_v38 = vpop.permute.xlu1 %3264  ;;  %v3473_v8 = vpop.permute.xlu0 %3472 }
 0x7db   : > { %4398 = vmatprep.mubr.msk.f32.mxu0 %vm651_vm1, %v3265_v38 }
 0x7dc   : > { %4399 = vmatmul.mubr.msk.f32.gmra.mrb[28].mxu0 %vm651_vm1, %v3267_v15 }
 0x7de   : > { %v3471_v25 = vpop.permute.xlu1 %3470  ;;  %v3477_v28 = vpop.permute.xlu0 %3476 }
 0x7df   : > { %4403 = vmatprep.mubr.msk.f32.mxu0 %vm651_vm1, %v3471_v25 }
 0x7e0   : > { %4404 = vmatmul.mubr.msk.f32.vlgmr.msra.gmra.mrb[22].mxu0 %vm651_vm1, %v3473_v8 }
 0x7e1   : > { %4416 = vmatpush3.msra.mxu0 %v3679_v30 }
 0x7e2   : > { %v3475_v12 = vpop.permute.xlu1 %3474 }
 0x7e3   : > { %v3481_v60 = vpop.permute.xlu0 %3480  ;;  %4406 = vmatprep.mubr.msk.f32.mxu0 %vm651_vm1, %v3475_v12 }
 0x7e4   : > { %4407 = vmatmul.mubr.msk.f32.gmra.mrb[24].mxu0 %vm651_vm1, %v3477_v28 }
 0x7e6   : > { %v3479_v6 = vpop.permute.xlu1 %3478 }
 0x7e7   : > { %v3485_v23 = vpop.permute.xlu0 %3484  ;;  %4409 = vmatprep.mubr.msk.f32.mxu0 %vm651_vm1, %v3479_v6 }
 0x7e8   : > { %4410 = vmatmul.mubr.msk.f32.gmra.mrb[26].mxu0 %vm651_vm1, %v3481_v60 }
 0x7ea   : > { %v3483_v41 = vpop.permute.xlu1 %3482 }
 0x7eb   : > { %v3691_v32 = vpop.permute.xlu0 %3690  ;;  %4412 = vmatprep.mubr.msk.f32.mxu0 %vm651_vm1, %v3483_v41 }
 0x7ec   : > { %4413 = vmatmul.mubr.msk.f32.gmra.mrb[28].mxu0 %vm651_vm1, %v3485_v23 }
 0x7ee   : > { %v3689_v27 = vpop.permute.xlu1 %3688 }
 0x7ef   : > { %v3695_v33 = vpop.permute.xlu0 %3694  ;;  %4417 = vmatprep.mubr.msk.f32.mxu0 %vm651_vm1, %v3689_v27 }
 0x7f0   : > { %4418 = vmatmul.mubr.msk.f32.vlgmr.msra.gmra.mrb[22].mxu0 %vm651_vm1, %v3691_v32 }
 0x7f2   : > { %v3693_v0 = vpop.permute.xlu1 %3692 }
 0x7f3   : > { %4420 = vmatprep.mubr.msk.f32.mxu0 %vm651_vm1, %v3693_v0  ;;  %v3699_v40 = vpop.permute.xlu0 %3698 }
 0x7f4   : > { %4421 = vmatmul.mubr.msk.f32.gmra.mrb[24].mxu0 %vm651_vm1, %v3695_v33 }
 0x7f6   : > { %v3697_v31 = vpop.permute.xlu1 %3696 }
 0x7f7   : > { %4423 = vmatprep.mubr.msk.f32.mxu0 %vm651_vm1, %v3697_v31  ;;  %v3703_v18 = vpop.permute.xlu0 %3702 }
 0x7f8   : > { %4424 = vmatmul.mubr.msk.f32.gmra.mrb[26].mxu0 %vm651_vm1, %v3699_v40 }
 0x7fa   : > { %v3701_v49 = vpop.permute.xlu1 %3700 }
 0x7fb   : > { %4426 = vmatprep.mubr.msk.f32.mxu0 %vm651_vm1, %v3701_v49 }
 0x7fc   : > { %4427 = vmatmul.mubr.msk.f32.gmra.mrb[28].mxu0 %vm651_vm1, %v3703_v18 }
 0x8c3   : > { %v4419_v36 = vpop.f32.mrb[22].mxu0 }
 0x8c4   : > { %v4439_v47 = vadd.f32 %v4419_v36, %v4090_v1  ;;  %v3786_v53 = vpop.f32.mrb[23].mxu0 }
 0x8c5   : > { %v4440_v19 = vadd.f32 %v4090_v1, %v3786_v53 }
 0x8c6   : > { %v3836_v10 = vmul.f32 %v4439_v47, %v3834_v46 }
 0x8c7   : > { %v3835_v63 = vmul.f32 %v4440_v19, %v3834_v46  ;;  %v4422_v48 = vpop.f32.mrb[24].mxu0 }
 0x8c8   : > { %4702 = vtanh.f32 %v3836_v10  ;;  %v4441_v4 = vadd.f32 %v4422_v48, %v4090_v1  ;;  %v3796_v45 = vpop.f32.mrb[25].mxu0 }
 0x8c9   : > { %4704 = vtanh.f32 %v3835_v63  ;;  %v4442_v57 = vadd.f32 %v4090_v1, %v3796_v45 }
 0x8ca   : > { %v3838_v29 = vmul.f32 %v4441_v4, %v3834_v46 }
 0x8cb   : > { %v3837_v11 = vmul.f32 %v4442_v57, %v3834_v46  ;;  %v4425_v59 = vpop.f32.mrb[26].mxu0 }
 0x8cc   : > { %4706 = vtanh.f32 %v3838_v29  ;;  %v4443_v42 = vadd.f32 %v4425_v59, %v4090_v1  ;;  %v3806_v55 = vpop.f32.mrb[27].mxu0 }
 0x8cd   : > { %4708 = vtanh.f32 %v3837_v11  ;;  %v4444_v51 = vadd.f32 %v4090_v1, %v3806_v55 }
 0x8ce   : > { %v3840_v39 = vmul.f32 %v4443_v42, %v3834_v46 }
 0x8cf   : > { %v3839_v52 = vmul.f32 %v4444_v51, %v3834_v46  ;;  %v4428_v37 = vpop.f32.mrb[28].mxu0 }
 0x8d0   : > { %4710 = vtanh.f32 %v3840_v39  ;;  %v4445_v3 = vadd.f32 %v4428_v37, %v4090_v1  ;;  %v3816_v20 = vpop.f32.mrb[29].mxu0 }
 0x8d1   : > { %4712 = vtanh.f32 %v3839_v52  ;;  %v4446_v34 = vadd.f32 %v4090_v1, %v3816_v20 }
 0x8d2   : > { %v4703_v54 = vpop.eup %4702  ;;  %v3842_v26 = vmul.f32 %v4445_v3, %v3834_v46 }
 0x8d3   : > { %v4705_v21 = vpop.eup %4704  ;;  %v3859_v9 = vmul.f32 %v4703_v54, %v4115_v13  ;;  %v3841_v44 = vmul.f32 %v4446_v34, %v3834_v46 }
 0x8d4   : > { %v3858_v7 = vmul.f32 %v4705_v21, %v4115_v13  ;;  %4714 = vtanh.f32 %v3842_v26 }
 0x8d5   : > { %v3874_v2 = vadd.f32 %v4116_v5, %v3859_v9  ;;  %4716 = vtanh.f32 %v3841_v44 }
 0x8d6   : > { %v4707_v16 = vpop.eup %4706  ;;  %v3873_v35 = vadd.f32 %v4116_v5, %v3858_v7 }
 0x8d7   : > { %v4709_v22 = vpop.eup %4708  ;;  %3883 = vst.msk [vmem:[%s6160_s25 + $0x8] sm:$0xff] %vm431_vm0, %v3874_v2  ;;  %v3861_v58 = vmul.f32 %v4707_v16, %v4115_v13 }
 0x8d8   : > { %3882 = vst.msk [vmem:[%s6160_s25] sm:$0xff] %vm431_vm0, %v3873_v35  ;;  %v3860_v62 = vmul.f32 %v4709_v22, %v4115_v13 }
 0x8d9   : > { %v3876_v61 = vadd.f32 %v4116_v5, %v3861_v58 }
 0x8da   : > { %v4711_v14 = vpop.eup %4710  ;;  %v3875_v50 = vadd.f32 %v4116_v5, %v3860_v62 }
 0x8db   : > { %v4713_v30 = vpop.eup %4712  ;;  %3885 = vst.msk [vmem:[%s6160_s25 + $0x18] sm:$0xff] %vm431_vm0, %v3876_v61  ;;  %v3863_v17 = vmul.f32 %v4711_v14, %v4115_v13 }
 0x8dc   : > { %3884 = vst.msk [vmem:[%s6160_s25 + $0x10] sm:$0xff] %vm431_vm0, %v3875_v50  ;;  %v3862_v56 = vmul.f32 %v4713_v30, %v4115_v13 }
 0x8dd   : > { %v3878_v43 = vadd.f32 %v4116_v5, %v3863_v17 }
 0x8de   : > { %v4715_v24 = vpop.eup %4714  ;;  %v3877_v15 = vadd.f32 %v4116_v5, %v3862_v56 }
 0x8df   : > { %v4717_v38 = vpop.eup %4716  ;;  %3887 = vst.msk [vmem:[%s6160_s25 + $0x28] sm:$0xff] %vm431_vm0, %v3878_v43  ;;  %v3865_v8 = vmul.f32 %v4715_v24, %v4115_v13 }
 0x8e0   : > { %3886 = vst.msk [vmem:[%s6160_s25 + $0x20] sm:$0xff] %vm431_vm0, %v3877_v15  ;;  %v3864_v25 = vmul.f32 %v4717_v38, %v4115_v13 }
 0x8e1   : > { %v3880_v28 = vadd.f32 %v4116_v5, %v3865_v8 }
 0x8e2   : > { %v3879_v12 = vadd.f32 %v4116_v5, %v3864_v25 }
 0x8e3   : > { %3889 = vst.msk [vmem:[%s6160_s25 + $0x38] sm:$0xff] %vm431_vm0, %v3880_v28 }
 0x8e4   : > { %3888 = vst.msk [vmem:[%s6160_s25 + $0x30] sm:$0xff] %vm431_vm0, %v3879_v12 }
 0x8e5 PF: > { %s20_s13 = sadd.s32 1, %s4740_s13   ;;  %s6359_s11 = smov %s4736_s12 }
 0x8e6   : > { %p17_p5 = scmp.ge.s32.totalorder %s20_s13, 4   ;;  %s6360_s12 = smov %s6362_s0 }
 0x8e8   :  { %19 = sbr.rel (!%p17_p5) target bundleno = 2 (0x2), region = 103 }

</bundles_post_ra>
